<compile_context>
chip_gen: v7x
topology: tpu7x:2x2x1
jax: 0.10.0
libtpu: 0.0.40
codegen_flags: <defaults>
</compile_context>

<pallas_src>
import functools

import jax
import jax.numpy as jnp
from jax.experimental import pallas as pl
from jax.experimental.pallas import tpu as pltpu


def irblock_kernel(x_ref, w1_ref, w2_ref,
                   s0_ref, b0_ref, s1_ref, b1_ref, s2_ref, b2_ref,
                   f1w_ref, f1b_ref, f2w_ref, f2b_ref,
                   pr_ref, fpr_ref,
                   o_ref,
                   pad_ref):
    # x_ref block: (BT, H, W, C); pad_ref scratch: (BT, H+2, W+2, C) f32.
    BT, H, W, C = x_ref.shape
    M = BT * H * W

    pr = pr_ref[0]          # shared PReLU slope (nn.PReLU() default: 1 param)
    fpr = fpr_ref[0]        # PReLU slope inside the SE block

    x = x_ref[...]          # (BT, H, W, C) f32

    # Zero only the 4 halo strips.  The interior is fully overwritten by each
    # conv, so the halo is all that must be zero.  Done every step (cheap)
    # rather than under pl.when(program_id == 0), which would leave a second
    # TensorCore's scratch uninitialized when the parallel grid axis is split
    # across cores.
    zero_row = jnp.zeros((BT, 1, W + 2, C), jnp.float32)
    zero_col = jnp.zeros((BT, H + 2, 1, C), jnp.float32)
    pad_ref[:, pl.ds(0, 1), :, :] = zero_row
    pad_ref[:, pl.ds(H + 1, 1), :, :] = zero_row
    pad_ref[:, :, pl.ds(0, 1), :] = zero_col
    pad_ref[:, :, pl.ds(W + 1, 1), :] = zero_col

    def conv3x3(inp, w_ref):
        # inp: (BT, H, W, C) f32;  w_ref: (9, Cin, Cout) bf16, tap-major HWIO.
        # Write activations into the interior of the zero-padded buffer, then
        # accumulate 9 tap matmuls (no im2col buffer).
        pad_ref[:, pl.ds(1, H), pl.ds(1, W), :] = inp
        acc = jnp.zeros((M, C), jnp.float32)
        for k in range(9):                       # static unroll over 3x3 taps
            ky, kx = k // 3, k % 3
            tap = pad_ref[:, pl.ds(ky, H), pl.ds(kx, W), :]        # (BT,H,W,C)
            lhs = tap.reshape(M, C).astype(jnp.bfloat16)  # cast just before MXU
            acc = acc + jnp.dot(lhs, w_ref[k],
                                preferred_element_type=jnp.float32)
        return acc.reshape(BT, H, W, C)

    # bn0 (folded, eval mode)
    out = x * s0_ref[0] + b0_ref[0]
    # conv1 + bn1 + PReLU
    out = conv3x3(out, w1_ref)
    out = out * s1_ref[0] + b1_ref[0]
    out = jnp.where(out >= 0.0, out, pr * out)
    # conv2 + bn2
    out = conv3x3(out, w2_ref)
    out = out * s2_ref[0] + b2_ref[0]

    # SE block (per image, batched over BT, all f32):
    # GAP -> FC -> PReLU -> FC -> sigmoid -> channel scale.
    inv_hw = 1.0 / (H * W)
    pooled = jnp.sum(out.reshape(BT, H * W, C), axis=1) * inv_hw      # (BT, C)
    h = jnp.dot(pooled, f1w_ref[...],
                preferred_element_type=jnp.float32) + f1b_ref[...]    # (BT, Cr)
    h = jnp.where(h >= 0.0, h, fpr * h)
    g = jax.nn.sigmoid(jnp.dot(h, f2w_ref[...],
                               preferred_element_type=jnp.float32) + f2b_ref[...])
    out = out * g[:, None, None, :]

    # residual add + final PReLU (same shared slope as self.prelu)
    out = out + x
    o_ref[...] = jnp.where(out >= 0.0, out, pr * out)


def _vmem_bytes(bt, H, W, C, Cr):
    """Rough per-step VMEM footprint (double-buffered in/out tiles + scratch)."""
    tile = bt * H * W * C * 4                       # one (BT,H,W,C) f32 tile
    pad = bt * (H + 2) * (W + 2) * C * 4            # padded f32 scratch
    wts = 2 * 9 * C * C * 2                         # two bf16 conv weights
    se = 2 * C * Cr * 4 + 8 * C * 4 + 8 * Cr * 4    # SE weights/biases, BN vecs
    return 2 * tile + 2 * tile + pad + wts + se


def _pick_batch_tile(B, H, W, C, Cr, budget=24 << 20):
    """Largest batch tile that fits the VMEM budget, preferring >= 2 grid
    steps so both v7x TensorCores get work (harmless on 1-TC v5e/v6e)."""
    divisors = [d for d in range(1, B + 1) if B % d == 0]
    fitting = [d for d in divisors if _vmem_bytes(d, H, W, C, Cr) <= budget]
    if not fitting:
        return 1
    multi_step = [d for d in fitting if B // d >= 2]
    return max(multi_step) if multi_step else max(fitting)


@functools.partial(jax.jit, static_argnames=("batch_tile",))
def irblock_pallas(x, w1, w2, s0, b0, s1, b1, s2, b2,
                   f1w, f1b, f2w, f2b, pr, fpr, *, batch_tile=None):
    B, H, W, C = x.shape
    Cr = f1w.shape[1]
    BT = _pick_batch_tile(B, H, W, C, Cr) if batch_tile is None else batch_tile
    assert B % BT == 0, "batch must be divisible by batch_tile"

    def full(shape):
        return pl.BlockSpec(shape, lambda i, _n=len(shape): (0,) * _n)

    smem = pl.BlockSpec(memory_space=pltpu.MemorySpace.SMEM)

    in_specs = [
        pl.BlockSpec((BT, H, W, C), lambda i: (i, 0, 0, 0)),   # x (batch tile)
        full((9, C, C)),                                       # conv1 weight (bf16, tap-major)
        full((9, C, C)),                                       # conv2 weight (bf16, tap-major)
        full((1, C)), full((1, C)),                            # bn0 scale / bias
        full((1, C)), full((1, C)),                            # bn1 scale / bias
        full((1, C)), full((1, C)),                            # bn2 scale / bias
        full((C, Cr)), full((1, Cr)),                          # SE fc1 weight / bias
        full((Cr, C)), full((1, C)),                           # SE fc2 weight / bias
        smem, smem,                                            # PReLU slopes (SMEM scalars)
    ]
    out_specs = pl.BlockSpec((BT, H, W, C), lambda i: (i, 0, 0, 0))

    est = _vmem_bytes(BT, H, W, C, Cr)
    vmem_limit = None
    if est > (30 << 20):
        # Raise the scoped-VMEM limit only when the estimate needs it, keeping
        # headroom under v7x's 64 MiB physical VMEM.
        vmem_limit = int(min(est + (8 << 20), 56 << 20))

    return pl.pallas_call(
        irblock_kernel,
        out_shape=jax.ShapeDtypeStruct((B, H, W, C), jnp.float32),
        grid_spec=pltpu.PrefetchScalarGridSpec(
            num_scalar_prefetch=0,
            grid=(B // BT,),
            in_specs=in_specs,
            out_specs=out_specs,
            scratch_shapes=[
                pltpu.VMEM((BT, H + 2, W + 2, C), jnp.float32),  # zero-padded activations
            ],
        ),
        compiler_params=pltpu.CompilerParams(
            dimension_semantics=("parallel",),
            vmem_limit_bytes=vmem_limit),
    )(x, w1, w2, s0, b0, s1, b1, s2, b2, f1w, f1b, f2w, f2b, pr, fpr)


def init_params(C, reduction=16, seed=1):
    """Deterministic synthetic parameters matching IRBlock(C, C, stride=1, use_se=True)."""
    Cr = max(C // reduction, 1)
    keys = jax.random.split(jax.random.PRNGKey(seed), 16)
    eps = 1e-5

    def bn_params(kg, kb, km, kv):
        gamma = 1.0 + 0.1 * jax.random.normal(kg, (C,), jnp.float32)
        beta = 0.05 * jax.random.normal(kb, (C,), jnp.float32)
        mean = 0.1 * jax.random.normal(km, (C,), jnp.float32)
        var = 1.0 + 0.2 * jax.random.uniform(kv, (C,), jnp.float32)
        scale = gamma / jnp.sqrt(var + eps)
        bias = beta - mean * scale
        return scale.reshape(1, C), bias.reshape(1, C)

    s0, b0 = bn_params(*keys[0:4])
    s1, b1 = bn_params(*keys[4:8])
    s2, b2 = bn_params(*keys[8:12])

    # PyTorch conv weight (Cout, Cin, kh, kw) -> HWIO -> tap-major (9, Cin, Cout) bf16
    w1_oihw = 0.1 * jax.random.normal(keys[12], (C, C, 3, 3), jnp.float32)
    w2_oihw = 0.1 * jax.random.normal(keys[13], (C, C, 3, 3), jnp.float32)
    w1_hwio = jnp.transpose(w1_oihw, (2, 3, 1, 0))
    w2_hwio = jnp.transpose(w2_oihw, (2, 3, 1, 0))
    w1 = w1_hwio.reshape(9, C, C).astype(jnp.bfloat16)
    w2 = w2_hwio.reshape(9, C, C).astype(jnp.bfloat16)

    # nn.PReLU() default: single shared parameter, init 0.25
    pr = jnp.full((1,), 0.25, jnp.float32)
    fpr = jnp.full((1,), 0.25, jnp.float32)

    # SE linear layers: torch Linear weight is (out, in); kernel uses (in, out)
    f1w_t = 0.2 * jax.random.normal(keys[14], (Cr, C), jnp.float32)
    f2w_t = 0.2 * jax.random.normal(keys[15], (C, Cr), jnp.float32)
    f1w = f1w_t.T                      # (C, Cr)
    f2w = f2w_t.T                      # (Cr, C)
    f1b = 0.05 * jnp.arange(Cr, dtype=jnp.float32).reshape(1, Cr)
    f2b = 0.01 * jnp.arange(C, dtype=jnp.float32).reshape(1, C)

    return dict(w1=w1, w2=w2, w1_hwio=w1_hwio, w2_hwio=w2_hwio,
                s0=s0, b0=b0, s1=s1, b1=b1, s2=s2, b2=b2,
                pr=pr, fpr=fpr, f1w=f1w, f1b=f1b, f2w=f2w, f2b=f2b)


def ref_forward(x, p, conv_dtype=jnp.float32):
    """Pure-JAX NHWC reference (eval-mode BN folding).  conv_dtype mirrors the
    kernel's bf16 conv operands (f32 accumulation) for a tight comparison."""
    def conv(z, w_hwio):
        return jax.lax.conv_general_dilated(
            z.astype(conv_dtype), w_hwio.astype(conv_dtype), (1, 1), 'SAME',
            dimension_numbers=('NHWC', 'HWIO', 'NHWC'),
            preferred_element_type=jnp.float32)

    a = p['pr'][0]
    af = p['fpr'][0]
    out = x * p['s0'] + p['b0']
    out = conv(out, p['w1_hwio'])
    out = out * p['s1'] + p['b1']
    out = jnp.where(out >= 0.0, out, a * out)
    out = conv(out, p['w2_hwio'])
    out = out * p['s2'] + p['b2']
    y = out.mean(axis=(1, 2))                               # (B, C)
    h = y @ p['f1w'] + p['f1b']
    h = jnp.where(h >= 0.0, h, af * h)
    g = jax.nn.sigmoid(h @ p['f2w'] + p['f2b'])             # (B, C)
    out = out * g[:, None, None, :]
    out = out + x
    out = jnp.where(out >= 0.0, out, a * out)
    return out


if __name__ == "__main__":
    # Small but lane-dense demo: C = 128 is a real facenet channel width, so
    # all 128 lanes / full MXU N and unmasked output stores are exercised.
    # NCHW-equivalent input: (4, 128, 8, 8).  batch_tile auto-derives to 2,
    # giving a 2-step parallel grid (both v7x TensorCores busy).
    B, H, W, C, R = 4, 8, 8, 128, 16
    params = init_params(C, reduction=R)
    x = jax.random.normal(jax.random.PRNGKey(0), (B, H, W, C), jnp.float32)

    out = irblock_pallas(
        x, params['w1'], params['w2'],
        params['s0'], params['b0'], params['s1'], params['b1'],
        params['s2'], params['b2'],
        params['f1w'], params['f1b'], params['f2w'], params['f2b'],
        params['pr'], params['fpr'])
    out = jax.block_until_ready(out)

    # Reference with matched (bf16) conv-operand precision: the only residual
    # difference is f32 accumulation order + bf16 re-rounding noise, so the
    # tolerance can be tight relative to the output magnitude.
    ref = jax.block_until_ready(ref_forward(x, params, conv_dtype=jnp.bfloat16))
    assert out.shape == ref.shape and out.dtype == ref.dtype
    err = float(jnp.max(jnp.abs(out - ref)))
    tol = 2e-3 * (float(jnp.max(jnp.abs(ref))) + 1.0)
    assert jnp.all(jnp.isfinite(out)), "non-finite values in kernel output"
    assert err < tol, f"max abs err {err} exceeds tol {tol}"
    print("KERNEL_OK")
</pallas_src>

<mosaic_0001>
module attributes {stable_mosaic.version = 11 : i64} {
  func.func @irblock_kernel(%arg0: i32, %arg1: memref<2x8x8x128xf32, #tpu.memory_space<vmem>>, %arg2: memref<9x128x128xbf16, #tpu.memory_space<vmem>>, %arg3: memref<9x128x128xbf16, #tpu.memory_space<vmem>>, %arg4: memref<1x128xf32, #tpu.memory_space<vmem>>, %arg5: memref<1x128xf32, #tpu.memory_space<vmem>>, %arg6: memref<1x128xf32, #tpu.memory_space<vmem>>, %arg7: memref<1x128xf32, #tpu.memory_space<vmem>>, %arg8: memref<1x128xf32, #tpu.memory_space<vmem>>, %arg9: memref<1x128xf32, #tpu.memory_space<vmem>>, %arg10: memref<128x8xf32, #tpu.memory_space<vmem>>, %arg11: memref<1x8xf32, #tpu.memory_space<vmem>>, %arg12: memref<8x128xf32, #tpu.memory_space<vmem>>, %arg13: memref<1x128xf32, #tpu.memory_space<vmem>>, %arg14: memref<1xf32, #tpu.memory_space<smem>>, %arg15: memref<1xf32, #tpu.memory_space<smem>>, %arg16: memref<2x8x8x128xf32, #tpu.memory_space<vmem>>, %arg17: memref<2x10x10x128xf32, #tpu.memory_space<vmem>>) attributes {dimension_semantics = [#tpu.dimension_semantics<parallel>], iteration_bounds = array<i64: 2>, scalar_prefetch = 0 : i64, scratch_operands = 1 : i64, tpu.core_type = #tpu.core_type<tc>, window_params = [{transform_indices = @transform_0, window_bounds = array<i64: 2, 8, 8, 128>}, {pipeline_mode = #tpu.pipeline_mode<synchronous>, transform_indices = @transform_1, window_bounds = array<i64: 9, 128, 128>}, {pipeline_mode = #tpu.pipeline_mode<synchronous>, transform_indices = @transform_2, window_bounds = array<i64: 9, 128, 128>}, {pipeline_mode = #tpu.pipeline_mode<synchronous>, transform_indices = @transform_3, window_bounds = array<i64: 1, 128>}, {pipeline_mode = #tpu.pipeline_mode<synchronous>, transform_indices = @transform_4, window_bounds = array<i64: 1, 128>}, {pipeline_mode = #tpu.pipeline_mode<synchronous>, transform_indices = @transform_5, window_bounds = array<i64: 1, 128>}, {pipeline_mode = #tpu.pipeline_mode<synchronous>, transform_indices = @transform_6, window_bounds = array<i64: 1, 128>}, {pipeline_mode = #tpu.pipeline_mode<synchronous>, transform_indices = @transform_7, window_bounds = array<i64: 1, 128>}, {pipeline_mode = #tpu.pipeline_mode<synchronous>, transform_indices = @transform_8, window_bounds = array<i64: 1, 128>}, {pipeline_mode = #tpu.pipeline_mode<synchronous>, transform_indices = @transform_9, window_bounds = array<i64: 128, 8>}, {pipeline_mode = #tpu.pipeline_mode<synchronous>, transform_indices = @transform_10, window_bounds = array<i64: 1, 8>}, {pipeline_mode = #tpu.pipeline_mode<synchronous>, transform_indices = @transform_11, window_bounds = array<i64: 8, 128>}, {pipeline_mode = #tpu.pipeline_mode<synchronous>, transform_indices = @transform_12, window_bounds = array<i64: 1, 128>}, {transform_indices = @transform_13, window_bounds = array<i64: 1>}, {transform_indices = @transform_14, window_bounds = array<i64: 1>}, {transform_indices = @transform_15, window_bounds = array<i64: 2, 8, 8, 128>}]} {
    %c0 = arith.constant 0 : index
    %0 = memref.load %arg14[%c0] : memref<1xf32, #tpu.memory_space<smem>>
    %c0_0 = arith.constant 0 : index
    %1 = memref.load %arg15[%c0_0] : memref<1xf32, #tpu.memory_space<smem>>
    %c0_1 = arith.constant 0 : index
    %c0_2 = arith.constant 0 : index
    %c0_3 = arith.constant 0 : index
    %c0_4 = arith.constant 0 : index
    %2 = vector.load %arg1[%c0_1, %c0_2, %c0_3, %c0_4] : memref<2x8x8x128xf32, #tpu.memory_space<vmem>>, vector<2x8x8x128xf32>
    %cst = arith.constant 0.000000e+00 : f32
    %3 = vector.broadcast %cst : f32 to vector<2x1x10x128xf32>
    %cst_5 = arith.constant 0.000000e+00 : f32
    %4 = vector.broadcast %cst_5 : f32 to vector<2x10x1x128xf32>
    %c0_6 = arith.constant 0 : index
    %c0_7 = arith.constant 0 : index
    %c0_8 = arith.constant 0 : index
    %c0_9 = arith.constant 0 : index
    %5 = vector.load %arg17[%c0_6, %c0_7, %c0_8, %c0_9] : memref<2x10x10x128xf32, #tpu.memory_space<vmem>>, vector<2x1x10x128xf32>
    tpu.vector_store %arg17[%c0_6, %c0_7, %c0_8, %c0_9], %3 {strides = array<i32>} : memref<2x10x10x128xf32, #tpu.memory_space<vmem>>, vector<2x1x10x128xf32>,
    %c0_10 = arith.constant 0 : index
    %c9 = arith.constant 9 : index
    %c0_11 = arith.constant 0 : index
    %c0_12 = arith.constant 0 : index
    %6 = vector.load %arg17[%c0_10, %c9, %c0_11, %c0_12] : memref<2x10x10x128xf32, #tpu.memory_space<vmem>>, vector<2x1x10x128xf32>
    tpu.vector_store %arg17[%c0_10, %c9, %c0_11, %c0_12], %3 {strides = array<i32>} : memref<2x10x10x128xf32, #tpu.memory_space<vmem>>, vector<2x1x10x128xf32>,
    %c0_13 = arith.constant 0 : index
    %c0_14 = arith.constant 0 : index
    %c0_15 = arith.constant 0 : index
    %c0_16 = arith.constant 0 : index
    %7 = vector.load %arg17[%c0_13, %c0_14, %c0_15, %c0_16] : memref<2x10x10x128xf32, #tpu.memory_space<vmem>>, vector<2x10x1x128xf32>
    tpu.vector_store %arg17[%c0_13, %c0_14, %c0_15, %c0_16], %4 {strides = array<i32>} : memref<2x10x10x128xf32, #tpu.memory_space<vmem>>, vector<2x10x1x128xf32>,
    %c0_17 = arith.constant 0 : index
    %c0_18 = arith.constant 0 : index
    %c9_19 = arith.constant 9 : index
    %c0_20 = arith.constant 0 : index
    %8 = vector.load %arg17[%c0_17, %c0_18, %c9_19, %c0_20] : memref<2x10x10x128xf32, #tpu.memory_space<vmem>>, vector<2x10x1x128xf32>
    tpu.vector_store %arg17[%c0_17, %c0_18, %c9_19, %c0_20], %4 {strides = array<i32>} : memref<2x10x10x128xf32, #tpu.memory_space<vmem>>, vector<2x10x1x128xf32>,
    %c0_21 = arith.constant 0 : index
    %c0_22 = arith.constant 0 : index
    %9 = vector.load %arg4[%c0_21, %c0_22] : memref<1x128xf32, #tpu.memory_space<vmem>>, vector<1x128xf32>
    %10 = vector.shape_cast %9 : vector<1x128xf32> to vector<128xf32>
    %11 = vector.shape_cast %10 : vector<128xf32> to vector<1x1x1x128xf32>
    %12 = vector.broadcast %11 : vector<1x1x1x128xf32> to vector<2x8x8x128xf32>
    %13 = arith.mulf %2, %12 : vector<2x8x8x128xf32>
    %c0_23 = arith.constant 0 : index
    %c0_24 = arith.constant 0 : index
    %14 = vector.load %arg5[%c0_23, %c0_24] : memref<1x128xf32, #tpu.memory_space<vmem>>, vector<1x128xf32>
    %15 = vector.shape_cast %14 : vector<1x128xf32> to vector<128xf32>
    %16 = vector.shape_cast %15 : vector<128xf32> to vector<1x1x1x128xf32>
    %17 = vector.broadcast %16 : vector<1x1x1x128xf32> to vector<2x8x8x128xf32>
    %18 = arith.addf %13, %17 : vector<2x8x8x128xf32>
    %c0_25 = arith.constant 0 : index
    %c1 = arith.constant 1 : index
    %c1_26 = arith.constant 1 : index
    %c0_27 = arith.constant 0 : index
    %19 = vector.load %arg17[%c0_25, %c1, %c1_26, %c0_27] : memref<2x10x10x128xf32, #tpu.memory_space<vmem>>, vector<2x8x8x128xf32>
    tpu.vector_store %arg17[%c0_25, %c1, %c1_26, %c0_27], %18 {strides = array<i32>} : memref<2x10x10x128xf32, #tpu.memory_space<vmem>>, vector<2x8x8x128xf32>,
    %cst_28 = arith.constant 0.000000e+00 : f32
    %20 = vector.broadcast %cst_28 : f32 to vector<128x128xf32>
    %c0_29 = arith.constant 0 : index
    %c0_30 = arith.constant 0 : index
    %c0_31 = arith.constant 0 : index
    %c0_32 = arith.constant 0 : index
    %21 = vector.load %arg17[%c0_29, %c0_30, %c0_31, %c0_32] : memref<2x10x10x128xf32, #tpu.memory_space<vmem>>, vector<2x8x8x128xf32>
    %22 = vector.shape_cast %21 : vector<2x8x8x128xf32> to vector<128x128xf32>
    %23 = arith.truncf %22 : vector<128x128xf32> to vector<128x128xbf16>
    %c0_33 = arith.constant 0 : index
    %c0_34 = arith.constant 0 : index
    %c0_35 = arith.constant 0 : index
    %24 = vector.load %arg2[%c0_33, %c0_34, %c0_35] : memref<9x128x128xbf16, #tpu.memory_space<vmem>>, vector<1x128x128xbf16>
    %25 = vector.shape_cast %24 : vector<1x128x128xbf16> to vector<128x128xbf16>
    %cst_36 = arith.constant dense<0.000000e+00> : vector<128x128xf32>
    %26 = tpu.matmul %23, %25, %cst_36 {dimension_numbers = #tpu.dot_dimension_numbers<[1], [0], [0], [1], [0, 0, 1, 1], [], []>} : vector<128x128xbf16>, vector<128x128xbf16>, vector<128x128xf32> -> vector<128x128xf32>
    %27 = arith.addf %20, %26 : vector<128x128xf32>
    %c0_37 = arith.constant 0 : index
    %c0_38 = arith.constant 0 : index
    %c1_39 = arith.constant 1 : index
    %c0_40 = arith.constant 0 : index
    %28 = vector.load %arg17[%c0_37, %c0_38, %c1_39, %c0_40] : memref<2x10x10x128xf32, #tpu.memory_space<vmem>>, vector<2x8x8x128xf32>
    %29 = vector.shape_cast %28 : vector<2x8x8x128xf32> to vector<128x128xf32>
    %30 = arith.truncf %29 : vector<128x128xf32> to vector<128x128xbf16>
    %c1_41 = arith.constant 1 : index
    %c0_42 = arith.constant 0 : index
    %c0_43 = arith.constant 0 : index
    %31 = vector.load %arg2[%c1_41, %c0_42, %c0_43] : memref<9x128x128xbf16, #tpu.memory_space<vmem>>, vector<1x128x128xbf16>
    %32 = vector.shape_cast %31 : vector<1x128x128xbf16> to vector<128x128xbf16>
    %cst_44 = arith.constant dense<0.000000e+00> : vector<128x128xf32>
    %33 = tpu.matmul %30, %32, %cst_44 {dimension_numbers = #tpu.dot_dimension_numbers<[1], [0], [0], [1], [0, 0, 1, 1], [], []>} : vector<128x128xbf16>, vector<128x128xbf16>, vector<128x128xf32> -> vector<128x128xf32>
    %34 = arith.addf %27, %33 : vector<128x128xf32>
    %c0_45 = arith.constant 0 : index
    %c0_46 = arith.constant 0 : index
    %c2 = arith.constant 2 : index
    %c0_47 = arith.constant 0 : index
    %35 = vector.load %arg17[%c0_45, %c0_46, %c2, %c0_47] : memref<2x10x10x128xf32, #tpu.memory_space<vmem>>, vector<2x8x8x128xf32>
    %36 = vector.shape_cast %35 : vector<2x8x8x128xf32> to vector<128x128xf32>
    %37 = arith.truncf %36 : vector<128x128xf32> to vector<128x128xbf16>
    %c2_48 = arith.constant 2 : index
    %c0_49 = arith.constant 0 : index
    %c0_50 = arith.constant 0 : index
    %38 = vector.load %arg2[%c2_48, %c0_49, %c0_50] : memref<9x128x128xbf16, #tpu.memory_space<vmem>>, vector<1x128x128xbf16>
    %39 = vector.shape_cast %38 : vector<1x128x128xbf16> to vector<128x128xbf16>
    %cst_51 = arith.constant dense<0.000000e+00> : vector<128x128xf32>
    %40 = tpu.matmul %37, %39, %cst_51 {dimension_numbers = #tpu.dot_dimension_numbers<[1], [0], [0], [1], [0, 0, 1, 1], [], []>} : vector<128x128xbf16>, vector<128x128xbf16>, vector<128x128xf32> -> vector<128x128xf32>
    %41 = arith.addf %34, %40 : vector<128x128xf32>
    %c0_52 = arith.constant 0 : index
    %c1_53 = arith.constant 1 : index
    %c0_54 = arith.constant 0 : index
    %c0_55 = arith.constant 0 : index
    %42 = vector.load %arg17[%c0_52, %c1_53, %c0_54, %c0_55] : memref<2x10x10x128xf32, #tpu.memory_space<vmem>>, vector<2x8x8x128xf32>
    %43 = vector.shape_cast %42 : vector<2x8x8x128xf32> to vector<128x128xf32>
    %44 = arith.truncf %43 : vector<128x128xf32> to vector<128x128xbf16>
    %c3 = arith.constant 3 : index
    %c0_56 = arith.constant 0 : index
    %c0_57 = arith.constant 0 : index
    %45 = vector.load %arg2[%c3, %c0_56, %c0_57] : memref<9x128x128xbf16, #tpu.memory_space<vmem>>, vector<1x128x128xbf16>
    %46 = vector.shape_cast %45 : vector<1x128x128xbf16> to vector<128x128xbf16>
    %cst_58 = arith.constant dense<0.000000e+00> : vector<128x128xf32>
    %47 = tpu.matmul %44, %46, %cst_58 {dimension_numbers = #tpu.dot_dimension_numbers<[1], [0], [0], [1], [0, 0, 1, 1], [], []>} : vector<128x128xbf16>, vector<128x128xbf16>, vector<128x128xf32> -> vector<128x128xf32>
    %48 = arith.addf %41, %47 : vector<128x128xf32>
    %c0_59 = arith.constant 0 : index
    %c1_60 = arith.constant 1 : index
    %c1_61 = arith.constant 1 : index
    %c0_62 = arith.constant 0 : index
    %49 = vector.load %arg17[%c0_59, %c1_60, %c1_61, %c0_62] : memref<2x10x10x128xf32, #tpu.memory_space<vmem>>, vector<2x8x8x128xf32>
    %50 = vector.shape_cast %49 : vector<2x8x8x128xf32> to vector<128x128xf32>
    %51 = arith.truncf %50 : vector<128x128xf32> to vector<128x128xbf16>
    %c4 = arith.constant 4 : index
    %c0_63 = arith.constant 0 : index
    %c0_64 = arith.constant 0 : index
    %52 = vector.load %arg2[%c4, %c0_63, %c0_64] : memref<9x128x128xbf16, #tpu.memory_space<vmem>>, vector<1x128x128xbf16>
    %53 = vector.shape_cast %52 : vector<1x128x128xbf16> to vector<128x128xbf16>
    %cst_65 = arith.constant dense<0.000000e+00> : vector<128x128xf32>
    %54 = tpu.matmul %51, %53, %cst_65 {dimension_numbers = #tpu.dot_dimension_numbers<[1], [0], [0], [1], [0, 0, 1, 1], [], []>} : vector<128x128xbf16>, vector<128x128xbf16>, vector<128x128xf32> -> vector<128x128xf32>
    %55 = arith.addf %48, %54 : vector<128x128xf32>
    %c0_66 = arith.constant 0 : index
    %c1_67 = arith.constant 1 : index
    %c2_68 = arith.constant 2 : index
    %c0_69 = arith.constant 0 : index
    %56 = vector.load %arg17[%c0_66, %c1_67, %c2_68, %c0_69] : memref<2x10x10x128xf32, #tpu.memory_space<vmem>>, vector<2x8x8x128xf32>
    %57 = vector.shape_cast %56 : vector<2x8x8x128xf32> to vector<128x128xf32>
    %58 = arith.truncf %57 : vector<128x128xf32> to vector<128x128xbf16>
    %c5 = arith.constant 5 : index
    %c0_70 = arith.constant 0 : index
    %c0_71 = arith.constant 0 : index
    %59 = vector.load %arg2[%c5, %c0_70, %c0_71] : memref<9x128x128xbf16, #tpu.memory_space<vmem>>, vector<1x128x128xbf16>
    %60 = vector.shape_cast %59 : vector<1x128x128xbf16> to vector<128x128xbf16>
    %cst_72 = arith.constant dense<0.000000e+00> : vector<128x128xf32>
    %61 = tpu.matmul %58, %60, %cst_72 {dimension_numbers = #tpu.dot_dimension_numbers<[1], [0], [0], [1], [0, 0, 1, 1], [], []>} : vector<128x128xbf16>, vector<128x128xbf16>, vector<128x128xf32> -> vector<128x128xf32>
    %62 = arith.addf %55, %61 : vector<128x128xf32>
    %c0_73 = arith.constant 0 : index
    %c2_74 = arith.constant 2 : index
    %c0_75 = arith.constant 0 : index
    %c0_76 = arith.constant 0 : index
    %63 = vector.load %arg17[%c0_73, %c2_74, %c0_75, %c0_76] : memref<2x10x10x128xf32, #tpu.memory_space<vmem>>, vector<2x8x8x128xf32>
    %64 = vector.shape_cast %63 : vector<2x8x8x128xf32> to vector<128x128xf32>
    %65 = arith.truncf %64 : vector<128x128xf32> to vector<128x128xbf16>
    %c6 = arith.constant 6 : index
    %c0_77 = arith.constant 0 : index
    %c0_78 = arith.constant 0 : index
    %66 = vector.load %arg2[%c6, %c0_77, %c0_78] : memref<9x128x128xbf16, #tpu.memory_space<vmem>>, vector<1x128x128xbf16>
    %67 = vector.shape_cast %66 : vector<1x128x128xbf16> to vector<128x128xbf16>
    %cst_79 = arith.constant dense<0.000000e+00> : vector<128x128xf32>
    %68 = tpu.matmul %65, %67, %cst_79 {dimension_numbers = #tpu.dot_dimension_numbers<[1], [0], [0], [1], [0, 0, 1, 1], [], []>} : vector<128x128xbf16>, vector<128x128xbf16>, vector<128x128xf32> -> vector<128x128xf32>
    %69 = arith.addf %62, %68 : vector<128x128xf32>
    %c0_80 = arith.constant 0 : index
    %c2_81 = arith.constant 2 : index
    %c1_82 = arith.constant 1 : index
    %c0_83 = arith.constant 0 : index
    %70 = vector.load %arg17[%c0_80, %c2_81, %c1_82, %c0_83] : memref<2x10x10x128xf32, #tpu.memory_space<vmem>>, vector<2x8x8x128xf32>
    %71 = vector.shape_cast %70 : vector<2x8x8x128xf32> to vector<128x128xf32>
    %72 = arith.truncf %71 : vector<128x128xf32> to vector<128x128xbf16>
    %c7 = arith.constant 7 : index
    %c0_84 = arith.constant 0 : index
    %c0_85 = arith.constant 0 : index
    %73 = vector.load %arg2[%c7, %c0_84, %c0_85] : memref<9x128x128xbf16, #tpu.memory_space<vmem>>, vector<1x128x128xbf16>
    %74 = vector.shape_cast %73 : vector<1x128x128xbf16> to vector<128x128xbf16>
    %cst_86 = arith.constant dense<0.000000e+00> : vector<128x128xf32>
    %75 = tpu.matmul %72, %74, %cst_86 {dimension_numbers = #tpu.dot_dimension_numbers<[1], [0], [0], [1], [0, 0, 1, 1], [], []>} : vector<128x128xbf16>, vector<128x128xbf16>, vector<128x128xf32> -> vector<128x128xf32>
    %76 = arith.addf %69, %75 : vector<128x128xf32>
    %c0_87 = arith.constant 0 : index
    %c2_88 = arith.constant 2 : index
    %c2_89 = arith.constant 2 : index
    %c0_90 = arith.constant 0 : index
    %77 = vector.load %arg17[%c0_87, %c2_88, %c2_89, %c0_90] : memref<2x10x10x128xf32, #tpu.memory_space<vmem>>, vector<2x8x8x128xf32>
    %78 = vector.shape_cast %77 : vector<2x8x8x128xf32> to vector<128x128xf32>
    %79 = arith.truncf %78 : vector<128x128xf32> to vector<128x128xbf16>
    %c8 = arith.constant 8 : index
    %c0_91 = arith.constant 0 : index
    %c0_92 = arith.constant 0 : index
    %80 = vector.load %arg2[%c8, %c0_91, %c0_92] : memref<9x128x128xbf16, #tpu.memory_space<vmem>>, vector<1x128x128xbf16>
    %81 = vector.shape_cast %80 : vector<1x128x128xbf16> to vector<128x128xbf16>
    %cst_93 = arith.constant dense<0.000000e+00> : vector<128x128xf32>
    %82 = tpu.matmul %79, %81, %cst_93 {dimension_numbers = #tpu.dot_dimension_numbers<[1], [0], [0], [1], [0, 0, 1, 1], [], []>} : vector<128x128xbf16>, vector<128x128xbf16>, vector<128x128xf32> -> vector<128x128xf32>
    %83 = arith.addf %76, %82 : vector<128x128xf32>
    %84 = vector.shape_cast %83 : vector<128x128xf32> to vector<2x8x8x128xf32>
    %c0_94 = arith.constant 0 : index
    %c0_95 = arith.constant 0 : index
    %85 = vector.load %arg6[%c0_94, %c0_95] : memref<1x128xf32, #tpu.memory_space<vmem>>, vector<1x128xf32>
    %86 = vector.shape_cast %85 : vector<1x128xf32> to vector<128xf32>
    %87 = vector.shape_cast %86 : vector<128xf32> to vector<1x1x1x128xf32>
    %88 = vector.broadcast %87 : vector<1x1x1x128xf32> to vector<2x8x8x128xf32>
    %89 = arith.mulf %84, %88 : vector<2x8x8x128xf32>
    %c0_96 = arith.constant 0 : index
    %c0_97 = arith.constant 0 : index
    %90 = vector.load %arg7[%c0_96, %c0_97] : memref<1x128xf32, #tpu.memory_space<vmem>>, vector<1x128xf32>
    %91 = vector.shape_cast %90 : vector<1x128xf32> to vector<128xf32>
    %92 = vector.shape_cast %91 : vector<128xf32> to vector<1x1x1x128xf32>
    %93 = vector.broadcast %92 : vector<1x1x1x128xf32> to vector<2x8x8x128xf32>
    %94 = arith.addf %89, %93 : vector<2x8x8x128xf32>
    %cst_98 = arith.constant 0.000000e+00 : f32
    %95 = vector.broadcast %cst_98 : f32 to vector<2x8x8x128xf32>
    %96 = arith.cmpf oge, %94, %95 : vector<2x8x8x128xf32>
    %97 = vector.broadcast %0 : f32 to vector<2x8x8x128xf32>
    %98 = arith.mulf %97, %94 : vector<2x8x8x128xf32>
    %99 = arith.select %96, %94, %98 : vector<2x8x8x128xi1>, vector<2x8x8x128xf32>
    %c0_99 = arith.constant 0 : index
    %c1_100 = arith.constant 1 : index
    %c1_101 = arith.constant 1 : index
    %c0_102 = arith.constant 0 : index
    %100 = vector.load %arg17[%c0_99, %c1_100, %c1_101, %c0_102] : memref<2x10x10x128xf32, #tpu.memory_space<vmem>>, vector<2x8x8x128xf32>
    tpu.vector_store %arg17[%c0_99, %c1_100, %c1_101, %c0_102], %99 {strides = array<i32>} : memref<2x10x10x128xf32, #tpu.memory_space<vmem>>, vector<2x8x8x128xf32>,
    %cst_103 = arith.constant 0.000000e+00 : f32
    %101 = vector.broadcast %cst_103 : f32 to vector<128x128xf32>
    %c0_104 = arith.constant 0 : index
    %c0_105 = arith.constant 0 : index
    %c0_106 = arith.constant 0 : index
    %c0_107 = arith.constant 0 : index
    %102 = vector.load %arg17[%c0_104, %c0_105, %c0_106, %c0_107] : memref<2x10x10x128xf32, #tpu.memory_space<vmem>>, vector<2x8x8x128xf32>
    %103 = vector.shape_cast %102 : vector<2x8x8x128xf32> to vector<128x128xf32>
    %104 = arith.truncf %103 : vector<128x128xf32> to vector<128x128xbf16>
    %c0_108 = arith.constant 0 : index
    %c0_109 = arith.constant 0 : index
    %c0_110 = arith.constant 0 : index
    %105 = vector.load %arg3[%c0_108, %c0_109, %c0_110] : memref<9x128x128xbf16, #tpu.memory_space<vmem>>, vector<1x128x128xbf16>
    %106 = vector.shape_cast %105 : vector<1x128x128xbf16> to vector<128x128xbf16>
    %cst_111 = arith.constant dense<0.000000e+00> : vector<128x128xf32>
    %107 = tpu.matmul %104, %106, %cst_111 {dimension_numbers = #tpu.dot_dimension_numbers<[1], [0], [0], [1], [0, 0, 1, 1], [], []>} : vector<128x128xbf16>, vector<128x128xbf16>, vector<128x128xf32> -> vector<128x128xf32>
    %108 = arith.addf %101, %107 : vector<128x128xf32>
    %c0_112 = arith.constant 0 : index
    %c0_113 = arith.constant 0 : index
    %c1_114 = arith.constant 1 : index
    %c0_115 = arith.constant 0 : index
    %109 = vector.load %arg17[%c0_112, %c0_113, %c1_114, %c0_115] : memref<2x10x10x128xf32, #tpu.memory_space<vmem>>, vector<2x8x8x128xf32>
    %110 = vector.shape_cast %109 : vector<2x8x8x128xf32> to vector<128x128xf32>
    %111 = arith.truncf %110 : vector<128x128xf32> to vector<128x128xbf16>
    %c1_116 = arith.constant 1 : index
    %c0_117 = arith.constant 0 : index
    %c0_118 = arith.constant 0 : index
    %112 = vector.load %arg3[%c1_116, %c0_117, %c0_118] : memref<9x128x128xbf16, #tpu.memory_space<vmem>>, vector<1x128x128xbf16>
    %113 = vector.shape_cast %112 : vector<1x128x128xbf16> to vector<128x128xbf16>
    %cst_119 = arith.constant dense<0.000000e+00> : vector<128x128xf32>
    %114 = tpu.matmul %111, %113, %cst_119 {dimension_numbers = #tpu.dot_dimension_numbers<[1], [0], [0], [1], [0, 0, 1, 1], [], []>} : vector<128x128xbf16>, vector<128x128xbf16>, vector<128x128xf32> -> vector<128x128xf32>
    %115 = arith.addf %108, %114 : vector<128x128xf32>
    %c0_120 = arith.constant 0 : index
    %c0_121 = arith.constant 0 : index
    %c2_122 = arith.constant 2 : index
    %c0_123 = arith.constant 0 : index
    %116 = vector.load %arg17[%c0_120, %c0_121, %c2_122, %c0_123] : memref<2x10x10x128xf32, #tpu.memory_space<vmem>>, vector<2x8x8x128xf32>
    %117 = vector.shape_cast %116 : vector<2x8x8x128xf32> to vector<128x128xf32>
    %118 = arith.truncf %117 : vector<128x128xf32> to vector<128x128xbf16>
    %c2_124 = arith.constant 2 : index
    %c0_125 = arith.constant 0 : index
    %c0_126 = arith.constant 0 : index
    %119 = vector.load %arg3[%c2_124, %c0_125, %c0_126] : memref<9x128x128xbf16, #tpu.memory_space<vmem>>, vector<1x128x128xbf16>
    %120 = vector.shape_cast %119 : vector<1x128x128xbf16> to vector<128x128xbf16>
    %cst_127 = arith.constant dense<0.000000e+00> : vector<128x128xf32>
    %121 = tpu.matmul %118, %120, %cst_127 {dimension_numbers = #tpu.dot_dimension_numbers<[1], [0], [0], [1], [0, 0, 1, 1], [], []>} : vector<128x128xbf16>, vector<128x128xbf16>, vector<128x128xf32> -> vector<128x128xf32>
    %122 = arith.addf %115, %121 : vector<128x128xf32>
    %c0_128 = arith.constant 0 : index
    %c1_129 = arith.constant 1 : index
    %c0_130 = arith.constant 0 : index
    %c0_131 = arith.constant 0 : index
    %123 = vector.load %arg17[%c0_128, %c1_129, %c0_130, %c0_131] : memref<2x10x10x128xf32, #tpu.memory_space<vmem>>, vector<2x8x8x128xf32>
    %124 = vector.shape_cast %123 : vector<2x8x8x128xf32> to vector<128x128xf32>
    %125 = arith.truncf %124 : vector<128x128xf32> to vector<128x128xbf16>
    %c3_132 = arith.constant 3 : index
    %c0_133 = arith.constant 0 : index
    %c0_134 = arith.constant 0 : index
    %126 = vector.load %arg3[%c3_132, %c0_133, %c0_134] : memref<9x128x128xbf16, #tpu.memory_space<vmem>>, vector<1x128x128xbf16>
    %127 = vector.shape_cast %126 : vector<1x128x128xbf16> to vector<128x128xbf16>
    %cst_135 = arith.constant dense<0.000000e+00> : vector<128x128xf32>
    %128 = tpu.matmul %125, %127, %cst_135 {dimension_numbers = #tpu.dot_dimension_numbers<[1], [0], [0], [1], [0, 0, 1, 1], [], []>} : vector<128x128xbf16>, vector<128x128xbf16>, vector<128x128xf32> -> vector<128x128xf32>
    %129 = arith.addf %122, %128 : vector<128x128xf32>
    %c0_136 = arith.constant 0 : index
    %c1_137 = arith.constant 1 : index
    %c1_138 = arith.constant 1 : index
    %c0_139 = arith.constant 0 : index
    %130 = vector.load %arg17[%c0_136, %c1_137, %c1_138, %c0_139] : memref<2x10x10x128xf32, #tpu.memory_space<vmem>>, vector<2x8x8x128xf32>
    %131 = vector.shape_cast %130 : vector<2x8x8x128xf32> to vector<128x128xf32>
    %132 = arith.truncf %131 : vector<128x128xf32> to vector<128x128xbf16>
    %c4_140 = arith.constant 4 : index
    %c0_141 = arith.constant 0 : index
    %c0_142 = arith.constant 0 : index
    %133 = vector.load %arg3[%c4_140, %c0_141, %c0_142] : memref<9x128x128xbf16, #tpu.memory_space<vmem>>, vector<1x128x128xbf16>
    %134 = vector.shape_cast %133 : vector<1x128x128xbf16> to vector<128x128xbf16>
    %cst_143 = arith.constant dense<0.000000e+00> : vector<128x128xf32>
    %135 = tpu.matmul %132, %134, %cst_143 {dimension_numbers = #tpu.dot_dimension_numbers<[1], [0], [0], [1], [0, 0, 1, 1], [], []>} : vector<128x128xbf16>, vector<128x128xbf16>, vector<128x128xf32> -> vector<128x128xf32>
    %136 = arith.addf %129, %135 : vector<128x128xf32>
    %c0_144 = arith.constant 0 : index
    %c1_145 = arith.constant 1 : index
    %c2_146 = arith.constant 2 : index
    %c0_147 = arith.constant 0 : index
    %137 = vector.load %arg17[%c0_144, %c1_145, %c2_146, %c0_147] : memref<2x10x10x128xf32, #tpu.memory_space<vmem>>, vector<2x8x8x128xf32>
    %138 = vector.shape_cast %137 : vector<2x8x8x128xf32> to vector<128x128xf32>
    %139 = arith.truncf %138 : vector<128x128xf32> to vector<128x128xbf16>
    %c5_148 = arith.constant 5 : index
    %c0_149 = arith.constant 0 : index
    %c0_150 = arith.constant 0 : index
    %140 = vector.load %arg3[%c5_148, %c0_149, %c0_150] : memref<9x128x128xbf16, #tpu.memory_space<vmem>>, vector<1x128x128xbf16>
    %141 = vector.shape_cast %140 : vector<1x128x128xbf16> to vector<128x128xbf16>
    %cst_151 = arith.constant dense<0.000000e+00> : vector<128x128xf32>
    %142 = tpu.matmul %139, %141, %cst_151 {dimension_numbers = #tpu.dot_dimension_numbers<[1], [0], [0], [1], [0, 0, 1, 1], [], []>} : vector<128x128xbf16>, vector<128x128xbf16>, vector<128x128xf32> -> vector<128x128xf32>
    %143 = arith.addf %136, %142 : vector<128x128xf32>
    %c0_152 = arith.constant 0 : index
    %c2_153 = arith.constant 2 : index
    %c0_154 = arith.constant 0 : index
    %c0_155 = arith.constant 0 : index
    %144 = vector.load %arg17[%c0_152, %c2_153, %c0_154, %c0_155] : memref<2x10x10x128xf32, #tpu.memory_space<vmem>>, vector<2x8x8x128xf32>
    %145 = vector.shape_cast %144 : vector<2x8x8x128xf32> to vector<128x128xf32>
    %146 = arith.truncf %145 : vector<128x128xf32> to vector<128x128xbf16>
    %c6_156 = arith.constant 6 : index
    %c0_157 = arith.constant 0 : index
    %c0_158 = arith.constant 0 : index
    %147 = vector.load %arg3[%c6_156, %c0_157, %c0_158] : memref<9x128x128xbf16, #tpu.memory_space<vmem>>, vector<1x128x128xbf16>
    %148 = vector.shape_cast %147 : vector<1x128x128xbf16> to vector<128x128xbf16>
    %cst_159 = arith.constant dense<0.000000e+00> : vector<128x128xf32>
    %149 = tpu.matmul %146, %148, %cst_159 {dimension_numbers = #tpu.dot_dimension_numbers<[1], [0], [0], [1], [0, 0, 1, 1], [], []>} : vector<128x128xbf16>, vector<128x128xbf16>, vector<128x128xf32> -> vector<128x128xf32>
    %150 = arith.addf %143, %149 : vector<128x128xf32>
    %c0_160 = arith.constant 0 : index
    %c2_161 = arith.constant 2 : index
    %c1_162 = arith.constant 1 : index
    %c0_163 = arith.constant 0 : index
    %151 = vector.load %arg17[%c0_160, %c2_161, %c1_162, %c0_163] : memref<2x10x10x128xf32, #tpu.memory_space<vmem>>, vector<2x8x8x128xf32>
    %152 = vector.shape_cast %151 : vector<2x8x8x128xf32> to vector<128x128xf32>
    %153 = arith.truncf %152 : vector<128x128xf32> to vector<128x128xbf16>
    %c7_164 = arith.constant 7 : index
    %c0_165 = arith.constant 0 : index
    %c0_166 = arith.constant 0 : index
    %154 = vector.load %arg3[%c7_164, %c0_165, %c0_166] : memref<9x128x128xbf16, #tpu.memory_space<vmem>>, vector<1x128x128xbf16>
    %155 = vector.shape_cast %154 : vector<1x128x128xbf16> to vector<128x128xbf16>
    %cst_167 = arith.constant dense<0.000000e+00> : vector<128x128xf32>
    %156 = tpu.matmul %153, %155, %cst_167 {dimension_numbers = #tpu.dot_dimension_numbers<[1], [0], [0], [1], [0, 0, 1, 1], [], []>} : vector<128x128xbf16>, vector<128x128xbf16>, vector<128x128xf32> -> vector<128x128xf32>
    %157 = arith.addf %150, %156 : vector<128x128xf32>
    %c0_168 = arith.constant 0 : index
    %c2_169 = arith.constant 2 : index
    %c2_170 = arith.constant 2 : index
    %c0_171 = arith.constant 0 : index
    %158 = vector.load %arg17[%c0_168, %c2_169, %c2_170, %c0_171] : memref<2x10x10x128xf32, #tpu.memory_space<vmem>>, vector<2x8x8x128xf32>
    %159 = vector.shape_cast %158 : vector<2x8x8x128xf32> to vector<128x128xf32>
    %160 = arith.truncf %159 : vector<128x128xf32> to vector<128x128xbf16>
    %c8_172 = arith.constant 8 : index
    %c0_173 = arith.constant 0 : index
    %c0_174 = arith.constant 0 : index
    %161 = vector.load %arg3[%c8_172, %c0_173, %c0_174] : memref<9x128x128xbf16, #tpu.memory_space<vmem>>, vector<1x128x128xbf16>
    %162 = vector.shape_cast %161 : vector<1x128x128xbf16> to vector<128x128xbf16>
    %cst_175 = arith.constant dense<0.000000e+00> : vector<128x128xf32>
    %163 = tpu.matmul %160, %162, %cst_175 {dimension_numbers = #tpu.dot_dimension_numbers<[1], [0], [0], [1], [0, 0, 1, 1], [], []>} : vector<128x128xbf16>, vector<128x128xbf16>, vector<128x128xf32> -> vector<128x128xf32>
    %164 = arith.addf %157, %163 : vector<128x128xf32>
    %165 = vector.shape_cast %164 : vector<128x128xf32> to vector<2x8x8x128xf32>
    %c0_176 = arith.constant 0 : index
    %c0_177 = arith.constant 0 : index
    %166 = vector.load %arg8[%c0_176, %c0_177] : memref<1x128xf32, #tpu.memory_space<vmem>>, vector<1x128xf32>
    %167 = vector.shape_cast %166 : vector<1x128xf32> to vector<128xf32>
    %168 = vector.shape_cast %167 : vector<128xf32> to vector<1x1x1x128xf32>
    %169 = vector.broadcast %168 : vector<1x1x1x128xf32> to vector<2x8x8x128xf32>
    %170 = arith.mulf %165, %169 : vector<2x8x8x128xf32>
    %c0_178 = arith.constant 0 : index
    %c0_179 = arith.constant 0 : index
    %171 = vector.load %arg9[%c0_178, %c0_179] : memref<1x128xf32, #tpu.memory_space<vmem>>, vector<1x128xf32>
    %172 = vector.shape_cast %171 : vector<1x128xf32> to vector<128xf32>
    %173 = vector.shape_cast %172 : vector<128xf32> to vector<1x1x1x128xf32>
    %174 = vector.broadcast %173 : vector<1x1x1x128xf32> to vector<2x8x8x128xf32>
    %175 = arith.addf %170, %174 : vector<2x8x8x128xf32>
    %176 = vector.shape_cast %175 : vector<2x8x8x128xf32> to vector<2x64x128xf32>
    %cst_180 = arith.constant dense<0.000000e+00> : vector<2x128xf32>
    %177 = vector.multi_reduction <add>, %176, %cst_180 [1] : vector<2x64x128xf32> to vector<2x128xf32>
    %cst_181 = arith.constant 1.562500e-02 : f32
    %178 = vector.broadcast %cst_181 : f32 to vector<2x128xf32>
    %179 = arith.mulf %177, %178 : vector<2x128xf32>
    %c0_182 = arith.constant 0 : index
    %c0_183 = arith.constant 0 : index
    %180 = vector.load %arg10[%c0_182, %c0_183] : memref<128x8xf32, #tpu.memory_space<vmem>>, vector<128x8xf32>
    %cst_184 = arith.constant dense<0.000000e+00> : vector<2x8xf32>
    %181 = tpu.matmul %179, %180, %cst_184 {dimension_numbers = #tpu.dot_dimension_numbers<[1], [0], [0], [1], [0, 0, 1, 1], [], []>} : vector<2x128xf32>, vector<128x8xf32>, vector<2x8xf32> -> vector<2x8xf32>
    %c0_185 = arith.constant 0 : index
    %c0_186 = arith.constant 0 : index
    %182 = vector.load %arg11[%c0_185, %c0_186] : memref<1x8xf32, #tpu.memory_space<vmem>>, vector<1x8xf32>
    %183 = vector.broadcast %182 : vector<1x8xf32> to vector<2x8xf32>
    %184 = arith.addf %181, %183 : vector<2x8xf32>
    %cst_187 = arith.constant 0.000000e+00 : f32
    %185 = vector.broadcast %cst_187 : f32 to vector<2x8xf32>
    %186 = arith.cmpf oge, %184, %185 : vector<2x8xf32>
    %187 = vector.broadcast %1 : f32 to vector<2x8xf32>
    %188 = arith.mulf %187, %184 : vector<2x8xf32>
    %189 = arith.select %186, %184, %188 : vector<2x8xi1>, vector<2x8xf32>
    %c0_188 = arith.constant 0 : index
    %c0_189 = arith.constant 0 : index
    %190 = vector.load %arg12[%c0_188, %c0_189] : memref<8x128xf32, #tpu.memory_space<vmem>>, vector<8x128xf32>
    %cst_190 = arith.constant dense<0.000000e+00> : vector<2x128xf32>
    %191 = tpu.matmul %189, %190, %cst_190 {dimension_numbers = #tpu.dot_dimension_numbers<[1], [0], [0], [1], [0, 0, 1, 1], [], []>} : vector<2x8xf32>, vector<8x128xf32>, vector<2x128xf32> -> vector<2x128xf32>
    %c0_191 = arith.constant 0 : index
    %c0_192 = arith.constant 0 : index
    %192 = vector.load %arg13[%c0_191, %c0_192] : memref<1x128xf32, #tpu.memory_space<vmem>>, vector<1x128xf32>
    %193 = vector.broadcast %192 : vector<1x128xf32> to vector<2x128xf32>
    %194 = arith.addf %191, %193 : vector<2x128xf32>
    %195 = arith.negf %194 : vector<2x128xf32>
    %196 = math.exp %195 : vector<2x128xf32>
    %cst_193 = arith.constant 1.000000e+00 : f32
    %197 = vector.broadcast %cst_193 : f32 to vector<2x128xf32>
    %198 = arith.addf %197, %196 : vector<2x128xf32>
    %199 = arith.divf %197, %198 : vector<2x128xf32>
    %200 = vector.shape_cast %199 : vector<2x128xf32> to vector<2x1x1x128xf32>
    %201 = vector.broadcast %200 : vector<2x1x1x128xf32> to vector<2x8x8x128xf32>
    %202 = arith.mulf %175, %201 : vector<2x8x8x128xf32>
    %203 = arith.addf %202, %2 : vector<2x8x8x128xf32>
    %cst_194 = arith.constant 0.000000e+00 : f32
    %204 = vector.broadcast %cst_194 : f32 to vector<2x8x8x128xf32>
    %205 = arith.cmpf oge, %203, %204 : vector<2x8x8x128xf32>
    %206 = vector.broadcast %0 : f32 to vector<2x8x8x128xf32>
    %207 = arith.mulf %206, %203 : vector<2x8x8x128xf32>
    %208 = arith.select %205, %203, %207 : vector<2x8x8x128xi1>, vector<2x8x8x128xf32>
    %c0_195 = arith.constant 0 : index
    %c0_196 = arith.constant 0 : index
    %c0_197 = arith.constant 0 : index
    %c0_198 = arith.constant 0 : index
    %209 = vector.load %arg16[%c0_195, %c0_196, %c0_197, %c0_198] : memref<2x8x8x128xf32, #tpu.memory_space<vmem>>, vector<2x8x8x128xf32>
    tpu.vector_store %arg16[%c0_195, %c0_196, %c0_197, %c0_198], %208 {strides = array<i32>} : memref<2x8x8x128xf32, #tpu.memory_space<vmem>>, vector<2x8x8x128xf32>,
    return
  }
  func.func @transform_0(%arg0: i32) -> (i32, i32, i32, i32) {
    %c0_i32 = arith.constant 0 : i32
    %c0_i32_0 = arith.constant 0 : i32
    %c0_i32_1 = arith.constant 0 : i32
    %c0_i32_2 = arith.constant 0 : i32
    return %arg0, %c0_i32, %c0_i32_0, %c0_i32_1 : i32, i32, i32, i32
  }
  func.func @transform_1(%arg0: i32) -> (i32, i32, i32) {
    %c0_i32 = arith.constant 0 : i32
    %c0_i32_0 = arith.constant 0 : i32
    %c0_i32_1 = arith.constant 0 : i32
    %c0_i32_2 = arith.constant 0 : i32
    return %c0_i32, %c0_i32_0, %c0_i32_1 : i32, i32, i32
  }
  func.func @transform_2(%arg0: i32) -> (i32, i32, i32) {
    %c0_i32 = arith.constant 0 : i32
    %c0_i32_0 = arith.constant 0 : i32
    %c0_i32_1 = arith.constant 0 : i32
    %c0_i32_2 = arith.constant 0 : i32
    return %c0_i32, %c0_i32_0, %c0_i32_1 : i32, i32, i32
  }
  func.func @transform_3(%arg0: i32) -> (i32, i32) {
    %c0_i32 = arith.constant 0 : i32
    %c0_i32_0 = arith.constant 0 : i32
    %c0_i32_1 = arith.constant 0 : i32
    return %c0_i32, %c0_i32_0 : i32, i32
  }
  func.func @transform_4(%arg0: i32) -> (i32, i32) {
    %c0_i32 = arith.constant 0 : i32
    %c0_i32_0 = arith.constant 0 : i32
    %c0_i32_1 = arith.constant 0 : i32
    return %c0_i32, %c0_i32_0 : i32, i32
  }
  func.func @transform_5(%arg0: i32) -> (i32, i32) {
    %c0_i32 = arith.constant 0 : i32
    %c0_i32_0 = arith.constant 0 : i32
    %c0_i32_1 = arith.constant 0 : i32
    return %c0_i32, %c0_i32_0 : i32, i32
  }
  func.func @transform_6(%arg0: i32) -> (i32, i32) {
    %c0_i32 = arith.constant 0 : i32
    %c0_i32_0 = arith.constant 0 : i32
    %c0_i32_1 = arith.constant 0 : i32
    return %c0_i32, %c0_i32_0 : i32, i32
  }
  func.func @transform_7(%arg0: i32) -> (i32, i32) {
    %c0_i32 = arith.constant 0 : i32
    %c0_i32_0 = arith.constant 0 : i32
    %c0_i32_1 = arith.constant 0 : i32
    return %c0_i32, %c0_i32_0 : i32, i32
  }
  func.func @transform_8(%arg0: i32) -> (i32, i32) {
    %c0_i32 = arith.constant 0 : i32
    %c0_i32_0 = arith.constant 0 : i32
    %c0_i32_1 = arith.constant 0 : i32
    return %c0_i32, %c0_i32_0 : i32, i32
  }
  func.func @transform_9(%arg0: i32) -> (i32, i32) {
    %c0_i32 = arith.constant 0 : i32
    %c0_i32_0 = arith.constant 0 : i32
    %c0_i32_1 = arith.constant 0 : i32
    return %c0_i32, %c0_i32_0 : i32, i32
  }
  func.func @transform_10(%arg0: i32) -> (i32, i32) {
    %c0_i32 = arith.constant 0 : i32
    %c0_i32_0 = arith.constant 0 : i32
    %c0_i32_1 = arith.constant 0 : i32
    return %c0_i32, %c0_i32_0 : i32, i32
  }
  func.func @transform_11(%arg0: i32) -> (i32, i32) {
    %c0_i32 = arith.constant 0 : i32
    %c0_i32_0 = arith.constant 0 : i32
    %c0_i32_1 = arith.constant 0 : i32
    return %c0_i32, %c0_i32_0 : i32, i32
  }
  func.func @transform_12(%arg0: i32) -> (i32, i32) {
    %c0_i32 = arith.constant 0 : i32
    %c0_i32_0 = arith.constant 0 : i32
    %c0_i32_1 = arith.constant 0 : i32
    return %c0_i32, %c0_i32_0 : i32, i32
  }
  func.func @transform_13(%arg0: i32) -> i32 {
    %c0_i32 = arith.constant 0 : i32
    %c0_i32_0 = arith.constant 0 : i32
    return %c0_i32 : i32
  }
  func.func @transform_14(%arg0: i32) -> i32 {
    %c0_i32 = arith.constant 0 : i32
    %c0_i32_0 = arith.constant 0 : i32
    return %c0_i32 : i32
  }
  func.func @transform_15(%arg0: i32) -> (i32, i32, i32, i32) {
    %c0_i32 = arith.constant 0 : i32
    %c0_i32_0 = arith.constant 0 : i32
    %c0_i32_1 = arith.constant 0 : i32
    %c0_i32_2 = arith.constant 0 : i32
    return %arg0, %c0_i32, %c0_i32_0, %c0_i32_1 : i32, i32, i32, i32
  }
}

</mosaic_0001>

<bundles_post_ra>
// kernel: irblock_pallas.1
= control target key start
LH: loop header
LB: loop body
LE: loop exit
PB: predicated region body
PF: predicated region fallthrough
CT: control target
= control target key end

     0   :  { %s7981_s0 = inlined_call_operand.hbm [shape: f32[4,8,8,128], index: 0, kind: input, shape index: {}]   ;;  %s7982_s1 = inlined_call_operand.hbm [shape: bf16[9,128,128], index: 1, kind: input, shape index: {}]   ;;  %s7983_s2 = inlined_call_operand.hbm [shape: bf16[9,128,128], index: 2, kind: input, shape index: {}]   ;;  %s7984_s3 = inlined_call_operand.vmem [shape: f32[1,128], index: 3, kind: input, shape index: {}]   ;;  %s7985_s4 = inlined_call_operand.vmem [shape: f32[1,128], index: 4, kind: input, shape index: {}]   ;;  %s7986_s5 = inlined_call_operand.vmem [shape: f32[1,128], index: 5, kind: input, shape index: {}]   ;;  %s7987_s6 = inlined_call_operand.vmem [shape: f32[1,128], index: 6, kind: input, shape index: {}]   ;;  %s7988_s7 = inlined_call_operand.vmem [shape: f32[1,128], index: 7, kind: input, shape index: {}]   ;;  %s7989_s8 = inlined_call_operand.vmem [shape: f32[1,128], index: 8, kind: input, shape index: {}]   ;;  %s7990_s9 = inlined_call_operand.vmem [shape: f32[128,8], index: 9, kind: input, shape index: {}]   ;;  %s7991_s10 = inlined_call_operand.vmem [shape: f32[1,8], index: 10, kind: input, shape index: {}]   ;;  %s7992_s11 = inlined_call_operand.vmem [shape: f32[8,128], index: 11, kind: input, shape index: {}]   ;;  %s7993_s12 = inlined_call_operand.vmem [shape: f32[1,128], index: 12, kind: input, shape index: {}]   ;;  %s7994_s13 = inlined_call_operand.<no memory space> [shape: f32[1], index: 13, kind: input, shape index: {}]   ;;  %s7995_s14 = inlined_call_operand.<no memory space> [shape: f32[1], index: 14, kind: input, shape index: {}]   ;;  %s7996_s15 = inlined_call_operand.hbm [shape: f32[4,8,8,128], index: 15, kind: output, shape index: {}]  }
   0x1   :  { %8007 = sst [smem:[#allocation19_spill]] %s7991_s10 }
   0x2   :  { %8008 = sst [smem:[#allocation20_spill]] %s7993_s12 }
   0x3   :  { %8009 = sst [smem:[#allocation21_spill]] %s7996_s15 }
   0x4   :  { %20 = sst [smem:[#allocation3]] %s7994_s13 }
   0x5   :  { %21 = sst [smem:[#allocation4]] %s7995_s14 }
   0x6   :  { %22 = vsyncpa [#allocation6], 0 }
   0x7   :  { %24 = vsyncpa [#allocation6 + $0x1], 0 }
   0x8   :  { %25 = vsyncpa [#allocation9], 0 }
   0x9   :  { %26 = vsyncpa [#allocation7], 0 }
   0xa   :  { %28 = vsyncpa [#allocation7 + $0x1], 0  ;;  %s6741_s22 = smov 0   ;;  %s6743_s23 = smov 0  }
   0xb   :  { %s6745_s24 = smov 0   ;;  %s6747_s25 = smov 0  }
   0xc LB: > { %8010 = sst [smem:[#allocation15_spill]] %s6627_s22  ;;  %s6762_s13 = sadd.s32 4294967295, %s6639_s25   ;;  %s6639_s25 = sphi %s6747_s25, %s8058_s25   ;;  %s6635_s24 = sphi %s6745_s24, %s8057_s24   ;;  %s6631_s23 = sphi %s6743_s23, %s8056_s23   ;;  %s6627_s22 = sphi %s6741_s22, %s8055_s22  }
   0xd   : > { %s4860_s14 = sadd.s32 4294967294, %s6639_s25   ;;  %p54_p0 = scmp.ne.s32.totalorder %s6631_s23, %s6627_s22 }
   0xe   : > { %p7999_p1 = scmp.eq.s32.totalorder %s6762_s13, 0  ;;  %p378_p3 = scmp.eq.s32.totalorder %s4860_s14, 1 }
   0xf   : > { %p4861_p5 = scmp.ge.s32.totalorder %s6639_s25, 1  ;;  %p385_p7 = scmp.lt.s32.totalorder %s6639_s25, 3 }
  0x10   : > { %p6771_p4 = por %p7999_p1, %p54_p0  ;;  %p6776_p6 = por %p378_p3, %p54_p0 }
  0x11   : > { %p6781_p8 = pnand %p4861_p5, %p385_p7  ;;  %s6641_s29 = smov [#allocation8]  }
  0x12   : > { %s8011_s26 = scalar_select %p6771_p4, 1, 0 }
  0x13   : > { %s8012_s27 = scalar_select %p6776_p6, 1, 0 }
  0x14   : > { %s397_s30 = sshll.u32 %s6641_s29, 4  ;;  %p6253_p9 = pneg %p6781_p8  ;;  %s6785_s30 = int_to_ptr.vmem [resolvable:$true] %s397_s30 }
  0x15   : > { %8013 = sst [smem:[#allocation16_spill]] %s8012_s27  ;;  %s6642_s17 = smov [#allocation10]  }
  0x16   : > { %p6792_p11 = pnand %p6253_p9, %p7999_p1  ;;  %s410_s18 = sshll.u32 %s6642_s17, 4  ;;  %s6796_s18 = int_to_ptr.vmem [resolvable:$true] %s410_s18 }
  0x17   : > { %s6483_s21 = scalar_lea.hbm %s7982_s1, 9216 }
  0x18   : > { %p6484_p12 = scmp.ne.s32.totalorder %s7982_s1, %s6483_s21  ;;  %p6485_p13 = pneg %p6792_p11 }
  0x19   : > { %p6490_p5 = scmp.lt.u32.totalorder %s6483_s21, %s7982_s1 }
  0x1a   : > { %p6486_p0 = pnand %p6485_p13, %p6484_p12 }
  0x1c   : > { %p6487_p3 = pneg %p6486_p0 }
  0x1e   : > { %p6492_p7 = pnand %p6490_p5, %p6487_p3 }
  0x20   : > { %6495 = shalt.err (!%p6492_p7)
}
  0x21   : > { %s6496_s17 = scalar_lea.vmem %s6785_s30, 9216  ;;  %p6504_p2 = scmp.lt.s32.totalorder %s6785_s30, %s6785_s30 }
  0x22   : > { %p6497_p9 = scmp.ne.s32.totalorder %s6785_s30, %s6496_s17  ;;  %p6505_p12 = scmp.lt.s32.totalorder %s6496_s17, %s6496_s17 }
  0x24   : > { %p6499_p10 = pnand %p6497_p9, %p6485_p13  ;;  %p6506_p0 = por %p6505_p12, %p6504_p2 }
  0x26   : > { %p6500_p1 = pneg %p6499_p10 }
  0x28   : > { %p6507_p6 = pnand %p6506_p0, %p6500_p1 }
  0x2a   : > { %6510 = shalt.err (!%p6507_p6)
}
  0x2b   : > { %s6643_s22 = smov 64   ;;  %s6644_s27 = smov 4  }
  0x2c   : > { %6256 = dma.hbm_to_vmem [thread:$0]  (!%p6792_p11), %s7982_s1, 9216, %s6785_s30, [#allocation9], %s6643_s22, %s6643_s22, %s6644_s27  }
  0x2d   : > { %s6511_s29 = scalar_lea.hbm %s7983_s2, 9216 }
  0x2e   : > { %p6512_p2 = scmp.ne.s32.totalorder %s7983_s2, %s6511_s29  ;;  %p6518_p10 = scmp.lt.u32.totalorder %s6511_s29, %s7983_s2 }
  0x30   : > { %p6514_p1 = pnand %p6512_p2, %p6485_p13 }
  0x32   : > { %p6515_p6 = pneg %p6514_p1 }
  0x34   : > { %p6520_p3 = pnand %p6518_p10, %p6515_p6 }
  0x36   : > { %6523 = shalt.err (!%p6520_p3)
}
  0x37   : > { %s6524_s30 = scalar_lea.vmem %s6796_s18, 9216  ;;  %p6532_p12 = scmp.lt.s32.totalorder %s6796_s18, %s6796_s18 }
  0x38   : > { %p6525_p5 = scmp.ne.s32.totalorder %s6796_s18, %s6524_s30  ;;  %p6533_p0 = scmp.lt.s32.totalorder %s6524_s30, %s6524_s30 }
  0x3a   : > { %p6527_p7 = pnand %p6525_p5, %p6485_p13  ;;  %p6534_p2 = por %p6533_p0, %p6532_p12 }
  0x3c   : > { %p6528_p9 = pneg %p6527_p7 }
  0x3e   : > { %p6535_p1 = pnand %p6534_p2, %p6528_p9 }
  0x40   : > { %6538 = shalt.err (!%p6535_p1)
}
  0x41   : > { %6259 = dma.hbm_to_vmem [thread:$0]  (!%p6792_p11), %s7983_s2, 9216, %s6796_s18, [#allocation9], %s6643_s22, %s6643_s22, %s6644_s27  }
  0x42   : > { %s6851_s15 = sadd.s32 1, %s6639_s25   ;;  %s41_s16 = sadd.s32 1, %s6635_s24 }
  0x43   : > { %s38_s19 = ssub.s32 %s6639_s25, %s6851_s15  ;;  %p48_p13 = scmp.ne.s32.totalorder %s6635_s24, %s6631_s23 }
  0x44   : > { %p39_p6 = scmp.eq.s32.totalorder %s38_s19, 0  ;;  %p49_p10 = scmp.eq.s32.totalorder %s6639_s25, 0 }
  0x45   : > { %p8016_p3 = scmp.eq.s32.totalorder %s6762_s13, 1  ;;  %p6270_p7 = scmp.lt.s32.totalorder %s6639_s25, 2 }
  0x46   : > { %s6867_s21 = scalar_select %p39_p6, %s6635_s24, %s41_s16  }
  0x47   : > { %p6861_p5 = por %p8016_p3, %p48_p13  ;;  %p50_p9 = por %p49_p10, %p48_p13 }
  0x48   : > { %s460_s14 = sand.u32 1, %s6635_s24   ;;  %s5035_s18 = sshll.u32 %s6639_s25, 11 }
  0x49   : > { %s8017_s20 = scalar_select %p6861_p5, 1, 0 }
  0x4a   : > { %s4865_s29 = sshll.u32 %s460_s14, 7  ;;  %s6874_s17 = scalar_lea.hbm %s7981_s0, %s5035_s18 }
  0x4b   : > { %s464_s30 = scalar_lea.vmem [#allocation5], %s4865_s29  ;;  %p6878_p11 = pnand %p6270_p7, %p50_p9 }
  0x4c   : > { %s472_s10 = sshll.u32 %s464_s30, 4  ;;  %s6882_s16 = scalar_lea.sflag [#allocation6], %s460_s14  ;;  %s6876_s10 = int_to_ptr.vmem [resolvable:$true] %s472_s10 }
  0x4d   : > { %s6539_s19 = scalar_lea.hbm %s6874_s17, 2048  ;;  %p6541_p0 = pneg %p6878_p11 }
  0x4e   : > { %p6540_p12 = scmp.ne.s32.totalorder %s6874_s17, %s6539_s19  ;;  %s6544_s22 = scalar_lea.hbm %s7981_s0, 4096 }
  0x4f   : > { %p6545_p13 = scmp.lt.u32.totalorder %s6874_s17, %s7981_s0  ;;  %p6546_p6 = scmp.lt.u32.totalorder %s6544_s22, %s6539_s19 }
  0x50   : > { %p6542_p2 = pnand %p6541_p0, %p6540_p12  ;;  %p6548_p3 = scmp.lt.u32.totalorder %s6539_s19, %s6874_s17 }
  0x51   : > { %p6547_p10 = por %p6546_p6, %p6545_p13 }
  0x52   : > { %p6543_p1 = pneg %p6542_p2 }
  0x53   : > { %p6549_p7 = por %p6548_p3, %p6547_p10 }
  0x55   : > { %p6550_p9 = pnand %p6549_p7, %p6543_p1 }
  0x57   : > { %6553 = shalt.err (!%p6550_p9)
}
  0x58   : > { %s6554_s14 = scalar_lea.vmem %s6876_s10, 2048  ;;  %s6645_s29 = smov [#allocation5]  }
  0x59   : > { %p6555_p12 = scmp.ne.s32.totalorder %s6876_s10, %s6554_s14  ;;  %s6559_s18 = sshll.u32 %s6645_s29, 4  ;;  %s6560_s18 = int_to_ptr.vmem [resolvable:$false] %s6559_s18 }
  0x5a   : > { %s6561_s27 = scalar_lea.vmem %s6560_s18, 4096  ;;  %p6562_p4 = scmp.lt.s32.totalorder %s6876_s10, %s6560_s18 }
  0x5b   : > { %p6557_p2 = pnand %p6555_p12, %p6541_p0  ;;  %p6563_p13 = scmp.lt.s32.totalorder %s6561_s27, %s6554_s14 }
  0x5d   : > { %p6558_p5 = pneg %p6557_p2  ;;  %p6564_p6 = por %p6563_p13, %p6562_p4 }
  0x5f   : > { %p6565_p10 = pnand %p6564_p6, %p6558_p5 }
  0x61   : > { %6568 = shalt.err (!%p6565_p10)
}
  0x62   : > { %s6646_s19 = smov 128   ;;  %s6647_s22 = smov 8  }
  0x63   : > { %6263 = dma.hbm_to_vmem [thread:$0]  (!%p6878_p11), %s6874_s17, 2048, %s6876_s10, %s6882_s16, %s6646_s19, %s6646_s19, %s6647_s22  }
  0x64   : > { %484 = sbr.rel (%p6781_p8) target bundleno = 1650 (0x672), region = 80 }
  0x6b   : > { %s6913_s30 = sand.u32 1, %s6631_s23   ;;  %p8019_p4 = scmp.ne.s32.totalorder %s8011_s26, 0 }
  0x6c   : > { %s4870_s14 = sshll.u32 %s6913_s30, 7  ;;  %s487_s29 = scalar_lea.sflag [#allocation6], %s6913_s30 }
  0x6d   : > { %s6919_s18 = scalar_lea.vmem [#allocation5], %s4870_s14 }
  0x6e   : > { %6614 = dma.done.wait (%p8019_p4), %s487_s29, 2048  }
  0x6f   : > { %6616 = vsyncadd (%p8019_p4), %s487_s29, 4294965248  ;;  %p8020_p5 = scmp.eq.s32.totalorder %s6762_s13, 0 }
  0x71   : > { %6618 = dma.done.wait (%p8020_p5), [#allocation9], 18432   ;;  %p8021_p8 = pmov %p8020_p5 }
  0x72   : > { %v8003_v0 = vmov 0.0   ;;  %v6318_v1 = vld [vmem:[#allocation8 + $0x40] sm:$0xff]   ;;  %v6319_v2 = vld [vmem:[#allocation8 + $0x48] sm:$0xff]   ;;  %v6320_v3 = vld [vmem:[#allocation8 + $0x50] sm:$0xff]   ;;  %s548_s12 = sld [smem:[#allocation3]]  ;;  %s8048_s10 = sld [smem:[#allocation20_spill]] }
  0x73   : > { %6620 = vsyncadd (%p8021_p8), [#allocation9], 4294948864  ;;  %566 = vst [vmem:[#allocation2] sm:$0xff] %v8003_v0  ;;  %5345 = vmatprep.subr.bf16.mxu0 %v6318_v1  ;;  %v6321_v4 = vld [vmem:[#allocation8 + $0x58] sm:$0xff]   ;;  %v550_v5 = vld [vmem:[%s6919_s18] sm:$0xff]  ;;  %s549_s19 = sld [smem:[#allocation4]] }
  0x74   : > { %567 = vst [vmem:[#allocation2 + $0x8] sm:$0x3] %v8003_v0  ;;  %568 = vst [vmem:[#allocation2 + $0xa0] sm:$0xff] %v8003_v0  ;;  %5346 = vmatpush3.bf16.msra.mxu0 %v6318_v1  ;;  %v6981_v6 = vld [vmem:[%s7984_s3] ss:$0 sm:$0xff]  ;;  %v551_v9 = vld [vmem:[%s6919_s18 + $0x8] sm:$0xff] }
  0x75   : > { %569 = vst [vmem:[#allocation2 + $0xa8] sm:$0x3] %v8003_v0  ;;  %571 = vst [vmem:[#allocation2 + $0x90] sm:$0xff] %v8003_v0  ;;  %5347 = vmatprep.subr.bf16.mxu0 %v6319_v2  ;;  %v6986_v7 = vld [vmem:[%s7985_s4] ss:$0 sm:$0xff]  ;;  %v622_v8 = vmul.f32 %v6981_v6, %v550_v5  ;;  %v552_v10 = vld [vmem:[%s6919_s18 + $0x10] sm:$0xff]  ;;  %v623_v12 = vmul.f32 %v6981_v6, %v551_v9 }
  0x76   : > { %572 = vst [vmem:[#allocation2 + $0x98] sm:$0x3] %v8003_v0  ;;  %573 = vst [vmem:[#allocation2 + $0x130] sm:$0xff] %v8003_v0  ;;  %v624_v13 = vmul.f32 %v6981_v6, %v552_v10  ;;  %v6322_v14 = vld [vmem:[#allocation8 + $0x60] sm:$0xff]   ;;  %v553_v18 = vld [vmem:[%s6919_s18 + $0x18] sm:$0xff]  ;;  %s8047_s26 = sld [smem:[#allocation19_spill]] }
  0x77   : > { %574 = vst [vmem:[#allocation2 + $0x138] sm:$0x3] %v8003_v0  ;;  %576 = vst [vmem:[#allocation2 + $0x10] sm:$0x1] %v8003_v0  ;;  %v6994_v15 = vadd.f32 %v6986_v7, %v622_v8  ;;  %v6997_v16 = vadd.f32 %v6986_v7, %v623_v12  ;;  %v554_v19 = vld [vmem:[%s6919_s18 + $0x20] sm:$0xff]  ;;  %v555_v20 = vld [vmem:[%s6919_s18 + $0x28] sm:$0xff]  ;;  %v625_v22 = vmul.f32 %v6981_v6, %v553_v18 }
  0x78   : > { %577 = vst [vmem:[#allocation2 + $0x20] sm:$0x1] %v8003_v0  ;;  %578 = vst [vmem:[#allocation2 + $0x30] sm:$0x1] %v8003_v0  ;;  %5348 = vmatpush3.bf16.msra.mxu0 %v6319_v2  ;;  %v7000_v17 = vadd.f32 %v6986_v7, %v624_v13  ;;  %v626_v23 = vmul.f32 %v6981_v6, %v554_v19  ;;  %v556_v24 = vld [vmem:[%s6919_s18 + $0x30] sm:$0xff]  ;;  %v627_v25 = vmul.f32 %v6981_v6, %v555_v20  ;;  %v6323_v27 = vld [vmem:[#allocation8 + $0x68] sm:$0xff]  }
  0x79   : > { %579 = vst [vmem:[#allocation2 + $0x40] sm:$0x1] %v8003_v0  ;;  %580 = vst [vmem:[#allocation2 + $0x50] sm:$0x1] %v8003_v0  ;;  %5349 = vmatprep.subr.bf16.mxu0 %v6320_v3  ;;  %v628_v26 = vmul.f32 %v6981_v6, %v556_v24  ;;  %v7015_v28 = vadd.f32 %v6986_v7, %v625_v22  ;;  %v558_v31 = vld [vmem:[%s6919_s18 + $0x40] sm:$0xff]  ;;  %v559_v34 = vld [vmem:[%s6919_s18 + $0x48] sm:$0xff] }
  0x7a   : > { %581 = vst [vmem:[#allocation2 + $0x60] sm:$0x1] %v8003_v0  ;;  %582 = vst [vmem:[#allocation2 + $0x70] sm:$0x1] %v8003_v0  ;;  %v7018_v29 = vadd.f32 %v6986_v7, %v626_v23  ;;  %v7021_v30 = vadd.f32 %v6986_v7, %v627_v25  ;;  %v630_v33 = vmul.f32 %v6981_v6, %v558_v31  ;;  %v560_v35 = vld [vmem:[%s6919_s18 + $0x50] sm:$0xff]  ;;  %v561_v39 = vld [vmem:[%s6919_s18 + $0x58] sm:$0xff] }
  0x7b   : > { %583 = vst [vmem:[#allocation2 + $0x80] sm:$0x1] %v8003_v0  ;;  %586 = vst [vmem:[#allocation2 + $0xb0] sm:$0x1] %v8003_v0  ;;  %v718_v11 = vld [vmem:[#allocation2 + $0x1] sm:$0xff]  ;;  %v7025_v32 = vadd.f32 %v6986_v7, %v628_v26  ;;  %v631_v36 = vmul.f32 %v6981_v6, %v559_v34  ;;  %v632_v37 = vmul.f32 %v6981_v6, %v560_v35  ;;  %v564_v45 = vld [vmem:[%s6919_s18 + $0x70] sm:$0xff] }
  0x7c   : > { %587 = vst [vmem:[#allocation2 + $0xc0] sm:$0x1] %v8003_v0  ;;  %588 = vst [vmem:[#allocation2 + $0xd0] sm:$0x1] %v8003_v0  ;;  %5350 = vmatpush3.bf16.msra.mxu0 %v6320_v3  ;;  %v734_v21 = vpack.c.bf16 %v6994_v15, %v718_v11  ;;  %v7037_v38 = vadd.f32 %v6986_v7, %v630_v33  ;;  %v562_v42 = vld [vmem:[%s6919_s18 + $0x60] sm:$0xff]  ;;  %v633_v43 = vmul.f32 %v6981_v6, %v561_v39  ;;  %v563_v44 = vld [vmem:[%s6919_s18 + $0x68] sm:$0xff] }
  0x7d   : > { %589 = vst [vmem:[#allocation2 + $0xe0] sm:$0x1] %v8003_v0  ;;  %590 = vst [vmem:[#allocation2 + $0xf0] sm:$0x1] %v8003_v0  ;;  %5351 = vmatprep.subr.bf16.mxu0 %v6321_v4  ;;  %v7041_v40 = vadd.f32 %v6986_v7, %v631_v36  ;;  %v7044_v41 = vadd.f32 %v6986_v7, %v632_v37  ;;  %v6324_v46 = vld [vmem:[#allocation8 + $0x70] sm:$0xff]   ;;  %v634_v47 = vmul.f32 %v6981_v6, %v562_v42  ;;  %v6325_v54 = vld [vmem:[#allocation8 + $0x78] sm:$0xff]  }
  0x7e   : > { %591 = vst [vmem:[#allocation2 + $0x100] sm:$0x1] %v8003_v0  ;;  %592 = vst [vmem:[#allocation2 + $0x110] sm:$0x1] %v8003_v0  ;;  %5361 = vmatprep.mubr.bf16.mxu0 %v734_v21  ;;  %v635_v48 = vmul.f32 %v6981_v6, %v563_v44  ;;  %v636_v49 = vmul.f32 %v6981_v6, %v564_v45  ;;  %v7057_v50 = vadd.f32 %v6986_v7, %v633_v43  ;;  %v6326_v55 = vld [vmem:[#allocation8] sm:$0xff]   ;;  %v6327_v60 = vld [vmem:[#allocation8 + $0x8] sm:$0xff]  }
  0x7f   : > { %593 = vst [vmem:[#allocation2 + $0x120] sm:$0x1] %v8003_v0  ;;  %596 = vst [vmem:[#allocation2 + $0x19] sm:$0x1] %v8003_v0  ;;  %v7060_v51 = vadd.f32 %v6986_v7, %v634_v47  ;;  %v735_v56 = vpack.c.bf16 %v7000_v17, %v6997_v16  ;;  %v736_v57 = vpack.c.bf16 %v7018_v29, %v7015_v28  ;;  %v6328_v61 = vld [vmem:[#allocation8 + $0x10] sm:$0xff]   ;;  %v726_v62 = vld [vmem:[#allocation2 + $0xa1] sm:$0xff] }
  0x80   : > { %597 = vst [vmem:[#allocation2 + $0x29] sm:$0x1] %v8003_v0  ;;  %598 = vst [vmem:[#allocation2 + $0x39] sm:$0x1] %v8003_v0  ;;  %5352 = vmatpush3.bf16.msra.mxu0 %v6321_v4  ;;  %v7063_v52 = vadd.f32 %v6986_v7, %v635_v48  ;;  %v7066_v53 = vadd.f32 %v6986_v7, %v636_v49  ;;  %v737_v63 = vpack.c.bf16 %v7025_v32, %v7021_v30  ;;  %v6329_v3 = vld [vmem:[#allocation8 + $0x18] sm:$0xff]   ;;  %v6330_v4 = vld [vmem:[#allocation8 + $0x20] sm:$0xff]  }
  0x81   : > { %599 = vst [vmem:[#allocation2 + $0x49] sm:$0x1] %v8003_v0  ;;  %600 = vst [vmem:[#allocation2 + $0x59] sm:$0x1] %v8003_v0  ;;  %5353 = vmatprep.subr.bf16.mxu0 %v6322_v14  ;;  %v738_v1 = vpack.c.bf16 %v7037_v38, %v726_v62  ;;  %v739_v5 = vpack.c.bf16 %v7044_v41, %v7041_v40  ;;  %v7089_v8 = vpack.c.bf16 %v7060_v51, %v7057_v50  ;;  %v6331_v11 = vld [vmem:[#allocation8 + $0x28] sm:$0xff]   ;;  %v6332_v12 = vld [vmem:[#allocation8 + $0x30] sm:$0xff]  }
  0x82   : > { %601 = vst [vmem:[#allocation2 + $0x69] sm:$0x1] %v8003_v0  ;;  %602 = vst [vmem:[#allocation2 + $0x79] sm:$0x1] %v8003_v0  ;;  %v557_v13 = vld [vmem:[%s6919_s18 + $0x38] sm:$0xff]  ;;  %v7105_v21 = vpack.c.bf16 %v7066_v53, %v7063_v52  ;;  %v6334_v33 = vld [vmem:[#allocation8 + $0x80] sm:$0xff]  }
  0x83   : > { %603 = vst [vmem:[#allocation2 + $0x89] sm:$0x1] %v8003_v0  ;;  %606 = vst [vmem:[#allocation2 + $0xb9] sm:$0x1] %v8003_v0  ;;  %v629_v18 = vmul.f32 %v6981_v6, %v557_v13  ;;  %v565_v23 = vld [vmem:[%s6919_s18 + $0x78] sm:$0xff]  ;;  %v6336_v43 = vld [vmem:[#allocation8 + $0x90] sm:$0xff]  }
  0x84   : > { %607 = vst [vmem:[#allocation2 + $0xc9] sm:$0x1] %v8003_v0  ;;  %608 = vst [vmem:[#allocation2 + $0xd9] sm:$0x1] %v8003_v0  ;;  %5354 = vmatpush3.bf16.msra.mxu0 %v6322_v14  ;;  %v6333_v25 = vld [vmem:[#allocation8 + $0x38] sm:$0xff]   ;;  %v637_v26 = vmul.f32 %v6981_v6, %v565_v23  ;;  %v6339_v62 = vld [vmem:[#allocation8 + $0xa8] sm:$0xff]  }
  0x85   : > { %609 = vst [vmem:[#allocation2 + $0xe9] sm:$0x1] %v8003_v0  ;;  %610 = vst [vmem:[#allocation2 + $0xf9] sm:$0x1] %v8003_v0  ;;  %5355 = vmatprep.subr.bf16.mxu0 %v6323_v27  ;;  %v7101_v20 = vadd.f32 %v6986_v7, %v629_v18  ;;  %v6337_v48 = vld [vmem:[#allocation8 + $0x98] sm:$0xff]   ;;  %v6347_v10 = vld [vmem:[#allocation8 + $0xe8] sm:$0xff]  }
  0x86   : > { %611 = vst [vmem:[#allocation2 + $0x109] sm:$0x1] %v8003_v0  ;;  %612 = vst [vmem:[#allocation2 + $0x119] sm:$0x1] %v8003_v0  ;;  %v7119_v34 = vadd.f32 %v6986_v7, %v637_v26  ;;  %v6335_v7 = vld [vmem:[#allocation8 + $0x88] sm:$0xff]   ;;  %v6341_v13 = vld [vmem:[#allocation8 + $0xb8] sm:$0xff]  }
  0x87   : > { %613 = vst [vmem:[#allocation2 + $0x129] sm:$0x1] %v8003_v0  ;;  %575 = vst [vmem:[#allocation2] sm:$0x1] %v8003_v0  ;;  %v6349_v59 = vld [vmem:[#allocation8 + $0xf8] sm:$0xff]   ;;  %v6350_v58 = vld [vmem:[#allocation8 + $0x100] sm:$0xff]  }
  0x88   : > { %595 = vst [vmem:[#allocation2 + $0x9] sm:$0x1] %v8003_v0  ;;  %584 = vst [vmem:[#allocation2 + $0x90] sm:$0x1] %v8003_v0  ;;  %5356 = vmatpush3.bf16.msra.mxu0 %v6323_v27  ;;  %s8049_s27 = sld [smem:[#allocation21_spill]]  ;;  %s4754_s22 = scalar_lea.sflag [#allocation7], %s6913_s30 }
  0x89   : > { %585 = vst [vmem:[#allocation2 + $0xa0] sm:$0x1] %v8003_v0  ;;  %594 = vst [vmem:[#allocation2 + $0x130] sm:$0x1] %v8003_v0  ;;  %5357 = vmatprep.subr.bf16.mxu0 %v6324_v46  ;;  %p8050_p0 = scmp.ne.s32.totalorder %s8017_s20, 0 }
  0x8a   : > { %604 = vst [vmem:[#allocation2 + $0x99] sm:$0x1] %v8003_v0  ;;  %605 = vst [vmem:[#allocation2 + $0xa9] sm:$0x1] %v8003_v0 }
  0x8b   : > { %614 = vst [vmem:[#allocation2 + $0x139] sm:$0x1] %v8003_v0  ;;  %662 = vst [vmem:[#allocation2 + $0x11] sm:$0xff] %v6994_v15 }
  0x8c   : > { %663 = vst [vmem:[#allocation2 + $0x21] sm:$0xff] %v6997_v16  ;;  %664 = vst [vmem:[#allocation2 + $0x31] sm:$0xff] %v7000_v17  ;;  %5358 = vmatpush3.bf16.msra.mxu0 %v6324_v46 }
  0x8d   : > { %665 = vst [vmem:[#allocation2 + $0x41] sm:$0xff] %v7015_v28  ;;  %666 = vst [vmem:[#allocation2 + $0x51] sm:$0xff] %v7018_v29  ;;  %5359 = vmatprep.subr.bf16.mxu0 %v6325_v54 }
  0x8e   : > { %667 = vst [vmem:[#allocation2 + $0x61] sm:$0xff] %v7021_v30  ;;  %668 = vst [vmem:[#allocation2 + $0x71] sm:$0xff] %v7025_v32  ;;  %v678_v14 = vld [vmem:[#allocation2] sm:$0xff] }
  0x8f   : > { %670 = vst [vmem:[#allocation2 + $0xb1] sm:$0xff] %v7037_v38  ;;  %671 = vst [vmem:[#allocation2 + $0xc1] sm:$0xff] %v7041_v40 }
  0x90   : > { %672 = vst [vmem:[#allocation2 + $0xd1] sm:$0xff] %v7044_v41  ;;  %673 = vst [vmem:[#allocation2 + $0xe1] sm:$0xff] %v7057_v50  ;;  %5360 = vmatpush3.bf16.msra.mxu0 %v6325_v54  ;;  %v686_v44 = vld [vmem:[#allocation2 + $0xa0] sm:$0xff] }
  0x91   : > { %674 = vst [vmem:[#allocation2 + $0xf1] sm:$0xff] %v7060_v51  ;;  %675 = vst [vmem:[#allocation2 + $0x101] sm:$0xff] %v7063_v52  ;;  %5377 = vmatprep.subr.bf16.mxu0 %v6326_v55 }
  0x92   : > { %676 = vst [vmem:[#allocation2 + $0x111] sm:$0xff] %v7066_v53  ;;  %v7098_v19 = vld [vmem:[#allocation2 + $0x10] sm:$0xff]  ;;  %669 = vst [vmem:[#allocation2 + $0x81] sm:$0xff] %v7101_v20 }
  0x93   : > { %5362 = vmatmul.mubr.bf16.vlgmr.msra.gmra.mrb[0].mxu0 %v735_v56  ;;  %v694_v22 = vpack.c.bf16 %v7098_v19, %v678_v14  ;;  %v7113_v27 = vld [vmem:[#allocation2 + $0x20] sm:$0xff]  ;;  %v7115_v31 = vld [vmem:[#allocation2 + $0x30] sm:$0xff]  ;;  %677 = vst [vmem:[#allocation2 + $0x121] sm:$0xff] %v7119_v34 }
  0x94   : > { %5378 = vmatpush3.bf16.msra.mxu0 %v6326_v55  ;;  %5365 = vmatprep.mubr.bf16.mxu0 %v736_v57  ;;  %v7121_v35 = vld [vmem:[#allocation2 + $0x40] sm:$0xff]  ;;  %v7123_v36 = vld [vmem:[#allocation2 + $0x50] sm:$0xff]  ;;  %v7128_v6 = vpack.c.bf16 %v7115_v31, %v7113_v27 }
  0x95   : > { %5379 = vmatprep.subr.bf16.mxu0 %v6327_v60  ;;  %v7132_v37 = vpack.c.bf16 %v7123_v36, %v7121_v35  ;;  %v7134_v39 = vld [vmem:[#allocation2 + $0x60] sm:$0xff]  ;;  %v7136_v42 = vld [vmem:[#allocation2 + $0x70] sm:$0xff] }
  0x96   : > { %v7140_v45 = vld [vmem:[#allocation2 + $0xb0] sm:$0xff]  ;;  %v7144_v46 = vpack.c.bf16 %v7136_v42, %v7134_v39  ;;  %v7147_v49 = vld [vmem:[#allocation2 + $0xc0] sm:$0xff] }
  0x97   : > { %v698_v47 = vpack.c.bf16 %v7140_v45, %v686_v44  ;;  %v7149_v54 = vld [vmem:[#allocation2 + $0xd0] sm:$0xff]  ;;  %v6338_v55 = vld [vmem:[#allocation8 + $0xa0] sm:$0xff]  }
  0x98   : > { %5380 = vmatpush3.bf16.msra.mxu0 %v6327_v60  ;;  %v7152_v56 = vld [vmem:[#allocation2 + $0xe0] sm:$0xff]  ;;  %v7154_v57 = vld [vmem:[#allocation2 + $0xf0] sm:$0xff]  ;;  %v7158_v60 = vpack.c.bf16 %v7149_v54, %v7147_v49 }
  0x99   : > { %5381 = vmatprep.subr.bf16.mxu0 %v6328_v61  ;;  %v7177_v14 = vld [vmem:[#allocation2 + $0x22] sm:$0xff]  ;;  %v7179_v18 = vld [vmem:[#allocation2 + $0x32] sm:$0xff] }
  0x9a   : > { %v7182_v23 = vld [vmem:[#allocation2 + $0x42] sm:$0xff]  ;;  %v7188_v26 = vpack.c.bf16 %v7179_v18, %v7177_v14  ;;  %v7196_v44 = vld [vmem:[#allocation2 + $0x72] sm:$0xff] }
  0x9b   : > { %5366 = vmatmul.mubr.bf16.gmra.mrb[4].mxu0 %v737_v63  ;;  %v7164_v63 = vld [vmem:[#allocation2 + $0x100] sm:$0xff]  ;;  %v7214_v24 = vld [vmem:[#allocation2 + $0xf2] sm:$0xff] }
  0x9c   : > { %5382 = vmatpush3.bf16.msra.mxu0 %v6328_v61  ;;  %5369 = vmatprep.mubr.bf16.mxu0 %v738_v1  ;;  %v7162_v61 = vpack.c.bf16 %v7154_v57, %v7152_v56  ;;  %v7166_v1 = vld [vmem:[#allocation2 + $0x110] sm:$0xff]  ;;  %v7212_v0 = vld [vmem:[#allocation2 + $0xe2] sm:$0xff] }
  0x9d   : > { %5383 = vmatprep.subr.bf16.mxu0 %v6329_v3  ;;  %v7224_v9 = vld [vmem:[#allocation2 + $0x102] sm:$0xff]  ;;  %v7226_v2 = vld [vmem:[#allocation2 + $0x112] sm:$0xff] }
  0xa0   : > { %5384 = vmatpush3.bf16.msra.mxu0 %v6329_v3  ;;  %v6340_v3 = vld [vmem:[#allocation8 + $0xb0] sm:$0xff]  }
  0xa1   : > { %5385 = vmatprep.subr.bf16.mxu0 %v6330_v4 }
  0xa3   : > { %5370 = vmatmul.mubr.bf16.gmra.mrb[8].mxu0 %v739_v5  ;;  %v7170_v5 = vld [vmem:[#allocation2 + $0x12] sm:$0xff] }
  0xa4   : > { %5386 = vmatpush3.bf16.msra.mxu0 %v6330_v4  ;;  %5373 = vmatprep.mubr.bf16.mxu0 %v7089_v8  ;;  %v1049_v4 = vld [vmem:[#allocation2 + $0x2] sm:$0xff] }
  0xa5   : > { %5387 = vmatprep.subr.bf16.mxu0 %v6331_v11 }
  0xa8   : > { %5388 = vmatpush3.bf16.msra.mxu0 %v6331_v11  ;;  %v7174_v11 = vpack.c.bf16 %v7166_v1, %v7164_v63 }
  0xa9   : > { %5389 = vmatprep.subr.bf16.mxu0 %v6332_v12 }
  0xab   : > { %5374 = vmatmul.mubr.bf16.gmra.mrb[12].mxu0 %v7105_v21 }
  0xac   : > { %5390 = vmatpush3.bf16.msra.mxu0 %v6332_v12  ;;  %5393 = vmatprep.mubr.bf16.mxu0 %v694_v22  ;;  %v1065_v12 = vpack.c.bf16 %v7170_v5, %v1049_v4  ;;  %v6342_v22 = vld [vmem:[#allocation8 + $0xc0] sm:$0xff]   ;;  %v6345_v4 = vld [vmem:[#allocation8 + $0xd8] sm:$0xff]  }
  0xad   : > { %5391 = vmatprep.subr.bf16.mxu0 %v6333_v25 }
  0xb0   : > { %5392 = vmatpush3.bf16.msra.mxu0 %v6333_v25  ;;  %v7184_v25 = vld [vmem:[#allocation2 + $0x52] sm:$0xff] }
  0xb1   : > { %5409 = vmatprep.subr.bf16.mxu0 %v6334_v33 }
  0xb3   : > { %5394 = vmatmul.mubr.bf16.vlgmr.msra.gmra.mrb[0].mxu0 %v7128_v6 }
  0xb4   : > { %5410 = vmatpush3.bf16.msra.mxu0 %v6334_v33  ;;  %5397 = vmatprep.mubr.bf16.mxu0 %v7132_v37  ;;  %v7192_v33 = vpack.c.bf16 %v7184_v25, %v7182_v23 }
  0xb5   : > { %5411 = vmatprep.subr.bf16.mxu0 %v6335_v7 }
  0xb8   : > { %5412 = vmatpush3.bf16.msra.mxu0 %v6335_v7  ;;  %v6343_v7 = vld [vmem:[#allocation8 + $0xc8] sm:$0xff]  }
  0xb9   : > { %5413 = vmatprep.subr.bf16.mxu0 %v6336_v43 }
  0xbb   : > { %5398 = vmatmul.mubr.bf16.gmra.mrb[4].mxu0 %v7144_v46 }
  0xbc   : > { %5414 = vmatpush3.bf16.msra.mxu0 %v6336_v43  ;;  %5401 = vmatprep.mubr.bf16.mxu0 %v698_v47  ;;  %v7194_v43 = vld [vmem:[#allocation2 + $0x62] sm:$0xff]  ;;  %v6344_v47 = vld [vmem:[#allocation8 + $0xd0] sm:$0xff]  }
  0xbd   : > { %5415 = vmatprep.subr.bf16.mxu0 %v6337_v48 }
  0xc0   : > { %5416 = vmatpush3.bf16.msra.mxu0 %v6337_v48  ;;  %v1057_v48 = vld [vmem:[#allocation2 + $0xa2] sm:$0xff] }
  0xc1   : > { %5417 = vmatprep.subr.bf16.mxu0 %v6338_v55 }
  0xc3   : > { %5402 = vmatmul.mubr.bf16.gmra.mrb[8].mxu0 %v7158_v60 }
  0xc4   : > { %5418 = vmatpush3.bf16.msra.mxu0 %v6338_v55  ;;  %5405 = vmatprep.mubr.bf16.mxu0 %v7162_v61  ;;  %v7200_v55 = vld [vmem:[#allocation2 + $0xb2] sm:$0xff] }
  0xc5   : > { %5419 = vmatprep.subr.bf16.mxu0 %v6339_v62 }
  0xc8   : > { %5420 = vmatpush3.bf16.msra.mxu0 %v6339_v62  ;;  %v7204_v62 = vpack.c.bf16 %v7196_v44, %v7194_v43 }
  0xc9   : > { %5421 = vmatprep.subr.bf16.mxu0 %v6340_v3 }
  0xcb   : > { %5406 = vmatmul.mubr.bf16.gmra.mrb[12].mxu0 %v7174_v11 }
  0xcc   : > { %5422 = vmatpush3.bf16.msra.mxu0 %v6340_v3  ;;  %5425 = vmatprep.mubr.bf16.mxu0 %v1065_v12  ;;  %v1069_v3 = vpack.c.bf16 %v7200_v55, %v1057_v48  ;;  %v7207_v12 = vld [vmem:[#allocation2 + $0xc2] sm:$0xff]  ;;  %v7222_v48 = vpack.c.bf16 %v7214_v24, %v7212_v0 }
  0xcd   : > { %5423 = vmatprep.subr.bf16.mxu0 %v6341_v13 }
  0xce   : > { %8023 = vst [vmem:[#allocation18_spill] sm:$0xff] %v7222_v48 }
  0xd0   : > { %5424 = vmatpush3.bf16.msra.mxu0 %v6341_v13  ;;  %v7209_v13 = vld [vmem:[#allocation2 + $0xd2] sm:$0xff] }
  0xd1   : > { %5441 = vmatprep.subr.bf16.mxu0 %v6342_v22 }
  0xd3   : > { %5426 = vmatmul.mubr.bf16.vlgmr.msra.gmra.mrb[0].mxu0 %v7188_v26 }
  0xd4   : > { %5442 = vmatpush3.bf16.msra.mxu0 %v6342_v22  ;;  %5429 = vmatprep.mubr.bf16.mxu0 %v7192_v33  ;;  %v6346_v22 = vld [vmem:[#allocation8 + $0xe0] sm:$0xff]  }
  0xd5   : > { %5443 = vmatprep.subr.bf16.mxu0 %v6343_v7 }
  0xd8   : > { %5444 = vmatpush3.bf16.msra.mxu0 %v6343_v7  ;;  %v7218_v7 = vpack.c.bf16 %v7209_v13, %v7207_v12 }
  0xd9   : > { %5445 = vmatprep.subr.bf16.mxu0 %v6344_v47 }
  0xda   : > { %8022 = vst [vmem:[#allocation17_spill] sm:$0xff] %v7218_v7 }
  0xdb   : > { %5430 = vmatmul.mubr.bf16.gmra.mrb[4].mxu0 %v7204_v62 }
  0xdc   : > { %5446 = vmatpush3.bf16.msra.mxu0 %v6344_v47  ;;  %5433 = vmatprep.mubr.bf16.mxu0 %v1069_v3  ;;  %v6348_v47 = vld [vmem:[#allocation8 + $0xf0] sm:$0xff]   ;;  %v7232_v3 = vpack.c.bf16 %v7226_v2, %v7224_v9 }
  0xdd   : > { %5447 = vmatprep.subr.bf16.mxu0 %v6345_v4 }
  0xe0   : > { %5448 = vmatpush3.bf16.msra.mxu0 %v6345_v4  ;;  %v1267_v4 = vpack.c.bf16 %v7113_v27, %v7098_v19  ;;  %v7241_v19 = vld [vmem:[#allocation2 + $0x80] sm:$0xff] }
  0xe1   : > { %5449 = vmatprep.subr.bf16.mxu0 %v6346_v22  ;;  %v1270_v27 = vpack.c.bf16 %v7241_v19, %v7136_v42  ;;  %v7251_v42 = vld [vmem:[#allocation2 + $0x120] sm:$0xff] }
  0xe3   : > { %5434 = vmatmul.mubr.bf16.gmra.mrb[8].mxu0 %v7218_v7  ;;  %v6352_v7 = vld [vmem:[#allocation8 + $0x110] sm:$0xff]  }
  0xe4   : > { %5450 = vmatpush3.bf16.msra.mxu0 %v6346_v22  ;;  %5437 = vmatprep.mubr.bf16.mxu0 %v7222_v48  ;;  %v1268_v22 = vpack.c.bf16 %v7121_v35, %v7115_v31  ;;  %v1269_v48 = vpack.c.bf16 %v7134_v39, %v7123_v36  ;;  %v1271_v31 = vpack.c.bf16 %v7147_v49, %v7140_v45  ;;  %v6354_v35 = vld [vmem:[#allocation8 + $0x120] sm:$0xff]   ;;  %v6355_v39 = vld [vmem:[#allocation8 + $0x128] sm:$0xff]   ;;  %v6356_v45 = vld [vmem:[#allocation8 + $0x130] sm:$0xff]  }
  0xe5   : > { %5451 = vmatprep.subr.bf16.mxu0 %v6347_v10  ;;  %v1273_v36 = vpack.c.bf16 %v7164_v63, %v7154_v57  ;;  %v1274_v49 = vpack.c.bf16 %v7251_v42, %v7166_v1  ;;  %v6359_v57 = vld [vmem:[#allocation8 + $0x148] sm:$0xff]   ;;  %v8025_v63 = vpack.c.bf16 %v7015_v28, %v7000_v17  ;;  %v8026_v1 = vpack.c.bf16 %v7021_v30, %v7018_v29  ;;  %v6362_v17 = vld [vmem:[#allocation8 + $0x160] sm:$0xff]  }
  0xe6   : > { %v6363_v28 = vld [vmem:[#allocation8 + $0x168] sm:$0xff]   ;;  %v8028_v29 = vpack.c.bf16 %v7057_v50, %v7044_v41  ;;  %v8029_v30 = vpack.c.bf16 %v7063_v52, %v7060_v51  ;;  %v6366_v50 = vld [vmem:[#allocation8 + $0x180] sm:$0xff]   ;;  %v1672_v51 = vpack.c.bf16 %v7182_v23, %v7179_v18  ;;  %v6392_v52 = vld [vmem:[#allocation10 + $0x50] sm:$0xff]   ;;  %v1675_v23 = vpack.c.bf16 %v7207_v12, %v7200_v55 }
  0xe7   : > { %v6391_v41 = vld [vmem:[#allocation10 + $0x48] sm:$0xff]   ;;  %v6372_v12 = vld [vmem:[#allocation8 + $0x1b0] sm:$0xff]  }
  0xe8   : > { %5452 = vmatpush3.bf16.msra.mxu0 %v6347_v10  ;;  %v6351_v10 = vld [vmem:[#allocation8 + $0x108] sm:$0xff]  }
  0xe9   : > { %5453 = vmatprep.subr.bf16.mxu0 %v6348_v47  ;;  %v7293_v55 = vld [vmem:[#allocation2 + $0x122] sm:$0xff] }
  0xeb   : > { %5438 = vmatmul.mubr.bf16.gmra.mrb[12].mxu0 %v7232_v3 }
  0xec   : > { %5454 = vmatpush3.bf16.msra.mxu0 %v6348_v47  ;;  %5457 = vmatprep.mubr.bf16.mxu0 %v1267_v4  ;;  %v8027_v47 = vpack.c.bf16 %v7041_v40, %v7037_v38  ;;  %v1476_v38 = vpack.c.bf16 %v7119_v34, %v7066_v53  ;;  %v1671_v40 = vpack.c.bf16 %v7177_v14, %v7170_v5  ;;  %v6390_v4 = vld [vmem:[#allocation10 + $0x40] sm:$0xff]   ;;  %v6367_v5 = vld [vmem:[#allocation8 + $0x188] sm:$0xff]  }
  0xed   : > { %5455 = vmatprep.subr.bf16.mxu0 %v6349_v59  ;;  %5633 = vmatprep.subr.bf16.mxu1 %v6390_v4  ;;  %v1673_v53 = vpack.c.bf16 %v7194_v43, %v7184_v25  ;;  %v7283_v14 = vld [vmem:[#allocation2 + $0x82] sm:$0xff]  ;;  %v6369_v25 = vld [vmem:[#allocation8 + $0x198] sm:$0xff]  }
  0xee   : > { %5634 = vmatpush3.bf16.msra.mxu1 %v6390_v4  ;;  %v1674_v18 = vpack.c.bf16 %v7283_v14, %v7196_v44  ;;  %v6370_v43 = vld [vmem:[#allocation8 + $0x1a0] sm:$0xff]   ;;  %v6371_v44 = vld [vmem:[#allocation8 + $0x1a8] sm:$0xff]  }
  0xef   : > { %5635 = vmatprep.subr.bf16.mxu1 %v6391_v41  ;;  %v8030_v4 = vld [vmem:[#allocation17_spill] sm:$0xff] }
  0xf0   : > { %5456 = vmatpush3.bf16.msra.mxu0 %v6349_v59  ;;  %v6353_v59 = vld [vmem:[#allocation8 + $0x118] sm:$0xff]  }
  0xf1   : > { %5473 = vmatprep.subr.bf16.mxu0 %v6350_v58 }
  0xf2   : > { %5636 = vmatpush3.bf16.msra.mxu1 %v6391_v41  ;;  %v2277_v41 = vld [vmem:[#allocation2 + $0x132] sm:$0xff] }
  0xf3   : > { %5458 = vmatmul.mubr.bf16.vlgmr.msra.gmra.mrb[0].mxu0 %v1268_v22  ;;  %5637 = vmatprep.subr.bf16.mxu1 %v6392_v52  ;;  %v6368_v22 = vld [vmem:[#allocation8 + $0x190] sm:$0xff]  }
  0xf4   : > { %5474 = vmatpush3.bf16.msra.mxu0 %v6350_v58  ;;  %5461 = vmatprep.mubr.bf16.mxu0 %v1269_v48  ;;  %v1272_v58 = vpack.c.bf16 %v7152_v56, %v7149_v54  ;;  %v8024_v54 = vpack.c.bf16 %v6997_v16, %v6994_v15  ;;  %v6358_v56 = vld [vmem:[#allocation8 + $0x140] sm:$0xff]   ;;  %v6360_v48 = vld [vmem:[#allocation8 + $0x150] sm:$0xff]   ;;  %v1472_v15 = vpack.c.bf16 %v7101_v20, %v7025_v32  ;;  %v6361_v16 = vld [vmem:[#allocation8 + $0x158] sm:$0xff]  }
  0xf5   : > { %5475 = vmatprep.subr.bf16.mxu0 %v6351_v10  ;;  %v6364_v32 = vld [vmem:[#allocation8 + $0x170] sm:$0xff]   ;;  %v6365_v20 = vld [vmem:[#allocation8 + $0x178] sm:$0xff]  }
  0xf6   : > { %5638 = vmatpush3.bf16.msra.mxu1 %v6392_v52  ;;  %v6397_v52 = vld [vmem:[#allocation10 + $0x78] sm:$0xff]  }
  0xf8   : > { %5476 = vmatpush3.bf16.msra.mxu0 %v6351_v10  ;;  %v1676_v10 = vpack.c.bf16 %v7212_v0, %v7209_v13  ;;  %v6374_v0 = vld [vmem:[#allocation8 + $0x1c0] sm:$0xff]  }
  0xf9   : > { %5477 = vmatprep.subr.bf16.mxu0 %v6352_v7 }
  0xfb   : > { %5462 = vmatmul.mubr.bf16.gmra.mrb[4].mxu0 %v1270_v27  ;;  %v1677_v27 = vpack.c.bf16 %v7224_v9, %v7214_v24  ;;  %v6375_v9 = vld [vmem:[#allocation8 + $0x1c8] sm:$0xff]   ;;  %v1865_v24 = vld [vmem:[#allocation2 + $0x90] sm:$0xff] }
  0xfc   : > { %5478 = vmatpush3.bf16.msra.mxu0 %v6352_v7  ;;  %5465 = vmatprep.mubr.bf16.mxu0 %v1271_v31  ;;  %v6357_v7 = vld [vmem:[#allocation8 + $0x138] sm:$0xff]   ;;  %v1678_v31 = vpack.c.bf16 %v7293_v55, %v7226_v2  ;;  %v6376_v2 = vld [vmem:[#allocation8 + $0x1d0] sm:$0xff]   ;;  %v1877_v13 = vpack.c.bf16 %v1865_v24, %v7241_v19  ;;  %v2615_v24 = vld [vmem:[#allocation2 + $0x1] sm:$0xff] }
  0xfd   : > { %5479 = vmatprep.subr.bf16.mxu0 %v6353_v59  ;;  %v6380_v19 = vld [vmem:[#allocation8 + $0x1f0] sm:$0xff]  }
 0x100   : > { %5480 = vmatpush3.bf16.msra.mxu0 %v6353_v59  ;;  %v6373_v59 = vld [vmem:[#allocation8 + $0x1b8] sm:$0xff]  }
 0x101   : > { %5481 = vmatprep.subr.bf16.mxu0 %v6354_v35 }
 0x103   : > { %5466 = vmatmul.mubr.bf16.gmra.mrb[8].mxu0 %v1272_v58  ;;  %v2060_v58 = vld [vmem:[#allocation2 + $0x21] sm:$0xff] }
 0x104   : > { %5482 = vmatpush3.bf16.msra.mxu0 %v6354_v35  ;;  %5469 = vmatprep.mubr.bf16.mxu0 %v1273_v36  ;;  %v6377_v35 = vld [vmem:[#allocation8 + $0x1d8] sm:$0xff]  }
 0x105   : > { %5483 = vmatprep.subr.bf16.mxu0 %v6355_v39  ;;  %v2061_v36 = vld [vmem:[#allocation2 + $0x31] sm:$0xff] }
 0x108   : > { %5484 = vmatpush3.bf16.msra.mxu0 %v6355_v39 }
 0x109   : > { %5485 = vmatprep.subr.bf16.mxu0 %v6356_v45 }
 0x10b   : > { %5470 = vmatmul.mubr.bf16.gmra.mrb[12].mxu0 %v1274_v49  ;;  %v2062_v49 = vld [vmem:[#allocation2 + $0x41] sm:$0xff] }
 0x10c   : > { %5486 = vmatpush3.bf16.msra.mxu0 %v6356_v45  ;;  %5489 = vmatprep.mubr.bf16.mxu0 %v8024_v54  ;;  %v2076_v45 = vpack.c.bf16 %v2061_v36, %v2060_v58  ;;  %v2064_v54 = vld [vmem:[#allocation2 + $0x61] sm:$0xff] }
 0x10d   : > { %5487 = vmatprep.subr.bf16.mxu0 %v6357_v7 }
 0x110   : > { %5488 = vmatpush3.bf16.msra.mxu0 %v6357_v7  ;;  %v2063_v7 = vld [vmem:[#allocation2 + $0x51] sm:$0xff] }
 0x111   : > { %5505 = vmatprep.subr.bf16.mxu0 %v6358_v56 }
 0x113   : > { %5490 = vmatmul.mubr.bf16.vlgmr.msra.gmra.mrb[0].mxu0 %v8025_v63  ;;  %v6383_v63 = vld [vmem:[#allocation8 + $0x208] sm:$0xff]  }
 0x114   : > { %5506 = vmatpush3.bf16.msra.mxu0 %v6358_v56  ;;  %5493 = vmatprep.mubr.bf16.mxu0 %v8026_v1  ;;  %v2077_v56 = vpack.c.bf16 %v2063_v7, %v2062_v49  ;;  %v6384_v1 = vld [vmem:[#allocation8 + $0x210] sm:$0xff]   ;;  %v6423_v49 = vld [vmem:[#allocation10 + $0x108] sm:$0xff]  }
 0x115   : > { %5507 = vmatprep.subr.bf16.mxu0 %v6359_v57 }
 0x118   : > { %5508 = vmatpush3.bf16.msra.mxu0 %v6359_v57 }
 0x119   : > { %5509 = vmatprep.subr.bf16.mxu0 %v6360_v48 }
 0x11b   : > { %5494 = vmatmul.mubr.bf16.gmra.mrb[4].mxu0 %v1472_v15  ;;  %v2069_v15 = vld [vmem:[#allocation2 + $0xd1] sm:$0xff] }
 0x11c   : > { %5510 = vmatpush3.bf16.msra.mxu0 %v6360_v48  ;;  %5497 = vmatprep.mubr.bf16.mxu0 %v8027_v47  ;;  %v2068_v48 = vld [vmem:[#allocation2 + $0xc1] sm:$0xff] }
 0x11d   : > { %5511 = vmatprep.subr.bf16.mxu0 %v6361_v16 }
 0x120   : > { %5512 = vmatpush3.bf16.msra.mxu0 %v6361_v16  ;;  %v6466_v16 = vld [vmem:[#allocation2 + $0x81] sm:$0xff] }
 0x121   : > { %5513 = vmatprep.subr.bf16.mxu0 %v6362_v17 }
 0x123   : > { %5498 = vmatmul.mubr.bf16.gmra.mrb[8].mxu0 %v8028_v29  ;;  %v6386_v29 = vld [vmem:[#allocation8 + $0x220] sm:$0xff]  }
 0x124   : > { %5514 = vmatpush3.bf16.msra.mxu0 %v6362_v17  ;;  %5501 = vmatprep.mubr.bf16.mxu0 %v8029_v30  ;;  %v2080_v17 = vpack.c.bf16 %v2069_v15, %v2068_v48  ;;  %v6387_v30 = vld [vmem:[#allocation8 + $0x228] sm:$0xff]  }
 0x125   : > { %5515 = vmatprep.subr.bf16.mxu0 %v6363_v28 }
 0x128   : > { %5516 = vmatpush3.bf16.msra.mxu0 %v6363_v28  ;;  %v6385_v28 = vld [vmem:[#allocation8 + $0x218] sm:$0xff]  }
 0x129   : > { %5517 = vmatprep.subr.bf16.mxu0 %v6364_v32 }
 0x12b   : > { %5502 = vmatmul.mubr.bf16.gmra.mrb[12].mxu0 %v1476_v38  ;;  %v6388_v38 = vld [vmem:[#allocation8 + $0x230] sm:$0xff]  }
 0x12c   : > { %5518 = vmatpush3.bf16.msra.mxu0 %v6364_v32  ;;  %5521 = vmatprep.mubr.bf16.mxu0 %v1671_v40  ;;  %v2075_v32 = vld [vmem:[#allocation2 + $0x131] sm:$0xff] }
 0x12d   : > { %5519 = vmatprep.subr.bf16.mxu0 %v6365_v20  ;;  %v2083_v40 = vpack.c.bf16 %v2075_v32, %v7119_v34  ;;  %v8031_v34 = vld [vmem:[#allocation18_spill] sm:$0xff] }
 0x130   : > { %5520 = vmatpush3.bf16.msra.mxu0 %v6365_v20  ;;  %v6389_v20 = vld [vmem:[#allocation8 + $0x238] sm:$0xff]  }
 0x131   : > { %5537 = vmatprep.subr.bf16.mxu0 %v6366_v50 }
 0x133   : > { %5522 = vmatmul.mubr.bf16.vlgmr.msra.gmra.mrb[0].mxu0 %v1672_v51  ;;  %v6396_v51 = vld [vmem:[#allocation10 + $0x70] sm:$0xff]  }
 0x134   : > { %5538 = vmatpush3.bf16.msra.mxu0 %v6366_v50  ;;  %5525 = vmatprep.mubr.bf16.mxu0 %v1673_v53  ;;  %v2285_v50 = vpack.c.bf16 %v2277_v41, %v7293_v55  ;;  %v7319_v53 = vld [vmem:[%s7986_s5] ss:$0 sm:$0xff] }
 0x135   : > { %5539 = vmatprep.subr.bf16.mxu0 %v6367_v5 }
 0x138   : > { %5540 = vmatpush3.bf16.msra.mxu0 %v6367_v5 }
 0x139   : > { %5541 = vmatprep.subr.bf16.mxu0 %v6368_v22 }
 0x13b   : > { %5526 = vmatmul.mubr.bf16.gmra.mrb[4].mxu0 %v1674_v18 }
 0x13c   : > { %5542 = vmatpush3.bf16.msra.mxu0 %v6368_v22  ;;  %5529 = vmatprep.mubr.bf16.mxu0 %v1675_v23  ;;  %v7327_v23 = vstv %s548_s12  ;;  %s7875_s12 = scalar_lea.vmem [#allocation11], %s4870_s14 }
 0x13d   : > { %5543 = vmatprep.subr.bf16.mxu0 %v6369_v25  ;;  %s4768_s16 = sshll.u32 %s7875_s12, 4  ;;  %s7915_s16 = int_to_ptr.vmem [resolvable:$true] %s4768_s16 }
 0x13e   : > { %s6569_s29 = scalar_lea.vmem %s7915_s16, 2048 }
 0x13f   : > { %p6570_p11 = scmp.ne.s32.totalorder %s7915_s16, %s6569_s29 }
 0x140   : > { %5544 = vmatpush3.bf16.msra.mxu0 %v6369_v25 }
 0x141   : > { %5545 = vmatprep.subr.bf16.mxu0 %v6370_v43  ;;  %p6571_p1 = pnand %p6570_p11, %p8050_p0 }
 0x143   : > { %5530 = vmatmul.mubr.bf16.gmra.mrb[8].mxu0 %v1676_v10  ;;  %p6572_p3 = pneg %p6571_p1 }
 0x144   : > { %5546 = vmatpush3.bf16.msra.mxu0 %v6370_v43  ;;  %5533 = vmatprep.mubr.bf16.mxu0 %v1677_v27 }
 0x145   : > { %5547 = vmatprep.subr.bf16.mxu0 %v6371_v44 }
 0x148   : > { %5548 = vmatpush3.bf16.msra.mxu0 %v6371_v44 }
 0x149   : > { %5549 = vmatprep.subr.bf16.mxu0 %v6372_v12 }
 0x14b   : > { %5534 = vmatmul.mubr.bf16.gmra.mrb[12].mxu0 %v1678_v31 }
 0x14c   : > { %5550 = vmatpush3.bf16.msra.mxu0 %v6372_v12  ;;  %5553 = vmatprep.mubr.bf16.mxu0 %v7128_v6  ;;  %v6378_v6 = vld [vmem:[#allocation8 + $0x1e0] sm:$0xff]  }
 0x14d   : > { %5551 = vmatprep.subr.bf16.mxu0 %v6373_v59 }
 0x150   : > { %5552 = vmatpush3.bf16.msra.mxu0 %v6373_v59 }
 0x151   : > { %5569 = vmatprep.subr.bf16.mxu0 %v6374_v0 }
 0x153   : > { %5554 = vmatmul.mubr.bf16.vlgmr.msra.gmra.mrb[0].mxu0 %v7132_v37  ;;  %v6379_v37 = vld [vmem:[#allocation8 + $0x1e8] sm:$0xff]  }
 0x154   : > { %5570 = vmatpush3.bf16.msra.mxu0 %v6374_v0  ;;  %5557 = vmatprep.mubr.bf16.mxu0 %v7144_v46  ;;  %v1873_v46 = vld [vmem:[#allocation2 + $0x130] sm:$0xff] }
 0x155   : > { %5571 = vmatprep.subr.bf16.mxu0 %v6375_v9  ;;  %v1881_v39 = vpack.c.bf16 %v1873_v46, %v7251_v42  ;;  %v2067_v42 = vld [vmem:[#allocation2 + $0x91] sm:$0xff] }
 0x156   : > { %v2079_v47 = vpack.c.bf16 %v2067_v42, %v6466_v16 }
 0x158   : > { %5572 = vmatpush3.bf16.msra.mxu0 %v6375_v9 }
 0x159   : > { %5573 = vmatprep.subr.bf16.mxu0 %v6376_v2 }
 0x15b   : > { %5558 = vmatmul.mubr.bf16.gmra.mrb[4].mxu0 %v1877_v13 }
 0x15c   : > { %5574 = vmatpush3.bf16.msra.mxu0 %v6376_v2  ;;  %5561 = vmatprep.mubr.bf16.mxu0 %v7158_v60  ;;  %v6381_v60 = vld [vmem:[#allocation8 + $0x1f8] sm:$0xff]  }
 0x15d   : > { %5575 = vmatprep.subr.bf16.mxu0 %v6377_v35 }
 0x160   : > { %5576 = vmatpush3.bf16.msra.mxu0 %v6377_v35 }
 0x161   : > { %5577 = vmatprep.subr.bf16.mxu0 %v6378_v6 }
 0x163   : > { %5562 = vmatmul.mubr.bf16.gmra.mrb[8].mxu0 %v7162_v61  ;;  %v6382_v61 = vld [vmem:[#allocation8 + $0x200] sm:$0xff]  }
 0x164   : > { %5578 = vmatpush3.bf16.msra.mxu0 %v6378_v6  ;;  %5565 = vmatprep.mubr.bf16.mxu0 %v7174_v11  ;;  %v2065_v11 = vld [vmem:[#allocation2 + $0x71] sm:$0xff] }
 0x165   : > { %5579 = vmatprep.subr.bf16.mxu0 %v6379_v37  ;;  %v2078_v57 = vpack.c.bf16 %v2065_v11, %v2064_v54 }
 0x168   : > { %5580 = vmatpush3.bf16.msra.mxu0 %v6379_v37 }
 0x169   : > { %5581 = vmatprep.subr.bf16.mxu0 %v6380_v19 }
 0x16b   : > { %5566 = vmatmul.mubr.bf16.gmra.mrb[12].mxu0 %v1881_v39 }
 0x16c   : > { %5582 = vmatpush3.bf16.msra.mxu0 %v6380_v19  ;;  %5585 = vmatprep.mubr.bf16.mxu0 %v2076_v45 }
 0x16d   : > { %5583 = vmatprep.subr.bf16.mxu0 %v6381_v60 }
 0x170   : > { %5584 = vmatpush3.bf16.msra.mxu0 %v6381_v60 }
 0x171   : > { %5601 = vmatprep.subr.bf16.mxu0 %v6382_v61 }
 0x173   : > { %5586 = vmatmul.mubr.bf16.vlgmr.msra.gmra.mrb[0].mxu0 %v2077_v56  ;;  %v6399_v56 = vld [vmem:[#allocation10 + $0x8] sm:$0xff]  }
 0x174   : > { %5602 = vmatpush3.bf16.msra.mxu0 %v6382_v61  ;;  %5589 = vmatprep.mubr.bf16.mxu0 %v2078_v57 }
 0x175   : > { %5603 = vmatprep.subr.bf16.mxu0 %v6383_v63 }
 0x178   : > { %5604 = vmatpush3.bf16.msra.mxu0 %v6383_v63 }
 0x179   : > { %5605 = vmatprep.subr.bf16.mxu0 %v6384_v1 }
 0x17b   : > { %5590 = vmatmul.mubr.bf16.gmra.mrb[4].mxu0 %v2079_v47 }
 0x17c   : > { %5606 = vmatpush3.bf16.msra.mxu0 %v6384_v1  ;;  %5593 = vmatprep.mubr.bf16.mxu0 %v2080_v17 }
 0x17d   : > { %5607 = vmatprep.subr.bf16.mxu0 %v6385_v28 }
 0x180   : > { %5608 = vmatpush3.bf16.msra.mxu0 %v6385_v28  ;;  %v6400_v28 = vld [vmem:[#allocation10 + $0x10] sm:$0xff]  }
 0x181   : > { %5609 = vmatprep.subr.bf16.mxu0 %v6386_v29 }
 0x183   : > { %5594 = vmatmul.mubr.bf16.gmra.mrb[8].mxu0 %v7089_v8  ;;  %v2269_v8 = vld [vmem:[#allocation2 + $0x92] sm:$0xff] }
 0x184   : > { %5610 = vmatpush3.bf16.msra.mxu0 %v6386_v29  ;;  %5597 = vmatprep.mubr.bf16.mxu0 %v7105_v21  ;;  %v2281_v21 = vpack.c.bf16 %v2269_v8, %v7283_v14  ;;  %v7324_v14 = vld [vmem:[%s7987_s6] ss:$0 sm:$0xff] }
 0x185   : > { %5611 = vmatprep.subr.bf16.mxu0 %v6387_v30 }
 0x188   : > { %5612 = vmatpush3.bf16.msra.mxu0 %v6387_v30 }
 0x189   : > { %5613 = vmatprep.subr.bf16.mxu0 %v6388_v38 }
 0x18b   : > { %5598 = vmatmul.mubr.bf16.gmra.mrb[12].mxu0 %v2083_v40 }
 0x18c   : > { %5614 = vmatpush3.bf16.msra.mxu0 %v6388_v38  ;;  %5617 = vmatprep.mubr.bf16.mxu0 %v7188_v26  ;;  %v6393_v26 = vld [vmem:[#allocation10 + $0x58] sm:$0xff]  }
 0x18d   : > { %5615 = vmatprep.subr.bf16.mxu0 %v6389_v20  ;;  %5639 = vmatprep.subr.bf16.mxu1 %v6393_v26 }
 0x18e   : > { %5640 = vmatpush3.bf16.msra.mxu1 %v6393_v26 }
 0x190   : > { %5616 = vmatpush3.bf16.msra.mxu0 %v6389_v20 }
 0x193   : > { %5618 = vmatmul.mubr.bf16.vlgmr.msra.gmra.mrb[0].mxu0 %v7192_v33  ;;  %v6394_v33 = vld [vmem:[#allocation10 + $0x60] sm:$0xff]  }
 0x194   : > { %5621 = vmatprep.mubr.bf16.mxu0 %v7204_v62  ;;  %5641 = vmatprep.subr.bf16.mxu1 %v6394_v33  ;;  %v6395_v62 = vld [vmem:[#allocation10 + $0x68] sm:$0xff]  }
 0x195   : > { %5642 = vmatpush3.bf16.msra.mxu1 %v6394_v33 }
 0x196   : > { %5643 = vmatprep.subr.bf16.mxu1 %v6395_v62 }
 0x199   : > { %5644 = vmatpush3.bf16.msra.mxu1 %v6395_v62  ;;  %v6401_v62 = vld [vmem:[#allocation10 + $0x18] sm:$0xff]  }
 0x19a   : > { %5645 = vmatprep.subr.bf16.mxu1 %v6396_v51 }
 0x19b   : > { %5622 = vmatmul.mubr.bf16.gmra.mrb[4].mxu0 %v2281_v21 }
 0x19c   : > { %5625 = vmatprep.mubr.bf16.mxu0 %v8030_v4 }
 0x19d   : > { %5646 = vmatpush3.bf16.msra.mxu1 %v6396_v51 }
 0x19e   : > { %5647 = vmatprep.subr.bf16.mxu1 %v6397_v52 }
 0x1a1   : > { %5648 = vmatpush3.bf16.msra.mxu1 %v6397_v52 }
 0x1a3   : > { %5626 = vmatmul.mubr.bf16.gmra.mrb[8].mxu0 %v8031_v34 }
 0x1a4   : > { %5629 = vmatprep.mubr.bf16.mxu0 %v7232_v3  ;;  %v6398_v3 = vld [vmem:[#allocation10] sm:$0xff]  }
 0x1a5   : > { %5665 = vmatprep.subr.bf16.mxu1 %v6398_v3 }
 0x1ab   : > { %5630 = vmatmul.mubr.bf16.gmra.mrb[12].mxu0 %v2285_v50 }
 0x266   : > { %v5619_v5 = vpop.f32.mrb[0].mxu0 }
 0x267   : > { %v2473_v22 = vmul.f32 %v5619_v5, %v7319_v53  ;;  %v2385_v18 = vpop.f32.mrb[1].mxu0 }
 0x268   : > { %v2471_v25 = vmul.f32 %v7319_v53, %v2385_v18  ;;  %v5620_v43 = vpop.f32.mrb[2].mxu0 }
 0x269   : > { %v2496_v10 = vadd.f32 %v7324_v14, %v2473_v22  ;;  %v2474_v27 = vmul.f32 %v5620_v43, %v7319_v53  ;;  %v2388_v44 = vpop.f32.mrb[3].mxu0  ;;  %v2623_v43 = vld [vmem:[#allocation2 + $0xa1] sm:$0xff] }
 0x26a   : > { %v2494_v55 = vadd.f32 %v7324_v14, %v2471_v25  ;;  %v2472_v12 = vmul.f32 %v7319_v53, %v2388_v44 }
 0x26b   : > { %vm2512_vm0 = vcmp.ge.f32.partialorder %v2496_v10, 0.0  ;;  %v2529_v31 = vmul.f32 %v7327_v23, %v2496_v10  ;;  %v2497_v59 = vadd.f32 %v7324_v14, %v2474_v27 }
 0x26c   : > { %vm2510_vm1 = vcmp.ge.f32.partialorder %v2494_v55, 0.0  ;;  %v2527_v0 = vmul.f32 %v7327_v23, %v2494_v55  ;;  %v2495_v9 = vadd.f32 %v7324_v14, %v2472_v12 }
 0x26d   : > { %v7338_v2 = vsel %vm2512_vm0, %v2496_v10, %v2529_v31  ;;  %vm2513_vm2 = vcmp.ge.f32.partialorder %v2497_v59, 0.0  ;;  %v2530_v13 = vmul.f32 %v7327_v23, %v2497_v59  ;;  %vm6650_vm0 = vmmov 0  }
 0x26e   : > { %2561 = vst [vmem:[#allocation2 + $0x31] sm:$0xff] %v7338_v2  ;;  %v7342_v35 = vsel %vm2510_vm1, %v2494_v55, %v2527_v0  ;;  %vm2511_vm3 = vcmp.ge.f32.partialorder %v2495_v9, 0.0  ;;  %v2528_v6 = vmul.f32 %v7327_v23, %v2495_v9  ;;  %v5623_v37 = vpop.f32.mrb[4].mxu0  ;;  %v6402_v55 = vld [vmem:[#allocation10 + $0x20] sm:$0xff]   ;;  %vm4459_vm1 = vcmask 1041409  }
 0x26f   : > { %2559 = vst [vmem:[#allocation2 + $0x11] sm:$0xff] %v7342_v35  ;;  %v7346_v46 = vsel %vm2513_vm2, %v2497_v59, %v2530_v13  ;;  %v2477_v19 = vmul.f32 %v5623_v37, %v7319_v53  ;;  %v2401_v58 = vpop.f32.mrb[5].mxu0  ;;  %v2631_v36 = vpack.c.bf16 %v7342_v35, %v2615_v24  ;;  %v6415_v24 = vld [vmem:[#allocation10 + $0xc8] sm:$0xff]  }
 0x270   : > { %2562 = vst [vmem:[#allocation2 + $0x41] sm:$0xff] %v7346_v46  ;;  %v7351_v39 = vsel %vm2511_vm3, %v2495_v9, %v2528_v6  ;;  %v2475_v45 = vmul.f32 %v7319_v53, %v2401_v58  ;;  %v5624_v60 = vpop.f32.mrb[6].mxu0  ;;  %vm4544_vm3 = vcmask 64512  }
 0x271   : > { %2560 = vst [vmem:[#allocation2 + $0x21] sm:$0xff] %v7351_v39  ;;  %v2500_v7 = vadd.f32 %v7324_v14, %v2477_v19  ;;  %v2478_v61 = vmul.f32 %v5624_v60, %v7319_v53  ;;  %v2404_v54 = vpop.f32.mrb[7].mxu0  ;;  %5649 = vmatprep.mubr.bf16.mxu1 %v2631_v36  ;;  %v2632_v11 = vpack.c.bf16 %v7338_v2, %v7351_v39 }
 0x272   : > { %v2498_v63 = vadd.f32 %v7324_v14, %v2475_v45  ;;  %v2476_v42 = vmul.f32 %v7319_v53, %v2404_v54 }
 0x273   : > { %vm2516_vm4 = vcmp.ge.f32.partialorder %v2500_v7, 0.0  ;;  %v2533_v1 = vmul.f32 %v7327_v23, %v2500_v7  ;;  %v2501_v48 = vadd.f32 %v7324_v14, %v2478_v61  ;;  %5650 = vmatmul.mubr.bf16.vlgmr.msra.gmra.mrb[0].mxu1 %v2632_v11  ;;  %v6403_v11 = vld [vmem:[#allocation10 + $0x28] sm:$0xff]  }
 0x274   : > { %vm2514_vm5 = vcmp.ge.f32.partialorder %v2498_v63, 0.0  ;;  %v2531_v15 = vmul.f32 %v7327_v23, %v2498_v63  ;;  %v2499_v16 = vadd.f32 %v7324_v14, %v2476_v42  ;;  %5666 = vmatpush3.bf16.msra.mxu1 %v6398_v3 }
 0x275   : > { %v7369_v47 = vsel %vm2516_vm4, %v2500_v7, %v2533_v1  ;;  %vm2517_vm6 = vcmp.ge.f32.partialorder %v2501_v48, 0.0  ;;  %v2534_v17 = vmul.f32 %v7327_v23, %v2501_v48  ;;  %5667 = vmatprep.subr.bf16.mxu1 %v6399_v56 }
 0x276   : > { %2565 = vst [vmem:[#allocation2 + $0x71] sm:$0xff] %v7369_v47  ;;  %v7373_v29 = vsel %vm2514_vm5, %v2498_v63, %v2531_v15  ;;  %vm2515_vm7 = vcmp.ge.f32.partialorder %v2499_v16, 0.0  ;;  %v2532_v30 = vmul.f32 %v7327_v23, %v2499_v16  ;;  %v5627_v32 = vpop.f32.mrb[8].mxu0  ;;  %v7404_v12 = vld [vmem:[#allocation2 + $0x12] sm:$0xff] }
 0x277   : > { %2563 = vst [vmem:[#allocation2 + $0x51] sm:$0xff] %v7373_v29  ;;  %v7377_v38 = vsel %vm2517_vm6, %v2501_v48, %v2534_v17  ;;  %v2481_v40 = vmul.f32 %v5627_v32, %v7319_v53  ;;  %v2417_v20 = vpop.f32.mrb[9].mxu0  ;;  %v2633_v8 = vpack.c.bf16 %v7373_v29, %v7346_v46  ;;  %v7432_v48 = vld [vmem:[#allocation2 + $0x42] sm:$0xff]  ;;  %v7441_v32 = vld [vmem:[#allocation2 + $0x32] sm:$0xff] }
 0x278   : > { %2566 = vst [vmem:[#allocation2 + $0x81] sm:$0xff] %v7377_v38  ;;  %v7383_v21 = vsel %vm2515_vm7, %v2499_v16, %v2532_v30  ;;  %v2479_v4 = vmul.f32 %v7319_v53, %v2417_v20  ;;  %v5628_v34 = vpop.f32.mrb[10].mxu0  ;;  %5668 = vmatpush3.bf16.msra.mxu1 %v6399_v56  ;;  %v7395_v22 = vld [vmem:[#allocation2 + $0x22] sm:$0xff]  ;;  %v6404_v30 = vld [vmem:[#allocation10 + $0x30] sm:$0xff]  }
 0x279   : > { %2564 = vst [vmem:[#allocation2 + $0x61] sm:$0xff] %v7383_v21  ;;  %v2504_v41 = vadd.f32 %v7324_v14, %v2481_v40  ;;  %v2482_v50 = vmul.f32 %v5628_v34, %v7319_v53  ;;  %v2420_v26 = vpop.f32.mrb[11].mxu0  ;;  %5653 = vmatprep.mubr.bf16.mxu1 %v2633_v8  ;;  %v2634_v33 = vpack.c.bf16 %v7369_v47, %v7383_v21  ;;  %v6419_v17 = vld [vmem:[#allocation10 + $0xe8] sm:$0xff]  }
 0x27a   : > { %5669 = vmatprep.subr.bf16.mxu1 %v6400_v28  ;;  %v2502_v51 = vadd.f32 %v7324_v14, %v2479_v4  ;;  %v2480_v52 = vmul.f32 %v7319_v53, %v2420_v26  ;;  %v7458_v26 = vld [vmem:[#allocation2 + $0x10] sm:$0xff] }
 0x27b   : > { %vm2520_vm8 = vcmp.ge.f32.partialorder %v2504_v41, 0.0  ;;  %v2537_v3 = vmul.f32 %v7327_v23, %v2504_v41  ;;  %v2505_v5 = vadd.f32 %v7324_v14, %v2482_v50  ;;  %5654 = vmatmul.mubr.bf16.gmra.mrb[4].mxu1 %v2634_v33  ;;  %v2575_v50 = vld [vmem:[#allocation2] sm:$0xff] }
 0x27c   : > { %vm2518_vm9 = vcmp.ge.f32.partialorder %v2502_v51, 0.0  ;;  %v2535_v18 = vmul.f32 %v7327_v23, %v2502_v51  ;;  %v2503_v25 = vadd.f32 %v7324_v14, %v2480_v52  ;;  %5670 = vmatpush3.bf16.msra.mxu1 %v6400_v28 }
 0x27d   : > { %v7401_v27 = vsel %vm2520_vm8, %v2504_v41, %v2537_v3  ;;  %vm2521_vm10 = vcmp.ge.f32.partialorder %v2505_v5, 0.0  ;;  %v2538_v44 = vmul.f32 %v7327_v23, %v2505_v5  ;;  %5671 = vmatprep.subr.bf16.mxu1 %v6401_v62 }
 0x27e   : > { %2569 = vst [vmem:[#allocation2 + $0xd1] sm:$0xff] %v7401_v27  ;;  %v7409_v59 = vsel %vm2518_vm9, %v2502_v51, %v2535_v18  ;;  %vm2519_vm11 = vcmp.ge.f32.partialorder %v2503_v25, 0.0  ;;  %v2536_v0 = vmul.f32 %v7327_v23, %v2503_v25  ;;  %v5631_v9 = vpop.f32.mrb[12].mxu0  ;;  %v7460_v33 = vld [vmem:[#allocation2 + $0x52] sm:$0xff] }
 0x27f   : > { %2567 = vst [vmem:[#allocation2 + $0xb1] sm:$0xff] %v7409_v59  ;;  %v7415_v13 = vsel %vm2521_vm10, %v2505_v5, %v2538_v44  ;;  %v2485_v6 = vmul.f32 %v5631_v9, %v7319_v53  ;;  %v2433_v37 = vpop.f32.mrb[13].mxu0  ;;  %v2635_v19 = vpack.c.bf16 %v7409_v59, %v2623_v43  ;;  %v2591_v44 = vpack.c.bf16 %v7458_v26, %v2575_v50  ;;  %v6410_v50 = vld [vmem:[#allocation10 + $0xa0] sm:$0xff]   ;;  %v6413_v5 = vld [vmem:[#allocation10 + $0xb8] sm:$0xff]  }
 0x280   : > { %2570 = vst [vmem:[#allocation2 + $0xe1] sm:$0xff] %v7415_v13  ;;  %v7420_v58 = vsel %vm2519_vm11, %v2503_v25, %v2536_v0  ;;  %v2483_v36 = vmul.f32 %v7319_v53, %v2433_v37  ;;  %v5632_v45 = vpop.f32.mrb[14].mxu0  ;;  %5672 = vmatpush3.bf16.msra.mxu1 %v6401_v62  ;;  %v7443_v40 = vld [vmem:[#allocation2 + $0x62] sm:$0xff]  ;;  %v6405_v25 = vld [vmem:[#allocation10 + $0x38] sm:$0xff]   ;;  %v7557_v3 = vpack.c.bf16 %v7460_v33, %v7432_v48 }
 0x281   : > { %2568 = vst [vmem:[#allocation2 + $0xc1] sm:$0xff] %v7420_v58  ;;  %v2508_v60 = vadd.f32 %v7324_v14, %v2485_v6  ;;  %v2486_v7 = vmul.f32 %v5632_v45, %v7319_v53  ;;  %v2436_v61 = vpop.f32.mrb[15].mxu0  ;;  %5657 = vmatprep.mubr.bf16.mxu1 %v2635_v19  ;;  %v2636_v54 = vpack.c.bf16 %v7401_v27, %v7420_v58  ;;  %v6406_v37 = vld [vmem:[#allocation10 + $0x80] sm:$0xff]   ;;  %v7491_v45 = vld [vmem:[#allocation2 + $0x30] sm:$0xff]  ;;  %v6417_v0 = vld [vmem:[#allocation10 + $0xd8] sm:$0xff]  }
 0x282   : > { %5673 = vmatprep.subr.bf16.mxu1 %v6402_v55  ;;  %v2506_v56 = vadd.f32 %v7324_v14, %v2483_v36  ;;  %v2484_v63 = vmul.f32 %v7319_v53, %v2436_v61  ;;  %v7487_v19 = vld [vmem:[#allocation2 + $0x20] sm:$0xff]  ;;  %v7489_v36 = vld [vmem:[#allocation2 + $0x50] sm:$0xff] }
 0x283   : > { %vm2524_vm12 = vcmp.ge.f32.partialorder %v2508_v60, 0.0  ;;  %v2541_v42 = vmul.f32 %v7327_v23, %v2508_v60  ;;  %v2509_v1 = vadd.f32 %v7324_v14, %v2486_v7  ;;  %5658 = vmatmul.mubr.bf16.gmra.mrb[8].mxu1 %v2636_v54  ;;  %v7499_v61 = vpack.c.bf16 %v7491_v45, %v7487_v19  ;;  %v7501_v54 = vld [vmem:[#allocation2 + $0x40] sm:$0xff] }
 0x284   : > { %vm2522_vm13 = vcmp.ge.f32.partialorder %v2506_v56, 0.0  ;;  %v2539_v15 = vmul.f32 %v7327_v23, %v2506_v56  ;;  %v2507_v16 = vadd.f32 %v7324_v14, %v2484_v63  ;;  %5674 = vmatpush3.bf16.msra.mxu1 %v6402_v55  ;;  %v7507_v63 = vpack.c.bf16 %v7489_v36, %v7501_v54 }
 0x285   : > { %v7438_v28 = vsel %vm2524_vm12, %v2508_v60, %v2541_v42  ;;  %vm2525_vm14 = vcmp.ge.f32.partialorder %v2509_v1, 0.0  ;;  %v2542_v53 = vmul.f32 %v7327_v23, %v2509_v1  ;;  %5675 = vmatprep.subr.bf16.mxu1 %v6403_v11  ;;  %v7479_v55 = vld [vmem:[#allocation2 + $0xd2] sm:$0xff]  ;;  %v3164_v10 = vpack.c.bf16 %v7487_v19, %v7458_v26  ;;  %v7592_v19 = vld [vmem:[#allocation2 + $0x80] sm:$0xff] }
 0x286   : > { %2573 = vst [vmem:[#allocation2 + $0x111] sm:$0xff] %v7438_v28  ;;  %v7448_v14 = vsel %vm2522_vm13, %v2506_v56, %v2539_v15  ;;  %vm2523_vm15 = vcmp.ge.f32.partialorder %v2507_v16, 0.0  ;;  %v2540_v8 = vmul.f32 %v7327_v23, %v2507_v16  ;;  %v7476_v43 = vld [vmem:[#allocation2 + $0xb2] sm:$0xff]  ;;  %v2583_v15 = vld [vmem:[#allocation2 + $0xa0] sm:$0xff] }
 0x287   : > { %2571 = vst [vmem:[#allocation2 + $0xf1] sm:$0xff] %v7448_v14  ;;  %v7454_v34 = vsel %vm2525_vm14, %v2509_v1, %v2542_v53  ;;  %v2637_v41 = vpack.c.bf16 %v7448_v14, %v7415_v13  ;;  %v7467_v52 = vld [vmem:[#allocation2 + $0xe2] sm:$0xff]  ;;  %v6408_v42 = vld [vmem:[#allocation10 + $0x90] sm:$0xff]  }
 0x288   : > { %2574 = vst [vmem:[#allocation2 + $0x121] sm:$0xff] %v7454_v34  ;;  %v7463_v62 = vsel %vm2523_vm15, %v2507_v16, %v2540_v8  ;;  %5676 = vmatpush3.bf16.msra.mxu1 %v6403_v11  ;;  %v7465_v51 = vld [vmem:[#allocation2 + $0xc2] sm:$0xff]  ;;  %v7513_v16 = vld [vmem:[#allocation2 + $0xb0] sm:$0xff]  ;;  %v6409_v8 = vld [vmem:[#allocation10 + $0x98] sm:$0xff]  }
 0x289   : > { %2572 = vst [vmem:[#allocation2 + $0x101] sm:$0xff] %v7463_v62  ;;  %5661 = vmatprep.mubr.bf16.mxu1 %v2637_v41  ;;  %v2638_v18 = vpack.c.bf16 %v7438_v28, %v7463_v62  ;;  %5677 = vmatprep.subr.bf16.mxu1 %v6404_v30  ;;  %v6407_v11 = vld [vmem:[#allocation10 + $0x88] sm:$0xff]   ;;  %v7511_v1 = vld [vmem:[#allocation2 + $0x60] sm:$0xff]  ;;  %v7515_v53 = vld [vmem:[#allocation2 + $0x70] sm:$0xff]  ;;  %v2595_v41 = vpack.c.bf16 %v7513_v16, %v2583_v15 }
 0x28a   : > { %v6411_v15 = vld [vmem:[#allocation10 + $0xa8] sm:$0xff]   ;;  %v3166_v57 = vpack.c.bf16 %v7511_v1, %v7489_v36  ;;  %v6424_v26 = vld [vmem:[#allocation10 + $0x110] sm:$0xff]   ;;  %v6426_v36 = vld [vmem:[#allocation10 + $0x120] sm:$0xff]  }
 0x28b   : > { %5662 = vmatmul.mubr.bf16.gmra.mrb[12].mxu1 %v2638_v18  ;;  %v7523_v18 = vld [vmem:[#allocation2 + $0xc0] sm:$0xff] }
 0x28c   : > { %5678 = vmatpush3.bf16.msra.mxu1 %v6404_v30  ;;  %5681 = vmatprep.mubr.bf16.mxu1 %v2591_v44  ;;  %v7519_v30 = vpack.c.bf16 %v7515_v53, %v7511_v1  ;;  %v7527_v44 = vld [vmem:[#allocation2 + $0xd0] sm:$0xff]  ;;  %v2946_v56 = vld [vmem:[#allocation2 + $0x2] sm:$0xff] }
 0x28d   : > { %5679 = vmatprep.subr.bf16.mxu1 %v6405_v25  ;;  %v7543_v6 = vld [vmem:[#allocation2 + $0x110] sm:$0xff]  ;;  %v2962_v4 = vpack.c.bf16 %v7404_v12, %v2946_v56  ;;  %v2954_v56 = vld [vmem:[#allocation2 + $0xa2] sm:$0xff] }
 0x28e   : > { %v7493_v60 = vld [vmem:[#allocation2 + $0xf2] sm:$0xff]  ;;  %v2966_v20 = vpack.c.bf16 %v7476_v43, %v2954_v56 }
 0x28f   : > { %v7575_v31 = vpack.c.bf16 %v7493_v60, %v7467_v52  ;;  %v6421_v56 = vld [vmem:[#allocation10 + $0xf8] sm:$0xff]   ;;  %v6428_v1 = vld [vmem:[#allocation10 + $0x130] sm:$0xff]  }
 0x290   : > { %5680 = vmatpush3.bf16.msra.mxu1 %v6405_v25  ;;  %v7495_v7 = vld [vmem:[#allocation2 + $0x102] sm:$0xff]  ;;  %v7525_v25 = vld [vmem:[#allocation2 + $0xf0] sm:$0xff] }
 0x291   : > { %5697 = vmatprep.subr.bf16.mxu1 %v6406_v37 }
 0x293   : > { %5682 = vmatmul.mubr.bf16.vlgmr.msra.gmra.mrb[0].mxu1 %v7499_v61 }
 0x294   : > { %5685 = vmatprep.mubr.bf16.mxu1 %v7507_v63  ;;  %5698 = vmatpush3.bf16.msra.mxu1 %v6406_v37  ;;  %v7531_v37 = vpack.c.bf16 %v7527_v44, %v7523_v18 }
 0x295   : > { %5699 = vmatprep.subr.bf16.mxu1 %v6407_v11 }
 0x298   : > { %5700 = vmatpush3.bf16.msra.mxu1 %v6407_v11  ;;  %v7533_v11 = vld [vmem:[#allocation2 + $0xe0] sm:$0xff] }
 0x299   : > { %5701 = vmatprep.subr.bf16.mxu1 %v6408_v42 }
 0x29b   : > { %5686 = vmatmul.mubr.bf16.gmra.mrb[4].mxu1 %v7519_v30 }
 0x29c   : > { %5689 = vmatprep.mubr.bf16.mxu1 %v2595_v41  ;;  %5702 = vmatpush3.bf16.msra.mxu1 %v6408_v42  ;;  %v7537_v42 = vpack.c.bf16 %v7525_v25, %v7533_v11  ;;  %v7541_v41 = vld [vmem:[#allocation2 + $0x100] sm:$0xff] }
 0x29d   : > { %5703 = vmatprep.subr.bf16.mxu1 %v6409_v8  ;;  %v7547_v9 = vpack.c.bf16 %v7543_v6, %v7541_v41 }
 0x2a0   : > { %5704 = vmatpush3.bf16.msra.mxu1 %v6409_v8  ;;  %v6412_v8 = vld [vmem:[#allocation10 + $0xb0] sm:$0xff]  }
 0x2a1   : > { %5705 = vmatprep.subr.bf16.mxu1 %v6410_v50 }
 0x2a3   : > { %5690 = vmatmul.mubr.bf16.gmra.mrb[8].mxu1 %v7531_v37 }
 0x2a4   : > { %5693 = vmatprep.mubr.bf16.mxu1 %v7537_v42  ;;  %5706 = vmatpush3.bf16.msra.mxu1 %v6410_v50  ;;  %v6414_v50 = vld [vmem:[#allocation10 + $0xc0] sm:$0xff]  }
 0x2a5   : > { %5707 = vmatprep.subr.bf16.mxu1 %v6411_v15 }
 0x2a8   : > { %5708 = vmatpush3.bf16.msra.mxu1 %v6411_v15  ;;  %v7553_v15 = vpack.c.bf16 %v7441_v32, %v7395_v22 }
 0x2a9   : > { %5709 = vmatprep.subr.bf16.mxu1 %v6412_v8 }
 0x2ab   : > { %5694 = vmatmul.mubr.bf16.gmra.mrb[12].mxu1 %v7547_v9 }
 0x2ac   : > { %5710 = vmatpush3.bf16.msra.mxu1 %v6412_v8  ;;  %5713 = vmatprep.mubr.bf16.mxu1 %v2962_v4  ;;  %v6416_v4 = vld [vmem:[#allocation10 + $0xd0] sm:$0xff]  }
 0x2ad   : > { %5711 = vmatprep.subr.bf16.mxu1 %v6413_v5 }
 0x2b0   : > { %5712 = vmatpush3.bf16.msra.mxu1 %v6413_v5  ;;  %v7561_v5 = vld [vmem:[#allocation2 + $0x72] sm:$0xff] }
 0x2b1   : > { %5729 = vmatprep.subr.bf16.mxu1 %v6414_v50  ;;  %v7565_v8 = vpack.c.bf16 %v7561_v5, %v7443_v40 }
 0x2b3   : > { %5714 = vmatmul.mubr.bf16.vlgmr.msra.gmra.mrb[0].mxu1 %v7553_v15 }
 0x2b4   : > { %5717 = vmatprep.mubr.bf16.mxu1 %v7557_v3  ;;  %5730 = vmatpush3.bf16.msra.mxu1 %v6414_v50  ;;  %v6418_v50 = vld [vmem:[#allocation10 + $0xe0] sm:$0xff]  }
 0x2b5   : > { %5731 = vmatprep.subr.bf16.mxu1 %v6415_v24 }
 0x2b8   : > { %5732 = vmatpush3.bf16.msra.mxu1 %v6415_v24  ;;  %v7571_v24 = vpack.c.bf16 %v7479_v55, %v7465_v51 }
 0x2b9   : > { %5733 = vmatprep.subr.bf16.mxu1 %v6416_v4 }
 0x2bb   : > { %5718 = vmatmul.mubr.bf16.gmra.mrb[4].mxu1 %v7565_v8 }
 0x2bc   : > { %5721 = vmatprep.mubr.bf16.mxu1 %v2966_v20  ;;  %5734 = vmatpush3.bf16.msra.mxu1 %v6416_v4  ;;  %v6420_v20 = vld [vmem:[#allocation10 + $0xf0] sm:$0xff]  }
 0x2bd   : > { %5735 = vmatprep.subr.bf16.mxu1 %v6417_v0  ;;  %v7579_v4 = vld [vmem:[#allocation2 + $0x112] sm:$0xff] }
 0x2c0   : > { %5736 = vmatpush3.bf16.msra.mxu1 %v6417_v0  ;;  %v7583_v0 = vpack.c.bf16 %v7579_v4, %v7495_v7 }
 0x2c1   : > { %5737 = vmatprep.subr.bf16.mxu1 %v6418_v50 }
 0x2c3   : > { %5722 = vmatmul.mubr.bf16.gmra.mrb[8].mxu1 %v7571_v24 }
 0x2c4   : > { %5725 = vmatprep.mubr.bf16.mxu1 %v7575_v31  ;;  %5738 = vmatpush3.bf16.msra.mxu1 %v6418_v50  ;;  %v6422_v50 = vld [vmem:[#allocation10 + $0x100] sm:$0xff]  }
 0x2c5   : > { %5739 = vmatprep.subr.bf16.mxu1 %v6419_v17 }
 0x2c8   : > { %5740 = vmatpush3.bf16.msra.mxu1 %v6419_v17  ;;  %v3165_v17 = vpack.c.bf16 %v7501_v54, %v7491_v45  ;;  %v3168_v45 = vpack.c.bf16 %v7523_v18, %v7513_v16  ;;  %v6427_v54 = vld [vmem:[#allocation10 + $0x128] sm:$0xff]   ;;  %v7602_v16 = vld [vmem:[#allocation2 + $0x120] sm:$0xff]  ;;  %v6429_v18 = vld [vmem:[#allocation10 + $0x138] sm:$0xff]  }
 0x2c9   : > { %5741 = vmatprep.subr.bf16.mxu1 %v6420_v20 }
 0x2cb   : > { %5726 = vmatmul.mubr.bf16.gmra.mrb[12].mxu1 %v7583_v0 }
 0x2cc   : > { %5742 = vmatpush3.bf16.msra.mxu1 %v6420_v20  ;;  %5745 = vmatprep.mubr.bf16.mxu1 %v3164_v10  ;;  %v3167_v10 = vpack.c.bf16 %v7592_v19, %v7515_v53  ;;  %v6425_v20 = vld [vmem:[#allocation10 + $0x118] sm:$0xff]   ;;  %v3171_v53 = vpack.c.bf16 %v7602_v16, %v7543_v6  ;;  %v8034_v6 = vpack.c.bf16 %v7383_v21, %v7373_v29 }
 0x2cd   : > { %5743 = vmatprep.subr.bf16.mxu1 %v6421_v56  ;;  %v8037_v29 = vpack.c.bf16 %v7415_v13, %v7401_v27  ;;  %v8038_v21 = vpack.c.bf16 %v7463_v62, %v7448_v14  ;;  %v6438_v27 = vld [vmem:[#allocation10 + $0x180] sm:$0xff]   ;;  %v6439_v13 = vld [vmem:[#allocation10 + $0x188] sm:$0xff]   ;;  %v8041_v14 = vpack.c.bf16 %v7432_v48, %v7441_v32  ;;  %v8042_v62 = vpack.c.bf16 %v7443_v40, %v7460_v33 }
 0x2ce   : > { %v8043_v48 = vpack.c.bf16 %v7465_v51, %v7476_v43  ;;  %v6442_v32 = vld [vmem:[#allocation10 + $0x1a0] sm:$0xff]   ;;  %v6443_v40 = vld [vmem:[#allocation10 + $0x1a8] sm:$0xff]   ;;  %v8044_v33 = vpack.c.bf16 %v7467_v52, %v7479_v55  ;;  %v6445_v43 = vld [vmem:[#allocation10 + $0x1b8] sm:$0xff]  }
 0x2cf   : > { %v6446_v52 = vld [vmem:[#allocation10 + $0x1c0] sm:$0xff]   ;;  %v6447_v55 = vld [vmem:[#allocation10 + $0x1c8] sm:$0xff]  }
 0x2d0   : > { %5744 = vmatpush3.bf16.msra.mxu1 %v6421_v56  ;;  %v6432_v56 = vld [vmem:[#allocation10 + $0x150] sm:$0xff]  }
 0x2d1   : > { %5761 = vmatprep.subr.bf16.mxu1 %v6422_v50 }
 0x2d3   : > { %5746 = vmatmul.mubr.bf16.vlgmr.msra.gmra.mrb[0].mxu1 %v3165_v17  ;;  %v6444_v17 = vld [vmem:[#allocation10 + $0x1b0] sm:$0xff]  }
 0x2d4   : > { %5749 = vmatprep.mubr.bf16.mxu1 %v3166_v57  ;;  %5762 = vmatpush3.bf16.msra.mxu1 %v6422_v50  ;;  %v3169_v57 = vpack.c.bf16 %v7533_v11, %v7527_v44  ;;  %v8032_v44 = vpack.c.bf16 %v7351_v39, %v7342_v35  ;;  %v6431_v11 = vld [vmem:[#allocation10 + $0x148] sm:$0xff]   ;;  %v6433_v35 = vld [vmem:[#allocation10 + $0x158] sm:$0xff]   ;;  %v8035_v39 = vpack.c.bf16 %v7377_v38, %v7369_v47  ;;  %v6436_v47 = vld [vmem:[#allocation10 + $0x170] sm:$0xff]  }
 0x2d5   : > { %5763 = vmatprep.subr.bf16.mxu1 %v6423_v49  ;;  %v8036_v50 = vpack.c.bf16 %v7420_v58, %v7409_v59  ;;  %v6437_v38 = vld [vmem:[#allocation10 + $0x178] sm:$0xff]   ;;  %v8039_v59 = vpack.c.bf16 %v7454_v34, %v7438_v28  ;;  %v8040_v58 = vpack.c.bf16 %v7395_v22, %v7404_v12  ;;  %v6440_v28 = vld [vmem:[#allocation10 + $0x190] sm:$0xff]   ;;  %v7639_v34 = vld [vmem:[#allocation2 + $0x82] sm:$0xff] }
 0x2d6   : > { %v3571_v22 = vpack.c.bf16 %v7639_v34, %v7561_v5  ;;  %v6441_v12 = vld [vmem:[#allocation10 + $0x198] sm:$0xff]   ;;  %v8045_v5 = vpack.c.bf16 %v7495_v7, %v7493_v60  ;;  %v6448_v60 = vld [vmem:[#allocation10 + $0x1d0] sm:$0xff]  }
 0x2d7   : > { %v3761_v7 = vld [vmem:[#allocation2 + $0x90] sm:$0xff] }
 0x2d8   : > { %5764 = vmatpush3.bf16.msra.mxu1 %v6423_v49  ;;  %v3170_v49 = vpack.c.bf16 %v7541_v41, %v7525_v25  ;;  %v6430_v25 = vld [vmem:[#allocation10 + $0x140] sm:$0xff]   ;;  %v8033_v41 = vpack.c.bf16 %v7346_v46, %v7338_v2  ;;  %v6435_v46 = vld [vmem:[#allocation10 + $0x168] sm:$0xff]  }
 0x2d9   : > { %5765 = vmatprep.subr.bf16.mxu1 %v6424_v26  ;;  %v6434_v2 = vld [vmem:[#allocation10 + $0x160] sm:$0xff]  }
 0x2db   : > { %5750 = vmatmul.mubr.bf16.gmra.mrb[4].mxu1 %v3167_v10  ;;  %v6449_v10 = vld [vmem:[#allocation10 + $0x1d8] sm:$0xff]  }
 0x2dc   : > { %5753 = vmatprep.mubr.bf16.mxu1 %v3168_v45  ;;  %5766 = vmatpush3.bf16.msra.mxu1 %v6424_v26  ;;  %v7652_v26 = vld [vmem:[#allocation2 + $0x122] sm:$0xff] }
 0x2dd   : > { %5767 = vmatprep.subr.bf16.mxu1 %v6425_v20  ;;  %v3575_v51 = vpack.c.bf16 %v7652_v26, %v7579_v4  ;;  %v3773_v4 = vpack.c.bf16 %v3761_v7, %v7592_v19  ;;  %v3956_v19 = vld [vmem:[#allocation2 + $0x21] sm:$0xff]  ;;  %v4445_v7 = vld [vmem:[%s7990_s9 + $0x58] sm:$0xff] }
 0x2e0   : > { %5768 = vmatpush3.bf16.msra.mxu1 %v6425_v20  ;;  %v3769_v20 = vld [vmem:[#allocation2 + $0x130] sm:$0xff] }
 0x2e1   : > { %5769 = vmatprep.subr.bf16.mxu1 %v6426_v36  ;;  %v3777_v45 = vpack.c.bf16 %v3769_v20, %v7602_v16  ;;  %v6456_v16 = vld [vmem:[#allocation10 + $0x210] sm:$0xff]  }
 0x2e2   : > { %v4448_v20 = vld [vmem:[%s7990_s9 + $0x70] sm:$0xff] }
 0x2e3   : > { %5754 = vmatmul.mubr.bf16.gmra.mrb[8].mxu1 %v3169_v57 }
 0x2e4   : > { %5757 = vmatprep.mubr.bf16.mxu1 %v3170_v49  ;;  %5770 = vmatpush3.bf16.msra.mxu1 %v6426_v36  ;;  %v6453_v36 = vld [vmem:[#allocation10 + $0x1f8] sm:$0xff]   ;;  %v3960_v49 = vld [vmem:[#allocation2 + $0x61] sm:$0xff] }
 0x2e5   : > { %5771 = vmatprep.subr.bf16.mxu1 %v6427_v54 }
 0x2e8   : > { %5772 = vmatpush3.bf16.msra.mxu1 %v6427_v54  ;;  %v6454_v54 = vld [vmem:[#allocation10 + $0x200] sm:$0xff]  }
 0x2e9   : > { %5773 = vmatprep.subr.bf16.mxu1 %v6428_v1 }
 0x2eb   : > { %5758 = vmatmul.mubr.bf16.gmra.mrb[12].mxu1 %v3171_v53  ;;  %v3961_v53 = vld [vmem:[#allocation2 + $0x71] sm:$0xff] }
 0x2ec   : > { %5774 = vmatpush3.bf16.msra.mxu1 %v6428_v1  ;;  %5777 = vmatprep.mubr.bf16.mxu1 %v8032_v44  ;;  %v3974_v44 = vpack.c.bf16 %v3961_v53, %v3960_v49  ;;  %v5023_v49 = vld [vmem:[%s7989_s8] ss:$0 sm:$0xff] }
 0x2ed   : > { %5775 = vmatprep.subr.bf16.mxu1 %v6429_v18 }
 0x2f0   : > { %5776 = vmatpush3.bf16.msra.mxu1 %v6429_v18  ;;  %v6455_v18 = vld [vmem:[#allocation10 + $0x208] sm:$0xff]  }
 0x2f1   : > { %5793 = vmatprep.subr.bf16.mxu1 %v6430_v25 }
 0x2f3   : > { %5778 = vmatmul.mubr.bf16.vlgmr.msra.gmra.mrb[0].mxu1 %v8033_v41  ;;  %v3964_v41 = vld [vmem:[#allocation2 + $0xc1] sm:$0xff] }
 0x2f4   : > { %5781 = vmatprep.mubr.bf16.mxu1 %v8034_v6  ;;  %5794 = vmatpush3.bf16.msra.mxu1 %v6430_v25  ;;  %v3962_v25 = vld [vmem:[#allocation2 + $0x81] sm:$0xff] }
 0x2f5   : > { %5795 = vmatprep.subr.bf16.mxu1 %v6431_v11 }
 0x2f8   : > { %5796 = vmatpush3.bf16.msra.mxu1 %v6431_v11  ;;  %v3963_v11 = vld [vmem:[#allocation2 + $0x91] sm:$0xff] }
 0x2f9   : > { %5797 = vmatprep.subr.bf16.mxu1 %v6432_v56  ;;  %v3975_v6 = vpack.c.bf16 %v3963_v11, %v3962_v25 }
 0x2fb   : > { %5782 = vmatmul.mubr.bf16.gmra.mrb[4].mxu1 %v8035_v39 }
 0x2fc   : > { %5785 = vmatprep.mubr.bf16.mxu1 %v8036_v50  ;;  %5798 = vmatpush3.bf16.msra.mxu1 %v6432_v56  ;;  %v3965_v56 = vld [vmem:[#allocation2 + $0xd1] sm:$0xff]  ;;  %v6458_v50 = vld [vmem:[#allocation10 + $0x220] sm:$0xff]  }
 0x2fd   : > { %5799 = vmatprep.subr.bf16.mxu1 %v6433_v35  ;;  %v3976_v39 = vpack.c.bf16 %v3965_v56, %v3964_v41 }
 0x300   : > { %5800 = vmatpush3.bf16.msra.mxu1 %v6433_v35  ;;  %v6457_v35 = vld [vmem:[#allocation10 + $0x218] sm:$0xff]  }
 0x301   : > { %5801 = vmatprep.subr.bf16.mxu1 %v6434_v2 }
 0x303   : > { %5786 = vmatmul.mubr.bf16.gmra.mrb[8].mxu1 %v8037_v29  ;;  %v3966_v29 = vld [vmem:[#allocation2 + $0xe1] sm:$0xff] }
 0x304   : > { %5789 = vmatprep.mubr.bf16.mxu1 %v8038_v21  ;;  %5802 = vmatpush3.bf16.msra.mxu1 %v6434_v2  ;;  %v3967_v2 = vld [vmem:[#allocation2 + $0xf1] sm:$0xff] }
 0x305   : > { %5803 = vmatprep.subr.bf16.mxu1 %v6435_v46  ;;  %v3977_v21 = vpack.c.bf16 %v3967_v2, %v3966_v29 }
 0x308   : > { %5804 = vmatpush3.bf16.msra.mxu1 %v6435_v46  ;;  %v3968_v46 = vld [vmem:[#allocation2 + $0x101] sm:$0xff] }
 0x309   : > { %5805 = vmatprep.subr.bf16.mxu1 %v6436_v47 }
 0x30b   : > { %5790 = vmatmul.mubr.bf16.gmra.mrb[12].mxu1 %v8039_v59 }
 0x30c   : > { %5806 = vmatpush3.bf16.msra.mxu1 %v6436_v47  ;;  %5809 = vmatprep.mubr.bf16.mxu1 %v8040_v58  ;;  %v3969_v47 = vld [vmem:[#allocation2 + $0x111] sm:$0xff] }
 0x30d   : > { %5807 = vmatprep.subr.bf16.mxu1 %v6437_v38  ;;  %v3978_v59 = vpack.c.bf16 %v3969_v47, %v3968_v46  ;;  %v6460_v58 = vld [vmem:[#allocation10 + $0x230] sm:$0xff]  }
 0x310   : > { %5808 = vmatpush3.bf16.msra.mxu1 %v6437_v38  ;;  %v6459_v38 = vld [vmem:[#allocation10 + $0x228] sm:$0xff]  }
 0x311   : > { %5825 = vmatprep.subr.bf16.mxu1 %v6438_v27 }
 0x313   : > { %5810 = vmatmul.mubr.bf16.vlgmr.msra.gmra.mrb[0].mxu1 %v8041_v14 }
 0x314   : > { %5813 = vmatprep.mubr.bf16.mxu1 %v8042_v62  ;;  %5826 = vmatpush3.bf16.msra.mxu1 %v6438_v27  ;;  %v3970_v27 = vld [vmem:[#allocation2 + $0x121] sm:$0xff]  ;;  %v6461_v62 = vld [vmem:[#allocation10 + $0x238] sm:$0xff]  }
 0x315   : > { %5827 = vmatprep.subr.bf16.mxu1 %v6439_v13 }
 0x318   : > { %5828 = vmatpush3.bf16.msra.mxu1 %v6439_v13  ;;  %v3971_v13 = vld [vmem:[#allocation2 + $0x131] sm:$0xff] }
 0x319   : > { %5829 = vmatprep.subr.bf16.mxu1 %v6440_v28  ;;  %v3979_v14 = vpack.c.bf16 %v3971_v13, %v3970_v27 }
 0x31b   : > { %5814 = vmatmul.mubr.bf16.gmra.mrb[4].mxu1 %v3571_v22  ;;  %v4165_v22 = vld [vmem:[#allocation2 + $0x92] sm:$0xff] }
 0x31c   : > { %5817 = vmatprep.mubr.bf16.mxu1 %v8043_v48  ;;  %5830 = vmatpush3.bf16.msra.mxu1 %v6440_v28  ;;  %v8046_v28 = vmov 0.0   ;;  %v4173_v48 = vld [vmem:[#allocation2 + $0x132] sm:$0xff] }
 0x31d   : > { %5831 = vmatprep.subr.bf16.mxu1 %v6441_v12  ;;  %5953 = vmatprep.mubr.msk.f32.mxu0 %vm6650_vm0, %v8046_v28 }
 0x320   : > { %5832 = vmatpush3.bf16.msra.mxu1 %v6441_v12  ;;  %v4177_v12 = vpack.c.bf16 %v4165_v22, %v7639_v34  ;;  %v6649_v34 = vmov 0.0|0.0  }
 0x321   : > { %5833 = vmatprep.subr.bf16.mxu1 %v6442_v32  ;;  %5961 = vmatprep.subr.bf16.mxu0 %v6649_v34 }
 0x323   : > { %5818 = vmatmul.mubr.bf16.gmra.mrb[8].mxu1 %v8044_v33  ;;  %v4439_v33 = vld [vmem:[%s7990_s9 + $0x28] sm:$0xff] }
 0x324   : > { %5821 = vmatprep.mubr.bf16.mxu1 %v8045_v5  ;;  %5834 = vmatpush3.bf16.msra.mxu1 %v6442_v32  ;;  %v4440_v5 = vld [vmem:[%s7990_s9 + $0x30] sm:$0xff] }
 0x325   : > { %5835 = vmatprep.subr.bf16.mxu1 %v6443_v40 }
 0x328   : > { %5836 = vmatpush3.bf16.msra.mxu1 %v6443_v40  ;;  %v4438_v40 = vld [vmem:[%s7990_s9 + $0x20] sm:$0xff] }
 0x329   : > { %5837 = vmatprep.subr.bf16.mxu1 %v6444_v17 }
 0x32b   : > { %5822 = vmatmul.mubr.bf16.gmra.mrb[12].mxu1 %v3575_v51 }
 0x32c   : > { %5838 = vmatpush3.bf16.msra.mxu1 %v6444_v17  ;;  %5841 = vmatprep.mubr.bf16.mxu1 %v7499_v61  ;;  %v6450_v61 = vld [vmem:[#allocation10 + $0x1e0] sm:$0xff]   ;;  %v5968_v17 = vpack.c.bf16 %v4439_v33, %v4438_v40 }
 0x32d   : > { %5839 = vmatprep.subr.bf16.mxu1 %v6445_v43 }
 0x330   : > { %5840 = vmatpush3.bf16.msra.mxu1 %v6445_v43  ;;  %v4442_v43 = vld [vmem:[%s7990_s9 + $0x40] sm:$0xff] }
 0x331   : > { %5857 = vmatprep.subr.bf16.mxu1 %v6446_v52 }
 0x333   : > { %5842 = vmatmul.mubr.bf16.vlgmr.msra.gmra.mrb[0].mxu1 %v7507_v63  ;;  %v6451_v63 = vld [vmem:[#allocation10 + $0x1e8] sm:$0xff]  }
 0x334   : > { %5845 = vmatprep.mubr.bf16.mxu1 %v7519_v30  ;;  %5858 = vmatpush3.bf16.msra.mxu1 %v6446_v52  ;;  %v6452_v30 = vld [vmem:[#allocation10 + $0x1f0] sm:$0xff]   ;;  %v4443_v52 = vld [vmem:[%s7990_s9 + $0x48] sm:$0xff] }
 0x335   : > { %5859 = vmatprep.subr.bf16.mxu1 %v6447_v55 }
 0x338   : > { %5860 = vmatpush3.bf16.msra.mxu1 %v6447_v55  ;;  %v5974_v55 = vpack.c.bf16 %v4443_v52, %v4442_v43 }
 0x339   : > { %5861 = vmatprep.subr.bf16.mxu1 %v6448_v60 }
 0x33b   : > { %5846 = vmatmul.mubr.bf16.gmra.mrb[4].mxu1 %v3773_v4  ;;  %v4536_v4 = vld [vmem:[%s7992_s11] sm:$0xff] }
 0x33c   : > { %5849 = vmatprep.mubr.bf16.mxu1 %v7531_v37  ;;  %5862 = vmatpush3.bf16.msra.mxu1 %v6448_v60  ;;  %v3957_v37 = vld [vmem:[#allocation2 + $0x31] sm:$0xff] }
 0x33d   : > { %5863 = vmatprep.subr.bf16.mxu1 %v6449_v10  ;;  %v3972_v57 = vpack.c.bf16 %v3957_v37, %v3956_v19  ;;  %v4444_v60 = vld [vmem:[%s7990_s9 + $0x50] sm:$0xff]  ;;  %v4449_v19 = vld [vmem:[%s7990_s9 + $0x78] sm:$0xff]  ;;  %v5022_v37 = vld [vmem:[%s7988_s7] ss:$0 sm:$0xff] }
 0x340   : > { %5864 = vmatpush3.bf16.msra.mxu1 %v6449_v10  ;;  %v5977_v10 = vpack.c.bf16 %v4445_v7, %v4444_v60 }
 0x341   : > { %5865 = vmatprep.subr.bf16.mxu1 %v6450_v61 }
 0x343   : > { %5850 = vmatmul.mubr.bf16.gmra.mrb[8].mxu1 %v7537_v42  ;;  %v3959_v42 = vld [vmem:[#allocation2 + $0x51] sm:$0xff] }
 0x344   : > { %5853 = vmatprep.mubr.bf16.mxu1 %v7547_v9  ;;  %5866 = vmatpush3.bf16.msra.mxu1 %v6450_v61  ;;  %v3958_v9 = vld [vmem:[#allocation2 + $0x41] sm:$0xff] }
 0x345   : > { %5867 = vmatprep.subr.bf16.mxu1 %v6451_v63  ;;  %v3973_v1 = vpack.c.bf16 %v3959_v42, %v3958_v9  ;;  %v4446_v61 = vld [vmem:[%s7990_s9 + $0x60] sm:$0xff] }
 0x348   : > { %5868 = vmatpush3.bf16.msra.mxu1 %v6451_v63  ;;  %v4447_v63 = vld [vmem:[%s7990_s9 + $0x68] sm:$0xff] }
 0x349   : > { %5869 = vmatprep.subr.bf16.mxu1 %v6452_v30 }
 0x34b   : > { %5854 = vmatmul.mubr.bf16.gmra.mrb[12].mxu1 %v3777_v45  ;;  %v5983_v45 = vpack.c.bf16 %v4449_v19, %v4448_v20 }
 0x34c   : > { %5870 = vmatpush3.bf16.msra.mxu1 %v6452_v30  ;;  %5873 = vmatprep.mubr.bf16.mxu1 %v3972_v57  ;;  %v5980_v30 = vpack.c.bf16 %v4447_v63, %v4446_v61 }
 0x34d   : > { %5871 = vmatprep.subr.bf16.mxu1 %v6453_v36 }
 0x350   : > { %5872 = vmatpush3.bf16.msra.mxu1 %v6453_v36 }
 0x351   : > { %5889 = vmatprep.subr.bf16.mxu1 %v6454_v54 }
 0x353   : > { %5874 = vmatmul.mubr.bf16.vlgmr.msra.gmra.mrb[0].mxu1 %v3973_v1 }
 0x354   : > { %5877 = vmatprep.mubr.bf16.mxu1 %v3974_v44  ;;  %5890 = vmatpush3.bf16.msra.mxu1 %v6454_v54 }
 0x355   : > { %5891 = vmatprep.subr.bf16.mxu1 %v6455_v18 }
 0x358   : > { %5892 = vmatpush3.bf16.msra.mxu1 %v6455_v18 }
 0x359   : > { %5893 = vmatprep.subr.bf16.mxu1 %v6456_v16 }
 0x35b   : > { %5878 = vmatmul.mubr.bf16.gmra.mrb[4].mxu1 %v3975_v6 }
 0x35c   : > { %5881 = vmatprep.mubr.bf16.mxu1 %v3976_v39  ;;  %5894 = vmatpush3.bf16.msra.mxu1 %v6456_v16 }
 0x35d   : > { %5895 = vmatprep.subr.bf16.mxu1 %v6457_v35 }
 0x360   : > { %5896 = vmatpush3.bf16.msra.mxu1 %v6457_v35 }
 0x361   : > { %5897 = vmatprep.subr.bf16.mxu1 %v6458_v50 }
 0x363   : > { %5882 = vmatmul.mubr.bf16.gmra.mrb[8].mxu1 %v3977_v21 }
 0x364   : > { %5885 = vmatprep.mubr.bf16.mxu1 %v3978_v59  ;;  %5898 = vmatpush3.bf16.msra.mxu1 %v6458_v50 }
 0x365   : > { %5899 = vmatprep.subr.bf16.mxu1 %v6459_v38 }
 0x368   : > { %5900 = vmatpush3.bf16.msra.mxu1 %v6459_v38 }
 0x369   : > { %5901 = vmatprep.subr.bf16.mxu1 %v6460_v58 }
 0x36b   : > { %5886 = vmatmul.mubr.bf16.gmra.mrb[12].mxu1 %v3979_v14 }
 0x36c   : > { %5902 = vmatpush3.bf16.msra.mxu1 %v6460_v58  ;;  %5905 = vmatprep.mubr.bf16.mxu1 %v7553_v15  ;;  %v4181_v15 = vpack.c.bf16 %v4173_v48, %v7652_v26  ;;  %v4441_v26 = vld [vmem:[%s7990_s9 + $0x38] sm:$0xff] }
 0x36d   : > { %5903 = vmatprep.subr.bf16.mxu1 %v6461_v62  ;;  %v5971_v51 = vpack.c.bf16 %v4441_v26, %v4440_v5 }
 0x370   : > { %5904 = vmatpush3.bf16.msra.mxu1 %v6461_v62 }
 0x371   : > { %5956 = vmatprep.subr.mxu1 %v8046_v28 }
 0x373   : > { %5906 = vmatmul.mubr.bf16.vlgmr.msra.gmra.mrb[0].mxu1 %v7557_v3  ;;  %v4434_v3 = vld [vmem:[%s7990_s9] sm:$0xff] }
 0x374   : > { %5909 = vmatprep.mubr.bf16.mxu1 %v7565_v8  ;;  %v4435_v8 = vld [vmem:[%s7990_s9 + $0x8] sm:$0xff]  ;;  %5957 = vmatpush3.msra.mxu1 %v4536_v4 }
 0x375   : > { %v5962_v32 = vpack.c.bf16 %v4435_v8, %v4434_v3 }
 0x377   : > { %5963 = vmatpush3.bf16.msra.mxu0 %v5962_v32 }
 0x378   : > { %5964 = vmatprep.subr.bf16.mxu0 %v6649_v34 }
 0x37b   : > { %5910 = vmatmul.mubr.bf16.gmra.mrb[4].mxu1 %v4177_v12 }
 0x37c   : > { %5913 = vmatprep.mubr.bf16.mxu1 %v7571_v24  ;;  %v4437_v24 = vld [vmem:[%s7990_s9 + $0x18] sm:$0xff] }
 0x383   : > { %5914 = vmatmul.mubr.bf16.gmra.mrb[8].mxu1 %v7575_v31  ;;  %v4436_v31 = vld [vmem:[%s7990_s9 + $0x10] sm:$0xff] }
 0x384   : > { %5917 = vmatprep.mubr.bf16.mxu1 %v7583_v0  ;;  %v5965_v0 = vpack.c.bf16 %v4437_v24, %v4436_v31 }
 0x386   : > { %5966 = vmatpush3.bf16.msra.mxu0 %v5965_v0 }
 0x387   : > { %5967 = vmatprep.subr.bf16.mxu0 %v6649_v34 }
 0x38a   : > { %5969 = vmatpush3.bf16.msra.mxu0 %v5968_v17 }
 0x38b   : > { %5918 = vmatmul.mubr.bf16.gmra.mrb[12].mxu1 %v4181_v15  ;;  %5970 = vmatprep.subr.bf16.mxu0 %v6649_v34 }
 0x38c   : > { %5958 = vmatprep.mubr.msk.f32.mxu1 %vm6650_vm0, %v8046_v28 }
 0x38e   : > { %5972 = vmatpush3.bf16.msra.mxu0 %v5971_v51 }
 0x38f   : > { %5973 = vmatprep.subr.bf16.mxu0 %v6649_v34 }
 0x392   : > { %5975 = vmatpush3.bf16.msra.mxu0 %v5974_v55 }
 0x393   : > { %5976 = vmatprep.subr.bf16.mxu0 %v6649_v34 }
 0x396   : > { %5978 = vmatpush3.bf16.msra.mxu0 %v5977_v10 }
 0x397   : > { %5979 = vmatprep.subr.bf16.mxu0 %v6649_v34 }
 0x39a   : > { %5981 = vmatpush3.bf16.msra.mxu0 %v5980_v30 }
 0x39b   : > { %5982 = vmatprep.subr.bf16.mxu0 %v6649_v34 }
 0x39e   : > { %5984 = vmatpush3.bf16.msra.mxu0 %v5983_v45 }
 0x446   : > { %v5907_v36 = vpop.f32.mrb[0].mxu1 }
 0x447   : > { %v4281_v57 = vpop.f32.mrb[1].mxu1  ;;  %v4369_v1 = vmul.f32 %v5907_v36, %v5022_v37 }
 0x448   : > { %v4367_v54 = vmul.f32 %v5022_v37, %v4281_v57  ;;  %v5908_v42 = vpop.f32.mrb[2].mxu1 }
 0x449   : > { %v4284_v9 = vpop.f32.mrb[3].mxu1  ;;  %v4370_v44 = vmul.f32 %v5908_v42, %v5022_v37  ;;  %v7736_v25 = vadd.f32 %v5023_v49, %v4369_v1 }
 0x44a   : > { %v4368_v53 = vmul.f32 %v5022_v37, %v4284_v9  ;;  %v7732_v18 = vadd.f32 %v5023_v49, %v4367_v54 }
 0x44b   : > { %v7740_v56 = vadd.f32 %v5023_v49, %v4370_v44 }
 0x44c   : > { %v7734_v16 = vadd.f32 %v5023_v49, %v4368_v53 }
 0x44e   : > { %v4406_v11 = vadd.f32 %v7734_v16, %v7732_v18  ;;  %v5911_v41 = vpop.f32.mrb[4].mxu1 }
 0x44f   : > { %v4297_v6 = vpop.f32.mrb[5].mxu1  ;;  %v4373_v46 = vmul.f32 %v5911_v41, %v5022_v37 }
 0x450   : > { %v4407_v35 = vadd.f32 %v4406_v11, %v7736_v25  ;;  %v4371_v39 = vmul.f32 %v5022_v37, %v4297_v6  ;;  %v5912_v50 = vpop.f32.mrb[6].mxu1 }
 0x451   : > { %v4300_v2 = vpop.f32.mrb[7].mxu1  ;;  %v7749_v58 = vadd.f32 %v5023_v49, %v4373_v46  ;;  %v4374_v27 = vmul.f32 %v5912_v50, %v5022_v37 }
 0x452   : > { %v7743_v29 = vadd.f32 %v5023_v49, %v4371_v39  ;;  %v4408_v21 = vadd.f32 %v4407_v35, %v7740_v56  ;;  %v4372_v47 = vmul.f32 %v5022_v37, %v4300_v2 }
 0x453   : > { %v7753_v15 = vadd.f32 %v5023_v49, %v4374_v27 }
 0x454   : > { %v4409_v38 = vadd.f32 %v4408_v21, %v7743_v29  ;;  %v7747_v59 = vadd.f32 %v5023_v49, %v4372_v47  ;;  %v4533_v21 = vstv %s549_s19 }
 0x456   : > { %v4410_v13 = vadd.f32 %v4409_v38, %v7747_v59  ;;  %v5915_v14 = vpop.f32.mrb[8].mxu1 }
 0x457   : > { %v4313_v62 = vpop.f32.mrb[9].mxu1  ;;  %v4377_v3 = vmul.f32 %v5915_v14, %v5022_v37  ;;  %v5025_v14 = vld [vmem:[%s8048_s10] ss:$0 sm:$0xff] }
 0x458   : > { %v4411_v28 = vadd.f32 %v4410_v13, %v7749_v58  ;;  %v4375_v22 = vmul.f32 %v5022_v37, %v4313_v62  ;;  %v5916_v12 = vpop.f32.mrb[10].mxu1 }
 0x459   : > { %v4316_v48 = vpop.f32.mrb[11].mxu1  ;;  %v4378_v31 = vmul.f32 %v5916_v12, %v5022_v37  ;;  %v7760_v0 = vadd.f32 %v5023_v49, %v4377_v3 }
 0x45a   : > { %v4376_v8 = vmul.f32 %v5022_v37, %v4316_v48  ;;  %v4412_v34 = vadd.f32 %v4411_v28, %v7753_v15  ;;  %v7756_v32 = vadd.f32 %v5023_v49, %v4375_v22 }
 0x45b   : > { %v7764_v26 = vadd.f32 %v5023_v49, %v4378_v31  ;;  %v4628_v31 = vlaneseq }
 0x45c   : > { %v7758_v24 = vadd.f32 %v5023_v49, %v4376_v8  ;;  %v4413_v17 = vrot.slane %v4412_v34, 4  ;;  %v6651_v8 = vmov 1966171168  }
 0x45e   : > { %v4419_v40 = vadd.f32 %v7758_v24, %v7756_v32  ;;  %v5919_v33 = vpop.f32.mrb[12].mxu1  ;;  %v4414_v61 = vadd.f32 %v4413_v17, %v4412_v34  ;;  %v4626_v34 = vunpack.c.l.s4 %v6651_v8 }
 0x45f   : > { %v4329_v5 = vpop.f32.mrb[13].mxu1  ;;  %v4381_v60 = vmul.f32 %v5919_v33, %v5022_v37  ;;  %v4629_v33 = vshrl.u32 %v4628_v31, 7 }
 0x460   : > { %v4420_v51 = vadd.f32 %v4419_v40, %v7760_v0  ;;  %v4379_v43 = vmul.f32 %v5022_v37, %v4329_v5  ;;  %v5920_v52 = vpop.f32.mrb[14].mxu1  ;;  %v4415_v36 = vrot.slane %v4414_v61, 2  ;;  %v4627_v40 = vunpack.c.0.s8 %v4626_v34 }
 0x461   : > { %v4332_v55 = vpop.f32.mrb[15].mxu1  ;;  %v4382_v30 = vmul.f32 %v5920_v52, %v5022_v37  ;;  %v7773_v19 = vadd.f32 %v5023_v49, %v4381_v60 }
 0x462   : > { %v7767_v7 = vadd.f32 %v5023_v49, %v4379_v43  ;;  %v4421_v4 = vadd.f32 %v4420_v51, %v7764_v26  ;;  %v4380_v10 = vmul.f32 %v5022_v37, %v4332_v55  ;;  %v4416_v9 = vadd.f32 %v4415_v36, %v4414_v61 }
 0x463   : > { %v7776_v57 = vadd.f32 %v5023_v49, %v4382_v30  ;;  %v4630_v5 = vsub.s32 %v4627_v40, %v4629_v33  ;;  %v4649_v43 = vsub.s32 0, %v4629_v33 }
 0x464   : > { %v4422_v63 = vadd.f32 %v4421_v4, %v7767_v7  ;;  %v7771_v20 = vadd.f32 %v5023_v49, %v4380_v10  ;;  %v4417_v11 = vrot.slane %v4416_v9, 1  ;;  %v5024_v49 = vld [vmem:[%s8047_s26] ss:$0 sm:$0xff]  ;;  %s6652_s26 = smov [#allocation11]  }
 0x465   : > { %s6573_s28 = sshll.u32 %s6652_s26, 4  ;;  %s6574_s28 = int_to_ptr.vmem [resolvable:$false] %s6573_s28 }
 0x466   : > { %v4423_v45 = vadd.f32 %v4422_v63, %v7771_v20  ;;  %v4418_v37 = vadd.f32 %v4417_v11, %v4416_v9  ;;  %s6575_s17 = scalar_lea.vmem %s6574_s28, 4096  ;;  %p6576_p7 = scmp.lt.s32.totalorder %s7915_s16, %s6574_s28 }
 0x467   : > { %p6577_p9 = scmp.lt.s32.totalorder %s6575_s17, %s6569_s29 }
 0x468   : > { %v4424_v54 = vadd.f32 %v4423_v45, %v7773_v19  ;;  %v4432_v39 = vmul.f32 0.015625, %v4418_v37 }
 0x469   : > { %p6578_p12 = por %p6577_p9, %p6576_p7 }
 0x46a   : > { %v4425_v42 = vadd.f32 %v4424_v54, %v7776_v57 }
 0x46b   : > { %p6579_p2 = pnand %p6578_p12, %p6572_p3 }
 0x46c   : > { %v4426_v1 = vrot.slane %v4425_v42, 4 }
 0x46e   : > { %v4427_v53 = vadd.f32 %v4426_v1, %v4425_v42  ;;  %v6467_v1 = vld [vmem:[%s6919_s18] sm:$0xff] }
 0x470   : > { %v4428_v44 = vrot.slane %v4427_v53, 2 }
 0x472   : > { %v4429_v41 = vadd.f32 %v4428_v44, %v4427_v53  ;;  %v6469_v53 = vld [vmem:[%s6919_s18 + $0x10] sm:$0xff] }
 0x474   : > { %v4430_v6 = vrot.slane %v4429_v41, 1 }
 0x476   : > { %v4431_v35 = vadd.f32 %v4430_v6, %v4429_v41  ;;  %v6473_v41 = vld [vmem:[%s6919_s18 + $0x30] sm:$0xff]  ;;  %v6474_v6 = vld [vmem:[%s6919_s18 + $0x38] sm:$0xff] }
 0x478   : > { %v4433_v50 = vmul.f32 0.015625, %v4431_v35 }
 0x47a   : > { %v4460_v2 = vsel %vm4459_vm1, %v4433_v50, %v4432_v39  ;;  %v6475_v39 = vld [vmem:[%s6919_s18 + $0x40] sm:$0xff] }
 0x47b   : > { %5954 = vmatmul.mubr.f32.vlgmr.msra.gmra.mrb[16].mxu0 %v4460_v2  ;;  %v6476_v2 = vld [vmem:[%s6919_s18 + $0x48] sm:$0xff] }
 0x54e   : > { %v4528_v46 = vpop.f32.mrb[16].mxu0 }
 0x54f   : > { %v4529_v47 = vadd.f32 %v5024_v49, %v4528_v46  ;;  %v5955_v38 = vpop.f32.mrb[17].mxu0  ;;  %v6477_v46 = vld [vmem:[%s6919_s18 + $0x50] sm:$0xff] }
 0x551   : > { %vm4532_vm2 = vcmp.ge.f32.partialorder %v4529_v47, 0.0  ;;  %v4534_v27 = vmul.f32 %v4533_v21, %v4529_v47 }
 0x553   : > { %v4535_v13 = vsel %vm4532_vm2, %v4529_v47, %v4534_v27  ;;  %v6478_v47 = vld [vmem:[%s6919_s18 + $0x58] sm:$0xff]  ;;  %v6479_v27 = vld [vmem:[%s6919_s18 + $0x60] sm:$0xff] }
 0x554   : > { %5959 = vmatmul.mubr.msk.f32.vlgmr.msra.gmra.mrb[16].mxu1 %vm4544_vm3, %v4535_v13 }
 0x627   : > { %v4614_v62 = vpop.f32.mrb[16].mxu1 }
 0x628   : > { %v4615_v28 = vadd.f32 %v5025_v14, %v4614_v62  ;;  %v5960_v22 = vpop.f32.mrb[17].mxu1  ;;  %v6480_v14 = vld [vmem:[%s6919_s18 + $0x68] sm:$0xff] }
 0x62a   : > { %v5027_v12 = vmul.f32 -1.442695, %v4615_v28  ;;  %v6481_v28 = vld [vmem:[%s6919_s18 + $0x70] sm:$0xff] }
 0x62c   : > { %6462 = vpow2.f32 %v5027_v12  ;;  %v6482_v12 = vld [vmem:[%s6919_s18 + $0x78] sm:$0xff] }
 0x636   : > { %v6463_v48 = vpop.eup %6462 }
 0x637   : > { %v4621_v3 = vadd.f32 1.0, %v6463_v48 }
 0x639   : > { %6464 = vrcp.f32 %v4621_v3 }
 0x643   : > { %v6465_v17 = vpop.eup %6464 }
 0x644   : > { %v4631_v51 = vrot.slane %v6465_v17, %v4630_v5 }
 0x646   : > { %v4632_v52 = vcombine.high %v4631_v51, %v4631_v51  ;;  %v4639_v55 = vrot.slane %v4631_v51, %v4630_v5 }
 0x648   : > { %v4646_v60 = vrot.slane %v4632_v52, %v4630_v5  ;;  %v4650_v4 = vrot.slane %v4639_v55, %v4649_v43 }
 0x64a   : > { %v4654_v10 = vrot.slane %v4646_v60, %v4649_v43  ;;  %v4657_v61 = vmul.f32 %v4650_v4, %v7732_v18  ;;  %v4658_v63 = vmul.f32 %v4650_v4, %v7734_v16  ;;  %v4659_v30 = vmul.f32 %v4650_v4, %v7736_v25 }
 0x64b   : > { %v4660_v45 = vmul.f32 %v4650_v4, %v7740_v56  ;;  %v4661_v36 = vmul.f32 %v4650_v4, %v7743_v29  ;;  %v4662_v54 = vmul.f32 %v4650_v4, %v7747_v59  ;;  %v4663_v42 = vmul.f32 %v4650_v4, %v7749_v58 }
 0x64c   : > { %v4664_v9 = vmul.f32 %v4650_v4, %v7753_v15  ;;  %v4665_v18 = vmul.f32 %v4654_v10, %v7756_v32  ;;  %v4666_v16 = vmul.f32 %v4654_v10, %v7758_v24  ;;  %v4667_v25 = vmul.f32 %v4654_v10, %v7760_v0  ;;  %v6468_v24 = vld [vmem:[%s6919_s18 + $0x8] sm:$0xff] }
 0x64d   : > { %v4668_v56 = vmul.f32 %v4654_v10, %v7764_v26  ;;  %v4669_v29 = vmul.f32 %v4654_v10, %v7767_v7  ;;  %v4670_v59 = vmul.f32 %v4654_v10, %v7771_v20  ;;  %v4671_v58 = vmul.f32 %v4654_v10, %v7773_v19  ;;  %v6470_v7 = vld [vmem:[%s6919_s18 + $0x18] sm:$0xff]  ;;  %v6471_v19 = vld [vmem:[%s6919_s18 + $0x20] sm:$0xff] }
 0x64e   : > { %v4672_v15 = vmul.f32 %v4654_v10, %v7776_v57  ;;  %v7803_v32 = vadd.f32 %v6467_v1, %v4657_v61  ;;  %v7806_v0 = vadd.f32 %v6468_v24, %v4658_v63  ;;  %v7809_v26 = vadd.f32 %v6469_v53, %v4659_v30  ;;  %v6472_v57 = vld [vmem:[%s6919_s18 + $0x28] sm:$0xff]  ;;  %s5037_s18 = sshll.u32 %s6762_s13, 11 }
 0x64f   : > { %v7812_v20 = vadd.f32 %v6470_v7, %v4660_v45  ;;  %v7815_v44 = vadd.f32 %v6471_v19, %v4661_v36  ;;  %v4678_v11 = vadd.f32 %v6472_v57, %v4662_v54  ;;  %v4679_v37 = vadd.f32 %v6473_v41, %v4663_v42  ;;  %s7913_s19 = scalar_lea.hbm %s8049_s27, %s5037_s18 }
 0x650   : > { %v7820_v35 = vadd.f32 %v6474_v6, %v4664_v9  ;;  %v4681_v50 = vadd.f32 %v6475_v39, %v4665_v18  ;;  %v4682_v49 = vadd.f32 %v6476_v2, %v4666_v16  ;;  %v4683_v21 = vadd.f32 %v6477_v46, %v4667_v25 }
 0x651   : > { %v7826_v38 = vadd.f32 %v6478_v47, %v4668_v56  ;;  %v7829_v13 = vadd.f32 %v6479_v27, %v4669_v29  ;;  %v7832_v62 = vadd.f32 %v6480_v14, %v4670_v59  ;;  %v4687_v22 = vadd.f32 %v6481_v28, %v4671_v58 }
 0x652   : > { %v7836_v48 = vadd.f32 %v6482_v12, %v4672_v15  ;;  %vm4689_vm4 = vcmp.ge.f32.partialorder %v7803_v32, 0.0  ;;  %vm4690_vm5 = vcmp.ge.f32.partialorder %v7806_v0, 0.0  ;;  %vm4691_vm6 = vcmp.ge.f32.partialorder %v7809_v26, 0.0 }
 0x653   : > { %vm4692_vm7 = vcmp.ge.f32.partialorder %v7812_v20, 0.0  ;;  %vm4693_vm8 = vcmp.ge.f32.partialorder %v7815_v44, 0.0  ;;  %vm4694_vm9 = vcmp.ge.f32.partialorder %v4678_v11, 0.0  ;;  %vm4695_vm10 = vcmp.ge.f32.partialorder %v4679_v37, 0.0 }
 0x654   : > { %vm4696_vm11 = vcmp.ge.f32.partialorder %v7820_v35, 0.0  ;;  %vm4697_vm12 = vcmp.ge.f32.partialorder %v4681_v50, 0.0  ;;  %vm4698_vm13 = vcmp.ge.f32.partialorder %v4682_v49, 0.0  ;;  %vm4699_vm14 = vcmp.ge.f32.partialorder %v4683_v21, 0.0 }
 0x655   : > { %vm4700_vm15 = vcmp.ge.f32.partialorder %v7826_v38, 0.0  ;;  %vm4701_vm0 = vcmp.ge.f32.partialorder %v7829_v13, 0.0  ;;  %vm4702_vm1 = vcmp.ge.f32.partialorder %v7832_v62, 0.0  ;;  %vm4703_vm2 = vcmp.ge.f32.partialorder %v4687_v22, 0.0 }
 0x656   : > { %vm4704_vm3 = vcmp.ge.f32.partialorder %v7836_v48, 0.0  ;;  %v4705_v3 = vmul.f32 %v7803_v32, %v7327_v23  ;;  %v4706_v8 = vmul.f32 %v7806_v0, %v7327_v23  ;;  %v4707_v34 = vmul.f32 %v7809_v26, %v7327_v23 }
 0x657   : > { %v4708_v31 = vmul.f32 %v7812_v20, %v7327_v23  ;;  %v4709_v40 = vmul.f32 %v7815_v44, %v7327_v23  ;;  %v4710_v33 = vmul.f32 %v4678_v11, %v7327_v23  ;;  %v4711_v5 = vmul.f32 %v4679_v37, %v7327_v23 }
 0x658   : > { %v4712_v17 = vmul.f32 %v7820_v35, %v7327_v23  ;;  %v4713_v51 = vmul.f32 %v4681_v50, %v7327_v23  ;;  %v4714_v43 = vmul.f32 %v4682_v49, %v7327_v23  ;;  %v4715_v52 = vmul.f32 %v4683_v21, %v7327_v23 }
 0x659   : > { %v4716_v55 = vmul.f32 %v7826_v38, %v7327_v23  ;;  %v4717_v60 = vmul.f32 %v7829_v13, %v7327_v23  ;;  %v4718_v4 = vmul.f32 %v7832_v62, %v7327_v23  ;;  %v4719_v10 = vmul.f32 %v4687_v22, %v7327_v23 }
 0x65a   : > { %v4720_v61 = vmul.f32 %v7836_v48, %v7327_v23  ;;  %v4721_v63 = vsel %vm4689_vm4, %v7803_v32, %v4705_v3  ;;  %v4722_v30 = vsel %vm4690_vm5, %v7806_v0, %v4706_v8  ;;  %v4723_v45 = vsel %vm4691_vm6, %v7809_v26, %v4707_v34 }
 0x65b   : > { %v4724_v36 = vsel %vm4692_vm7, %v7812_v20, %v4708_v31  ;;  %v4725_v23 = vsel %vm4693_vm8, %v7815_v44, %v4709_v40  ;;  %v4726_v54 = vsel %vm4694_vm9, %v4678_v11, %v4710_v33  ;;  %v4727_v42 = vsel %vm4695_vm10, %v4679_v37, %v4711_v5  ;;  %4737 = vst [vmem:[%s7875_s12] sm:$0xff] %v4721_v63 }
 0x65c   : > { %4738 = vst [vmem:[%s7875_s12 + $0x8] sm:$0xff] %v4722_v30  ;;  %4739 = vst [vmem:[%s7875_s12 + $0x10] sm:$0xff] %v4723_v45  ;;  %v4728_v9 = vsel %vm4696_vm11, %v7820_v35, %v4712_v17  ;;  %v4729_v18 = vsel %vm4697_vm12, %v4681_v50, %v4713_v51  ;;  %v4730_v16 = vsel %vm4698_vm13, %v4682_v49, %v4714_v43 }
 0x65d   : > { %v4731_v25 = vsel %vm4699_vm14, %v4683_v21, %v4715_v52  ;;  %4740 = vst [vmem:[%s7875_s12 + $0x18] sm:$0xff] %v4724_v36  ;;  %4741 = vst [vmem:[%s7875_s12 + $0x20] sm:$0xff] %v4725_v23  ;;  %v4732_v56 = vsel %vm4700_vm15, %v7826_v38, %v4716_v55  ;;  %v4733_v29 = vsel %vm4701_vm0, %v7829_v13, %v4717_v60 }
 0x65e   : > { %4742 = vst [vmem:[%s7875_s12 + $0x28] sm:$0xff] %v4726_v54  ;;  %4743 = vst [vmem:[%s7875_s12 + $0x30] sm:$0xff] %v4727_v42  ;;  %v4734_v59 = vsel %vm4702_vm1, %v7832_v62, %v4718_v4  ;;  %v4735_v58 = vsel %vm4703_vm2, %v4687_v22, %v4719_v10  ;;  %v4736_v15 = vsel %vm4704_vm3, %v7836_v48, %v4720_v61 }
 0x65f   : > { %4744 = vst [vmem:[%s7875_s12 + $0x38] sm:$0xff] %v4728_v9  ;;  %4745 = vst [vmem:[%s7875_s12 + $0x40] sm:$0xff] %v4729_v18 }
 0x660   : > { %4746 = vst [vmem:[%s7875_s12 + $0x48] sm:$0xff] %v4730_v16  ;;  %4747 = vst [vmem:[%s7875_s12 + $0x50] sm:$0xff] %v4731_v25 }
 0x661   : > { %4748 = vst [vmem:[%s7875_s12 + $0x58] sm:$0xff] %v4732_v56  ;;  %4749 = vst [vmem:[%s7875_s12 + $0x60] sm:$0xff] %v4733_v29 }
 0x662   : > { %4750 = vst [vmem:[%s7875_s12 + $0x68] sm:$0xff] %v4734_v59  ;;  %4751 = vst [vmem:[%s7875_s12 + $0x70] sm:$0xff] %v4735_v58 }
 0x663   : > { %4752 = vst [vmem:[%s7875_s12 + $0x78] sm:$0xff] %v4736_v15 }
 0x664   : > { %6582 = shalt.err (!%p6579_p2)
}
 0x665   : > { %s6583_s10 = scalar_lea.hbm %s7913_s19, 2048  ;;  %s6587_s13 = scalar_lea.hbm %s8049_s27, 4096 }
 0x666   : > { %p6584_p13 = scmp.ne.s32.totalorder %s7913_s19, %s6583_s10  ;;  %p6588_p4 = scmp.lt.u32.totalorder %s7913_s19, %s8049_s27 }
 0x667   : > { %p6589_p5 = scmp.lt.u32.totalorder %s6587_s13, %s6583_s10  ;;  %p6591_p11 = scmp.lt.u32.totalorder %s6583_s10, %s7913_s19 }
 0x668   : > { %p6585_p6 = pnand %p6584_p13, %p8050_p0 }
 0x669   : > { %p6590_p8 = por %p6589_p5, %p6588_p4 }
 0x66a   : > { %p6586_p10 = pneg %p6585_p6 }
 0x66b   : > { %p6592_p1 = por %p6591_p11, %p6590_p8 }
 0x66d   : > { %p6593_p3 = pnand %p6592_p1, %p6586_p10 }
 0x66f   : > { %6596 = shalt.err (!%p6593_p3)
}
 0x670   : > { %s6653_s29 = smov 128   ;;  %s6654_s28 = smov 8  }
 0x671   : > { %6251 = dma.vmem_to_hbm [thread:$0]  (%p8050_p0), %s7915_s16, 2048, %s7913_s19, %s4754_s22, %s6653_s29, %s6653_s29, %s6654_s28  }
 0x672 PF: > { %s8051_s17 = sld [smem:[#allocation15_spill]]  ;;  %s8052_s18 = sld [smem:[#allocation16_spill]] }
 0x673   : > { %p8054_p9 = scmp.ge.s32.totalorder %s6639_s25, 2 }
 0x678   : > { %s4783_s12 = sand.u32 1, %s8051_s17   ;;  %p8053_p7 = scmp.ne.s32.totalorder %s8052_s18, 0 }
 0x679   : > { %s4784_s10 = scalar_lea.sflag [#allocation7], %s4783_s12 }
 0x67a   : > { %p6265_p12 = pnand %p8054_p9, %p8053_p7 }
 0x67c   : > { %6622 = dma.done.wait (!%p6265_p12), %s4784_s10, 2048  }
 0x67d   : > { %6624 = vsyncadd (!%p6265_p12), %s4784_s10, 4294965248  ;;  %p31_p2 = scmp.ge.s32.totalorder %s6851_s15, 4   ;;  %s8055_s22 = smov %s6631_s23 }
 0x67e   : > { %s8056_s23 = smov %s6635_s24  ;;  %s8057_s24 = smov %s6867_s21 }
 0x67f   : > { %s8058_s25 = smov %s6851_s15  ;;  %33 = sbr.rel (!%p31_p2) target bundleno = 12 (0xc), region = 152 }
 0x686   :  { %4789 = vsyncpa [#allocation6], 1 }
 0x687   :  { %4791 = vsyncpa [#allocation6 + $0x1], 1 }
 0x688   :  { %4792 = vsyncpa [#allocation9], 1 }
 0x689   :  { %4793 = vsyncpa [#allocation7], 1 }
 0x68a   :  { %4795 = vsyncpa [#allocation7 + $0x1], 1 }

</bundles_post_ra>
